<compile_context>
chip_gen: v7x
topology: tpu7x:2x2x1
jax: 0.10.0
libtpu: 0.0.40
codegen_flags: <defaults>
</compile_context>

<pallas_src>
from functools import partial

import jax
import jax.numpy as jnp
from jax.experimental import pallas as pl
from jax.experimental.pallas import tpu as pltpu

EPS = 1e-5


def _bottleneck_kernel(x_ref, w1_ref, w2_ref, w3_ref,
                       b1_ref, b2_ref, b3_ref, o_ref, *,
                       band_rows, last_relu):
    """One (batch, row-band) step.

    x_ref : (1, H, W, Cin)  bf16 -- full image (resident across row bands)
    w1_ref: (Cin, P)        bf16   BN1 scale folded
    w2_ref: (9*P, P)        bf16   tap-major im2col weight, BN2 scale folded
    w3_ref: (P, Cout)       bf16   BN3 scale folded
    b*_ref: (1, C)          f32    folded BN biases
    o_ref : (1, Th, Wo, Cout) f32  -- this band's Th output rows
    """
    H, W, Cin = x_ref.shape[1], x_ref.shape[2], x_ref.shape[3]
    P = w1_ref.shape[1]
    Cout = w3_ref.shape[1]
    Th = band_rows
    Wo = W - 2

    r = pl.program_id(1)
    h0 = r * Th                                      # first input row needed

    # (Th+2) input rows: H is not a tiled dim, so the dynamic slice is free.
    xb = x_ref[0, pl.ds(h0, Th + 2), :, :]           # (Th+2, W, Cin) bf16
    L = (Th + 2) * W

    # ---- conv1 (1x1, BN1 folded): bf16 matmul, f32 bias+relu ----------------
    y1 = jnp.dot(xb.reshape(L, Cin), w1_ref[...],
                 preferred_element_type=jnp.float32)
    y1 = jnp.maximum(y1 + b1_ref[...], 0.0)
    y1b = y1.astype(jnp.bfloat16).reshape(Th + 2, W, P)

    # ---- conv2 (3x3) as ONE im2col matmul over the valid interior -----------
    # The center crop discards the padded border, so padding is never needed:
    # every tap is an interior slice of y1.  K = 9*P feeds the MXU well.
    taps = []
    for ky in range(3):
        for kx in range(3):
            taps.append(y1b[ky:ky + Th, kx:kx + Wo, :].reshape(Th * Wo, P))
    patches = jnp.concatenate(taps, axis=-1)         # (Th*Wo, 9P) bf16
    z = jnp.dot(patches, w2_ref[...], preferred_element_type=jnp.float32)
    y2 = jnp.maximum(z + b2_ref[...], 0.0).astype(jnp.bfloat16)

    # ---- conv3 (1x1, BN3 folded) + bias + residual (+ relu), f32 ------------
    y3 = jnp.dot(y2, w3_ref[...], preferred_element_type=jnp.float32)
    res = xb[1:Th + 1, 1:1 + Wo, :].reshape(Th * Wo, Cin).astype(jnp.float32)
    out = y3 + (res + b3_ref[...])                   # b3 folded into one add
    if last_relu:
        out = jnp.maximum(out, 0.0)

    # Full-block store (the crop already happened by construction).
    o_ref[0] = out.reshape(Th, Wo, Cout).astype(o_ref.dtype)


def _pick_band_rows(Ho):
    """Largest divisor of Ho not exceeding max(8, Ho // 4)."""
    target = max(8, Ho // 4)
    best = Ho
    for d in range(1, Ho + 1):
        if Ho % d == 0 and d <= target:
            best = d
    return best


def _vmem_estimate_bytes(H, W, Cin, P, Cout, Th, Wo):
    bf16, f32 = 2, 4
    x_blk = H * W * Cin * bf16 * 2                    # double-buffered input
    o_blk = Th * Wo * Cout * f32 * 2                  # double-buffered output
    band = (Th + 2) * W
    inter = (band * P * (f32 + bf16)                  # y1 (f32) + y1 (bf16)
             + Th * Wo * 9 * P * bf16                 # im2col patches
             + Th * Wo * P * (f32 + bf16)             # z / y2
             + Th * Wo * Cout * f32 * 2)              # y3 / out
    wts = ((Cin * P + 9 * P * P + P * Cout) * bf16 + (2 * P + Cout) * f32) * 2
    return x_blk + o_blk + inter + wts


def bottleneck_ci_pallas_nhwc(x_nhwc, w1_pt, w2_pt, w3_pt, bn1, bn2, bn3,
                              last_relu=True):
    """NHWC core.  x_nhwc: (N, H, W, Cin); conv weights PyTorch OIHW;
    bn* = (gamma, beta, running_mean, running_var).
    Returns (N, H-2, W-2, Cout) in f32, NHWC."""
    N, H, W, Cin = x_nhwc.shape
    P = w1_pt.shape[0]
    Cout = w3_pt.shape[0]
    assert Cin == Cout, "downsample=None requires inplanes == planes*expansion"
    Ho, Wo = H - 2, W - 2

    # ---- host-side BN folding (inference mode), then cast weights to bf16 ---
    def fold(bn):
        g, b, m, v = bn
        s = g / jnp.sqrt(v + EPS)
        return s, b - m * s

    s1, bb1 = fold(bn1)
    s2, bb2 = fold(bn2)
    s3, bb3 = fold(bn3)

    # Kernel weight layouts (BN scale folded in; conv is linear):
    #   w1: (Cin, P)    for (HW, Cin) @ (Cin, P)
    #   w2: (9P, P)     tap-major im2col weight
    #   w3: (P, Cout)
    w1 = (jnp.transpose(w1_pt[:, :, 0, 0], (1, 0))
          * s1[None, :]).astype(jnp.bfloat16)
    w2 = (jnp.transpose(w2_pt, (2, 3, 1, 0)).reshape(9 * P, P)
          * s2[None, :]).astype(jnp.bfloat16)
    w3 = (jnp.transpose(w3_pt[:, :, 0, 0], (1, 0))
          * s3[None, :]).astype(jnp.bfloat16)
    b1 = bb1.reshape(1, P).astype(jnp.float32)
    b2 = bb2.reshape(1, P).astype(jnp.float32)
    b3 = bb3.reshape(1, Cout).astype(jnp.float32)

    x = x_nhwc.astype(jnp.bfloat16)                   # bf16 activations in HBM

    Th = _pick_band_rows(Ho)
    NB = Ho // Th

    vmem_limit = int(min(100 * 2 ** 20,
                         max(32 * 2 ** 20,
                             2 * _vmem_estimate_bytes(H, W, Cin, P, Cout,
                                                      Th, Wo))))

    flops = int(N * (2 * H * W * Cin * P
                     + 2 * Ho * Wo * 9 * P * P
                     + 2 * Ho * Wo * P * Cout))
    bytes_accessed = int(N * H * W * Cin * 2 + N * Ho * Wo * Cout * 4
                         + (Cin * P + 9 * P * P + P * Cout) * 2)

    kernel = partial(_bottleneck_kernel, band_rows=Th, last_relu=last_relu)

    out = pl.pallas_call(
        kernel,
        out_shape=jax.ShapeDtypeStruct((N, Ho, Wo, Cout), jnp.float32),
        grid=(N, NB),
        in_specs=[
            # Full image per batch element; the block index ignores the band
            # axis so the same block stays resident across all bands of n.
            pl.BlockSpec((1, H, W, Cin), lambda n, r: (n, 0, 0, 0)),
            pl.BlockSpec(w1.shape, lambda n, r: (0, 0)),
            pl.BlockSpec(w2.shape, lambda n, r: (0, 0)),
            pl.BlockSpec(w3.shape, lambda n, r: (0, 0)),
            pl.BlockSpec(b1.shape, lambda n, r: (0, 0)),
            pl.BlockSpec(b2.shape, lambda n, r: (0, 0)),
            pl.BlockSpec(b3.shape, lambda n, r: (0, 0)),
        ],
        out_specs=pl.BlockSpec((1, Th, Wo, Cout), lambda n, r: (n, r, 0, 0)),
        compiler_params=pltpu.CompilerParams(
            dimension_semantics=("parallel", "parallel"),
            vmem_limit_bytes=vmem_limit),
        cost_estimate=pl.CostEstimate(flops=flops, transcendentals=0,
                                      bytes_accessed=bytes_accessed),
    )(x, w1, w2, w3, b1, b2, b3)

    return out


def bottleneck_ci_pallas(x_nchw, w1_pt, w2_pt, w3_pt, bn1, bn2, bn3,
                         last_relu=True):
    """NCHW adapter (PyTorch layout).  For a stack of bottlenecks, prefer the
    NHWC entry point and keep activations channels-minor across the network
    instead of paying a transpose round-trip per block."""
    x = jnp.transpose(x_nchw, (0, 2, 3, 1))           # NCHW -> NHWC
    out = bottleneck_ci_pallas_nhwc(x, w1_pt, w2_pt, w3_pt, bn1, bn2, bn3,
                                    last_relu=last_relu)
    return jnp.transpose(out, (0, 3, 1, 2))           # NHWC -> NCHW


# ---------------------- pure-JAX reference (NCHW, like PyTorch) --------------
def _ref_forward(x, w1_pt, w2_pt, w3_pt, bn1, bn2, bn3, last_relu):
    def conv(x, w, padding):
        return jax.lax.conv_general_dilated(
            x, w, window_strides=(1, 1),
            padding=((padding, padding), (padding, padding)),
            dimension_numbers=("NCHW", "OIHW", "NCHW"))

    def bn(x, g, b, m, v):
        g, b, m, v = (t[None, :, None, None] for t in (g, b, m, v))
        return (x - m) / jnp.sqrt(v + EPS) * g + b

    out = jax.nn.relu(bn(conv(x, w1_pt, 0), *bn1))
    out = jax.nn.relu(bn(conv(out, w2_pt, 1), *bn2))
    out = bn(conv(out, w3_pt, 0), *bn3)
    out = out + x
    if last_relu:
        out = jax.nn.relu(out)
    return out[:, :, 1:-1, 1:-1]


if __name__ == "__main__":
    # Small shapes consistent with the module: inplanes must equal
    # planes * expansion (=4) since downsample is None.
    N, inplanes, planes, H, W = 2, 16, 4, 16, 16
    expansion = 4
    Cout = planes * expansion
    last_relu = True

    key = jax.random.PRNGKey(0)
    ks = jax.random.split(key, 16)

    # PyTorch-shaped conv weights (OIHW), deterministic.
    w1_pt = 0.1 * jax.random.normal(ks[0], (planes, inplanes, 1, 1), jnp.float32)
    w2_pt = 0.1 * jax.random.normal(ks[1], (planes, planes, 3, 3), jnp.float32)
    w3_pt = 0.1 * jax.random.normal(ks[2], (Cout, planes, 1, 1), jnp.float32)

    def bn_params(kg, kb, km, kv, c):
        g = 1.0 + 0.1 * jax.random.normal(kg, (c,), jnp.float32)
        b = 0.1 * jax.random.normal(kb, (c,), jnp.float32)
        m = 0.1 * jax.random.normal(km, (c,), jnp.float32)
        v = 0.5 + jax.random.uniform(kv, (c,), jnp.float32)
        return g, b, m, v

    bn1 = bn_params(ks[3], ks[4], ks[5], ks[6], planes)
    bn2 = bn_params(ks[7], ks[8], ks[9], ks[10], planes)
    bn3 = bn_params(ks[11], ks[12], ks[13], ks[14], Cout)

    x = jax.random.normal(ks[15], (N, inplanes, H, W), jnp.float32)

    out = bottleneck_ci_pallas(x, w1_pt, w2_pt, w3_pt, bn1, bn2, bn3,
                               last_relu=last_relu)
    out = jax.block_until_ready(out)

    ref = _ref_forward(x, w1_pt, w2_pt, w3_pt, bn1, bn2, bn3, last_relu)
    assert out.shape == (N, Cout, H - 2, W - 2), out.shape
    # bf16 MXU inputs + bf16 activations in HBM -> tolerance loosened vs. a
    # pure-f32 kernel; genuine bugs produce O(1) errors, well above this.
    err = float(jnp.max(jnp.abs(out - ref)))
    assert err < 5e-2, f"max abs err {err}"

    print("KERNEL_OK")
</pallas_src>

<mosaic_0001>
module attributes {stable_mosaic.version = 11 : i64} {
  func.func @_bottleneck_kernel(%arg0: i32, %arg1: i32, %arg2: memref<1x16x16x16xbf16, #tpu.memory_space<vmem>>, %arg3: memref<16x4xbf16, #tpu.memory_space<vmem>>, %arg4: memref<36x4xbf16, #tpu.memory_space<vmem>>, %arg5: memref<4x16xbf16, #tpu.memory_space<vmem>>, %arg6: memref<1x4xf32, #tpu.memory_space<vmem>>, %arg7: memref<1x4xf32, #tpu.memory_space<vmem>>, %arg8: memref<1x16xf32, #tpu.memory_space<vmem>>, %arg9: memref<1x7x14x16xf32, #tpu.memory_space<vmem>>) attributes {dimension_semantics = [#tpu.dimension_semantics<parallel>, #tpu.dimension_semantics<parallel>], iteration_bounds = array<i64: 2, 2>, scalar_prefetch = 0 : i64, scratch_operands = 0 : i64, tpu.core_type = #tpu.core_type<tc>, window_params = [{transform_indices = @transform_0, window_bounds = array<i64: 1, 16, 16, 16>}, {pipeline_mode = #tpu.pipeline_mode<synchronous>, transform_indices = @transform_1, window_bounds = array<i64: 16, 4>}, {pipeline_mode = #tpu.pipeline_mode<synchronous>, transform_indices = @transform_2, window_bounds = array<i64: 36, 4>}, {pipeline_mode = #tpu.pipeline_mode<synchronous>, transform_indices = @transform_3, window_bounds = array<i64: 4, 16>}, {pipeline_mode = #tpu.pipeline_mode<synchronous>, transform_indices = @transform_4, window_bounds = array<i64: 1, 4>}, {pipeline_mode = #tpu.pipeline_mode<synchronous>, transform_indices = @transform_5, window_bounds = array<i64: 1, 4>}, {pipeline_mode = #tpu.pipeline_mode<synchronous>, transform_indices = @transform_6, window_bounds = array<i64: 1, 16>}, {transform_indices = @transform_7, window_bounds = array<i64: 1, 7, 14, 16>}]} {
    %c7_i32 = arith.constant 7 : i32
    %0 = arith.muli %arg1, %c7_i32 : i32
    %c0 = arith.constant 0 : index
    %1 = arith.index_cast %0 : i32 to index
    %c0_0 = arith.constant 0 : index
    %c0_1 = arith.constant 0 : index
    %2 = vector.load %arg2[%c0, %1, %c0_0, %c0_1] : memref<1x16x16x16xbf16, #tpu.memory_space<vmem>>, vector<1x9x16x16xbf16>
    %3 = vector.shape_cast %2 : vector<1x9x16x16xbf16> to vector<9x16x16xbf16>
    %4 = vector.shape_cast %3 : vector<9x16x16xbf16> to vector<144x16xbf16>
    %c0_2 = arith.constant 0 : index
    %c0_3 = arith.constant 0 : index
    %5 = vector.load %arg3[%c0_2, %c0_3] : memref<16x4xbf16, #tpu.memory_space<vmem>>, vector<16x4xbf16>
    %cst = arith.constant dense<0.000000e+00> : vector<144x4xf32>
    %6 = tpu.matmul %4, %5, %cst {dimension_numbers = #tpu.dot_dimension_numbers<[1], [0], [0], [1], [0, 0, 1, 1], [], []>} : vector<144x16xbf16>, vector<16x4xbf16>, vector<144x4xf32> -> vector<144x4xf32>
    %c0_4 = arith.constant 0 : index
    %c0_5 = arith.constant 0 : index
    %7 = vector.load %arg6[%c0_4, %c0_5] : memref<1x4xf32, #tpu.memory_space<vmem>>, vector<1x4xf32>
    %8 = vector.broadcast %7 : vector<1x4xf32> to vector<144x4xf32>
    %9 = arith.addf %6, %8 : vector<144x4xf32>
    %cst_6 = arith.constant 0.000000e+00 : f32
    %10 = vector.broadcast %cst_6 : f32 to vector<144x4xf32>
    %11 = arith.maximumf %9, %10 : vector<144x4xf32>
    %12 = arith.truncf %11 : vector<144x4xf32> to vector<144x4xbf16>
    %13 = vector.shape_cast %12 : vector<144x4xbf16> to vector<9x16x4xbf16>
    %14 = vector.extract_strided_slice %13 {offsets = [0, 0, 0], sizes = [7, 14, 4], strides = [1, 1, 1]} : vector<9x16x4xbf16> to vector<7x14x4xbf16>
    %15 = vector.shape_cast %14 : vector<7x14x4xbf16> to vector<98x4xbf16>
    %16 = vector.extract_strided_slice %13 {offsets = [0, 1, 0], sizes = [7, 14, 4], strides = [1, 1, 1]} : vector<9x16x4xbf16> to vector<7x14x4xbf16>
    %17 = vector.shape_cast %16 : vector<7x14x4xbf16> to vector<98x4xbf16>
    %18 = vector.extract_strided_slice %13 {offsets = [0, 2, 0], sizes = [7, 14, 4], strides = [1, 1, 1]} : vector<9x16x4xbf16> to vector<7x14x4xbf16>
    %19 = vector.shape_cast %18 : vector<7x14x4xbf16> to vector<98x4xbf16>
    %20 = vector.extract_strided_slice %13 {offsets = [1, 0, 0], sizes = [7, 14, 4], strides = [1, 1, 1]} : vector<9x16x4xbf16> to vector<7x14x4xbf16>
    %21 = vector.shape_cast %20 : vector<7x14x4xbf16> to vector<98x4xbf16>
    %22 = vector.extract_strided_slice %13 {offsets = [1, 1, 0], sizes = [7, 14, 4], strides = [1, 1, 1]} : vector<9x16x4xbf16> to vector<7x14x4xbf16>
    %23 = vector.shape_cast %22 : vector<7x14x4xbf16> to vector<98x4xbf16>
    %24 = vector.extract_strided_slice %13 {offsets = [1, 2, 0], sizes = [7, 14, 4], strides = [1, 1, 1]} : vector<9x16x4xbf16> to vector<7x14x4xbf16>
    %25 = vector.shape_cast %24 : vector<7x14x4xbf16> to vector<98x4xbf16>
    %26 = vector.extract_strided_slice %13 {offsets = [2, 0, 0], sizes = [7, 14, 4], strides = [1, 1, 1]} : vector<9x16x4xbf16> to vector<7x14x4xbf16>
    %27 = vector.shape_cast %26 : vector<7x14x4xbf16> to vector<98x4xbf16>
    %28 = vector.extract_strided_slice %13 {offsets = [2, 1, 0], sizes = [7, 14, 4], strides = [1, 1, 1]} : vector<9x16x4xbf16> to vector<7x14x4xbf16>
    %29 = vector.shape_cast %28 : vector<7x14x4xbf16> to vector<98x4xbf16>
    %30 = vector.extract_strided_slice %13 {offsets = [2, 2, 0], sizes = [7, 14, 4], strides = [1, 1, 1]} : vector<9x16x4xbf16> to vector<7x14x4xbf16>
    %31 = vector.shape_cast %30 : vector<7x14x4xbf16> to vector<98x4xbf16>
    %32 = tpu.concatenate %15, %17, %19, %21, %23, %25, %27, %29, %31 in 1 : vector<98x4xbf16>, vector<98x4xbf16>, vector<98x4xbf16>, vector<98x4xbf16>, vector<98x4xbf16>, vector<98x4xbf16>, vector<98x4xbf16>, vector<98x4xbf16>, vector<98x4xbf16> -> vector<98x36xbf16>
    %c0_7 = arith.constant 0 : index
    %c0_8 = arith.constant 0 : index
    %33 = vector.load %arg4[%c0_7, %c0_8] : memref<36x4xbf16, #tpu.memory_space<vmem>>, vector<36x4xbf16>
    %cst_9 = arith.constant dense<0.000000e+00> : vector<98x4xf32>
    %34 = tpu.matmul %32, %33, %cst_9 {dimension_numbers = #tpu.dot_dimension_numbers<[1], [0], [0], [1], [0, 0, 1, 1], [], []>} : vector<98x36xbf16>, vector<36x4xbf16>, vector<98x4xf32> -> vector<98x4xf32>
    %c0_10 = arith.constant 0 : index
    %c0_11 = arith.constant 0 : index
    %35 = vector.load %arg7[%c0_10, %c0_11] : memref<1x4xf32, #tpu.memory_space<vmem>>, vector<1x4xf32>
    %36 = vector.broadcast %35 : vector<1x4xf32> to vector<98x4xf32>
    %37 = arith.addf %34, %36 : vector<98x4xf32>
    %cst_12 = arith.constant 0.000000e+00 : f32
    %38 = vector.broadcast %cst_12 : f32 to vector<98x4xf32>
    %39 = arith.maximumf %37, %38 : vector<98x4xf32>
    %40 = arith.truncf %39 : vector<98x4xf32> to vector<98x4xbf16>
    %c0_13 = arith.constant 0 : index
    %c0_14 = arith.constant 0 : index
    %41 = vector.load %arg5[%c0_13, %c0_14] : memref<4x16xbf16, #tpu.memory_space<vmem>>, vector<4x16xbf16>
    %cst_15 = arith.constant dense<0.000000e+00> : vector<98x16xf32>
    %42 = tpu.matmul %40, %41, %cst_15 {dimension_numbers = #tpu.dot_dimension_numbers<[1], [0], [0], [1], [0, 0, 1, 1], [], []>} : vector<98x4xbf16>, vector<4x16xbf16>, vector<98x16xf32> -> vector<98x16xf32>
    %43 = vector.extract_strided_slice %3 {offsets = [1, 1, 0], sizes = [7, 14, 16], strides = [1, 1, 1]} : vector<9x16x16xbf16> to vector<7x14x16xbf16>
    %44 = vector.shape_cast %43 : vector<7x14x16xbf16> to vector<98x16xbf16>
    %45 = arith.extf %44 : vector<98x16xbf16> to vector<98x16xf32>
    %c0_16 = arith.constant 0 : index
    %c0_17 = arith.constant 0 : index
    %46 = vector.load %arg8[%c0_16, %c0_17] : memref<1x16xf32, #tpu.memory_space<vmem>>, vector<1x16xf32>
    %47 = vector.broadcast %46 : vector<1x16xf32> to vector<98x16xf32>
    %48 = arith.addf %45, %47 : vector<98x16xf32>
    %49 = arith.addf %42, %48 : vector<98x16xf32>
    %cst_18 = arith.constant 0.000000e+00 : f32
    %50 = vector.broadcast %cst_18 : f32 to vector<98x16xf32>
    %51 = arith.maximumf %49, %50 : vector<98x16xf32>
    %52 = vector.shape_cast %51 : vector<98x16xf32> to vector<7x14x16xf32>
    %c0_19 = arith.constant 0 : index
    %c0_20 = arith.constant 0 : index
    %c0_21 = arith.constant 0 : index
    %c0_22 = arith.constant 0 : index
    %53 = vector.load %arg9[%c0_19, %c0_20, %c0_21, %c0_22] : memref<1x7x14x16xf32, #tpu.memory_space<vmem>>, vector<1x7x14x16xf32>
    %54 = vector.shape_cast %53 : vector<1x7x14x16xf32> to vector<7x14x16xf32>
    %55 = vector.shape_cast %52 : vector<7x14x16xf32> to vector<1x7x14x16xf32>
    tpu.vector_store %arg9[%c0_19, %c0_20, %c0_21, %c0_22], %55 {strides = array<i32>} : memref<1x7x14x16xf32, #tpu.memory_space<vmem>>, vector<1x7x14x16xf32>,
    return
  }
  func.func @transform_0(%arg0: i32, %arg1: i32) -> (i32, i32, i32, i32) {
    %c0_i32 = arith.constant 0 : i32
    %c0_i32_0 = arith.constant 0 : i32
    %c0_i32_1 = arith.constant 0 : i32
    %c0_i32_2 = arith.constant 0 : i32
    return %arg0, %c0_i32, %c0_i32_0, %c0_i32_1 : i32, i32, i32, i32
  }
  func.func @transform_1(%arg0: i32, %arg1: i32) -> (i32, i32) {
    %c0_i32 = arith.constant 0 : i32
    %c0_i32_0 = arith.constant 0 : i32
    %c0_i32_1 = arith.constant 0 : i32
    return %c0_i32, %c0_i32_0 : i32, i32
  }
  func.func @transform_2(%arg0: i32, %arg1: i32) -> (i32, i32) {
    %c0_i32 = arith.constant 0 : i32
    %c0_i32_0 = arith.constant 0 : i32
    %c0_i32_1 = arith.constant 0 : i32
    return %c0_i32, %c0_i32_0 : i32, i32
  }
  func.func @transform_3(%arg0: i32, %arg1: i32) -> (i32, i32) {
    %c0_i32 = arith.constant 0 : i32
    %c0_i32_0 = arith.constant 0 : i32
    %c0_i32_1 = arith.constant 0 : i32
    return %c0_i32, %c0_i32_0 : i32, i32
  }
  func.func @transform_4(%arg0: i32, %arg1: i32) -> (i32, i32) {
    %c0_i32 = arith.constant 0 : i32
    %c0_i32_0 = arith.constant 0 : i32
    %c0_i32_1 = arith.constant 0 : i32
    return %c0_i32, %c0_i32_0 : i32, i32
  }
  func.func @transform_5(%arg0: i32, %arg1: i32) -> (i32, i32) {
    %c0_i32 = arith.constant 0 : i32
    %c0_i32_0 = arith.constant 0 : i32
    %c0_i32_1 = arith.constant 0 : i32
    return %c0_i32, %c0_i32_0 : i32, i32
  }
  func.func @transform_6(%arg0: i32, %arg1: i32) -> (i32, i32) {
    %c0_i32 = arith.constant 0 : i32
    %c0_i32_0 = arith.constant 0 : i32
    %c0_i32_1 = arith.constant 0 : i32
    return %c0_i32, %c0_i32_0 : i32, i32
  }
  func.func @transform_7(%arg0: i32, %arg1: i32) -> (i32, i32, i32, i32) {
    %c0_i32 = arith.constant 0 : i32
    %c0_i32_0 = arith.constant 0 : i32
    %c0_i32_1 = arith.constant 0 : i32
    return %arg0, %arg1, %c0_i32, %c0_i32_0 : i32, i32, i32, i32
  }
}

</mosaic_0001>

<bundles_post_ra>
// kernel: tpu_custom_call.1
= control target key start
LH: loop header
LB: loop body
LE: loop exit
PB: predicated region body
PF: predicated region fallthrough
CT: control target
= control target key end

     0   :  { %12 = vsyncpa [#allocation3], 0  ;;  %s8492_s0 = inlined_call_operand.hbm [shape: bf16[2,16,16,16], index: 0, kind: input, shape index: {}]   ;;  %s8493_s1 = inlined_call_operand.vmem [shape: bf16[16,4], index: 1, kind: input, shape index: {}]   ;;  %s8494_s2 = inlined_call_operand.vmem [shape: bf16[36,4], index: 2, kind: input, shape index: {}]   ;;  %s8495_s3 = inlined_call_operand.vmem [shape: bf16[4,16], index: 3, kind: input, shape index: {}]   ;;  %s8496_s4 = inlined_call_operand.vmem [shape: f32[1,4], index: 4, kind: input, shape index: {}]   ;;  %s8497_s5 = inlined_call_operand.vmem [shape: f32[1,4], index: 5, kind: input, shape index: {}]   ;;  %s8498_s6 = inlined_call_operand.vmem [shape: f32[1,16], index: 6, kind: input, shape index: {}]   ;;  %s8499_s7 = inlined_call_operand.vmem [shape: f32[2,14,14,16], index: 7, kind: output, shape index: {}]  }
   0x1   :  { %14 = vsyncpa [#allocation3 + $0x1], 0  ;;  %s6446_s24 = smov 0   ;;  %s6448_s25 = smov 0  }
   0x2   :  { %s6450_s26 = smov 0   ;;  %s6452_s27 = smov 0  }
   0x3   :  { %s6454_s28 = smov 0   ;;  %s6456_s29 = smov 0  }
   0x4   :  { %s6458_s30 = smov 0   ;;  %s6460_s8 = smov 0  }
   0x5 LB: > { %s5836_s9 = sadd.s32 4294967295, %s6389_s8   ;;  %s29_s10 = sadd.s32 1, %s6381_s29  ;;  %s6389_s8 = sphi %s6460_s8, %s20_s8   ;;  %s6385_s30 = sphi %s6458_s30, %s8530_s30   ;;  %s6381_s29 = sphi %s6456_s29, %s8529_s29   ;;  %s6377_s28 = sphi %s6454_s28, %s8528_s28   ;;  %s6373_s27 = sphi %s6452_s27, %s8527_s27   ;;  %s6369_s26 = sphi %s6450_s26, %s8526_s26   ;;  %s6365_s25 = sphi %s6448_s25, %s8525_s25   ;;  %s6361_s24 = sphi %s6446_s24, %s8524_s24  }
   0x6   : > { %p30_p0 = scmp.ge.s32.totalorder %s29_s10, 2  ;;  %s32_s11 = sadd.s32 1, %s6385_s30 }
   0x7   : > { %s39_s12 = sadd.s32 1, %s6369_s26  ;;  %p46_p1 = scmp.ne.s32.totalorder %s6369_s26, %s6365_s25 }
   0x8   : > { %s8532_s10 = smov (%p30_p0, %s29_s10), 0  ;;  %s8534_s11 = smov (!%p30_p0, %s32_s11), %s6385_s30 }
   0x9   : > { %p47_p2 = scmp.eq.s32.totalorder %s6389_s8, 0  ;;  %p52_p3 = scmp.ne.s32.totalorder %s6365_s25, %s6361_s24 }
   0xa   : > { %p34_p4 = scmp.ge.s32.totalorder %s8534_s11, 2  ;;  %p53_p5 = scmp.eq.s32.totalorder %s5836_s9, 0 }
   0xb   : > { %p6495_p6 = por %p47_p2, %p46_p1  ;;  %p6172_p8 = scmp.lt.s32.totalorder %s6389_s8, 4 }
   0xc   : > { %s8536_s11 = smov (%p34_p4, %s8534_s11), 0  ;;  %p6501_p7 = por %p53_p5, %p52_p3 }
   0xd   : > { %s36_s15 = ssub.s32 %s6385_s30, %s8536_s11  ;;  %s248_s16 = sand.u32 1, %s6369_s26  }
   0xe   : > { %p37_p9 = scmp.eq.s32.totalorder %s36_s15, 0  ;;  %s5840_s17 = sshll.u32 %s248_s16, 7 }
   0xf   : > { %s6027_s18 = sshll.u32 %s6385_s30, 11  ;;  %s252_s23 = scalar_lea.vmem [#allocation2], %s5840_s17 }
  0x10   : > { %s6511_s19 = scalar_select %p37_p9, %s6369_s26, %s39_s12  }
  0x11   : > { %s6516_s22 = scalar_lea.hbm %s8492_s0, %s6027_s18  ;;  %s259_s24 = sshll.u32 %s252_s23, 4  ;;  %s6524_s24 = int_to_ptr.vmem [resolvable:$true] %s259_s24 }
  0x12   : > { %p6520_p10 = pnand %p6172_p8, %p6495_p6  ;;  %s6526_s12 = scalar_lea.sflag [#allocation3], %s248_s16 }
  0x13   : > { %s6293_s15 = scalar_lea.hbm %s6516_s22, 2048  ;;  %s6298_s18 = scalar_lea.hbm %s8492_s0, 4096 }
  0x14   : > { %p6294_p11 = scmp.ne.s32.totalorder %s6516_s22, %s6293_s15  ;;  %p6295_p12 = pneg %p6520_p10 }
  0x15   : > { %p6299_p1 = scmp.lt.u32.totalorder %s6516_s22, %s8492_s0  ;;  %p6300_p2 = scmp.lt.u32.totalorder %s6298_s18, %s6293_s15 }
  0x16   : > { %p6296_p13 = pnand %p6295_p12, %p6294_p11  ;;  %p6302_p4 = scmp.lt.u32.totalorder %s6293_s15, %s6516_s22 }
  0x17   : > { %p6301_p3 = por %p6300_p2, %p6299_p1 }
  0x18   : > { %p6297_p0 = pneg %p6296_p13 }
  0x19   : > { %p6303_p5 = por %p6302_p4, %p6301_p3 }
  0x1b   : > { %p6304_p6 = pnand %p6303_p5, %p6297_p0 }
  0x1d   : > { %6307 = shalt.err (!%p6304_p6)
}
  0x1e   : > { %s6308_s16 = scalar_lea.vmem %s6524_s24, 2048  ;;  %s6391_s23 = smov [#allocation2]  }
  0x1f   : > { %p6309_p8 = scmp.ne.s32.totalorder %s6524_s24, %s6308_s16  ;;  %s6313_s17 = sshll.u32 %s6391_s23, 4  ;;  %s6314_s17 = int_to_ptr.vmem [resolvable:$false] %s6313_s17 }
  0x20   : > { %s6315_s13 = scalar_lea.vmem %s6314_s17, 4096  ;;  %p6316_p13 = scmp.lt.s32.totalorder %s6524_s24, %s6314_s17 }
  0x21   : > { %p6311_p9 = pnand %p6309_p8, %p6295_p12  ;;  %p6317_p1 = scmp.lt.s32.totalorder %s6315_s13, %s6308_s16 }
  0x23   : > { %p6312_p11 = pneg %p6311_p9  ;;  %p6318_p2 = por %p6317_p1, %p6316_p13 }
  0x25   : > { %p6319_p3 = pnand %p6318_p2, %p6312_p11 }
  0x27   : > { %6322 = shalt.err (!%p6319_p3)
}
  0x28   : > { %s6392_s15 = smov 64   ;;  %s6393_s18 = smov 4  }
  0x29   : > { %6171 = dma.hbm_to_vmem [thread:$0]  (!%p6520_p10), %s6516_s22, 2048, %s6524_s24, %s6526_s12, %s6392_s15, %s6392_s15, %s6393_s18  }
  0x2a   : > { %p5843_p12 = scmp.ge.s32.totalorder %s6389_s8, 1  ;;  %p267_p0 = scmp.lt.s32.totalorder %s6389_s8, 5 }
  0x2c   : > { %p268_p4 = pnand %p5843_p12, %p267_p0 }
  0x2e   : > { %271 = sbr.rel (%p268_p4) target bundleno = 1067 (0x42b), region = 48 }
  0x35   : > { %s273_s20 = sand.u32 1, %s6365_s25  }
  0x36   : > { %s5844_s21 = sshll.u32 %s273_s20, 7  ;;  %s274_s16 = scalar_lea.sflag [#allocation3], %s273_s20 }
  0x37   : > { %s277_s23 = scalar_lea.vmem [#allocation2], %s5844_s21 }
  0x38   : > { %6356 = dma.done.wait (%p6501_p7), %s274_s16, 2048  }
  0x39   : > { %6358 = vsyncadd (%p6501_p7), %s274_s16, 4294965248  ;;  %v8500_v0 = vmov 0.0   ;;  %vm6395_vm0 = vmmov 0   ;;  %s6028_s22 = smul.u32 56, %s6373_s27  ;;  %v6251_v1 = vld [vmem:[%s8493_s1] sm:$0xff]   ;;  %vm407_vm1 = vcmask 130048   ;;  %v578_v27 = vlaneseq }
  0x3a   : > { %6057 = vmatprep.subr.bf16.mxu0 %v8500_v0  ;;  %6059 = vmatprep.mubr.msk.bf16.mxu0 %vm6395_vm0, %v8500_v0  ;;  %vm917_vm2 = vsmask.f32 256  ;;  %vm918_vm3 = vsmask.f32 1284  ;;  %v6396_v25 = vmov 1966171168  }
  0x3b   : > { %6159 = vmatprep.subr.bf16.mxu1 %v8500_v0  ;;  %6113 = vmatprep.mubr.msk.bf16.mxu1 %vm6395_vm0, %v8500_v0  ;;  %s6568_s24 = scalar_lea.vmem %s277_s23, %s6028_s22 [#allocation2]  ;;  %v576_v26 = vunpack.c.l.s4 %v6396_v25  ;;  %vm919_vm4 = vmor %vm917_vm2, %vm918_vm3  ;;  %vm920_vm5 = vsmask.f32 2312  ;;  %v6620_v28 = vld [vmem:[%s8496_s4] ss:$0 sm:$0xff]  ;;  %vm922_vm7 = vsmask.f32 3340 }
  0x3c   : > { %v6252_v2 = vld [vmem:[%s6568_s24] sm:$0xff]   ;;  %6058 = vmatpush3.bf16.msra.mxu0 %v6251_v1  ;;  %v331_v3 = vld [vmem:[%s6568_s24 + $0x8] sm:$0xf]  ;;  %v332_v4 = vld [vmem:[%s6568_s24 + $0xc] sm:$0xf]  ;;  %v6622_v31 = vshrl.u32 %v578_v27, 7 }
  0x3d   : > { %6095 = vmatprep.subr.bf16.mxu0 %v8500_v0  ;;  %v5851_v5 = vcombine.low %v331_v3, %v332_v4  ;;  %v333_v6 = vld [vmem:[%s6568_s24 + $0x10] sm:$0xf]  ;;  %v334_v7 = vld [vmem:[%s6568_s24 + $0x14] sm:$0xf]  ;;  %v335_v9 = vld [vmem:[%s6568_s24 + $0x18] sm:$0xf]  ;;  %v577_v30 = vunpack.c.0.s8 %v576_v26 }
  0x3e   : > { %v5852_v8 = vcombine.low %v333_v6, %v334_v7  ;;  %v336_v10 = vld [vmem:[%s6568_s24 + $0x1c] sm:$0xf]  ;;  %v337_v12 = vld [vmem:[%s6568_s24 + $0x20] sm:$0xf]  ;;  %v338_v13 = vld [vmem:[%s6568_s24 + $0x24] sm:$0xf] }
  0x3f   : > { %6060 = vmatmul.mubr.msk.bf16.vlgmr.msra.gmra.mrb[0].mxu0 %vm407_vm1, %v6252_v2  ;;  %v5853_v11 = vcombine.low %v335_v9, %v336_v10  ;;  %v5854_v14 = vcombine.low %v337_v12, %v338_v13  ;;  %v339_v15 = vld [vmem:[%s6568_s24 + $0x28] sm:$0xf]  ;;  %v340_v16 = vld [vmem:[%s6568_s24 + $0x2c] sm:$0xf]  ;;  %v341_v18 = vld [vmem:[%s6568_s24 + $0x30] sm:$0xf]  ;;  %v6627_v37 = vsub.s32 %v577_v30, %v6622_v31 }
  0x40   : > { %6063 = vmatprep.mubr.msk.bf16.mxu0 %vm6395_vm0, %v8500_v0  ;;  %v5855_v17 = vcombine.low %v339_v15, %v340_v16  ;;  %v342_v19 = vld [vmem:[%s6568_s24 + $0x34] sm:$0xf]  ;;  %v343_v21 = vld [vmem:[%s6568_s24 + $0x38] sm:$0xf]  ;;  %v344_v22 = vld [vmem:[%s6568_s24 + $0x3c] sm:$0xf] }
  0x41   : > { %v5856_v20 = vcombine.low %v341_v18, %v342_v19  ;;  %v5857_v23 = vcombine.low %v343_v21, %v344_v22  ;;  %v6260_v24 = vld [vmem:[%s6568_s24 + $0x40] sm:$0xff]   ;;  %vm921_vm6 = vmor %vm919_vm4, %vm920_vm5  ;;  %8510 = vst [vmem:[#allocation5_spill] sm:$0xff] %v6622_v31  ;;  %vm924_vm9 = vsmask.f32 4368  ;;  %vm926_vm11 = vsmask.f32 5396 }
  0x42   : > { %vm923_vm8 = vmor %vm921_vm6, %vm922_vm7  ;;  %vm928_vm13 = vsmask.f32 6424  ;;  %vm930_vm15 = vsmask.f32 7452  ;;  %s6397_s13 = smov 8   ;;  %s6398_s15 = smov 4  }
  0x43   : > { %vm925_vm10 = vmor %vm923_vm8, %vm924_vm9  ;;  %s6399_s18 = smov 12   ;;  %s6400_s20 = smov 20   ;;  %vm3829_vm3 = vcmask 1041408   ;;  %vm3661_vm4 = vcmask 31744   ;;  %vm3683_vm5 = vcmask 64512   ;;  %vm3698_vm6 = vcmask 97280  }
  0x44   : > { %vm927_vm12 = vmor %vm925_vm10, %vm926_vm11  ;;  %s6401_s21 = smov 16   ;;  %s6402_s16 = smov 24   ;;  %vm3727_vm7 = vcmask 162816   ;;  %vm3742_vm8 = vcmask 195584   ;;  %vm3757_vm9 = vcmask 228352   ;;  %vm3772_vm10 = vcmask 261120  }
  0x45   : > { %vm929_vm14 = vmor %vm927_vm12, %vm928_vm13  ;;  %s6403_s23 = smov 32   ;;  %s6404_s22 = smov 28   ;;  %vm3814_vm11 = vcmask 293888  }
  0x46   : > { %vm6661_vm2 = vmor %vm929_vm14, %vm930_vm15  ;;  %p314_p7 = scmp.lt.s32.totalorder %s6377_s28, 1 }
  0x47   : > { %6064 = vmatmul.mubr.msk.bf16.gmra.mrb[4].mxu0 %vm407_vm1, %v5851_v5 }
  0x48   : > { %6067 = vmatprep.mubr.msk.bf16.mxu0 %vm6395_vm0, %v8500_v0  ;;  %s8538_s28 = smov (!%p314_p7, %s6377_s28), 1 }
  0x4f   : > { %6068 = vmatmul.mubr.msk.bf16.gmra.mrb[8].mxu0 %vm407_vm1, %v5852_v8 }
  0x50   : > { %6071 = vmatprep.mubr.msk.bf16.mxu0 %vm6395_vm0, %v8500_v0 }
  0x57   : > { %6072 = vmatmul.mubr.msk.bf16.gmra.mrb[12].mxu0 %vm407_vm1, %v5853_v11 }
  0x58   : > { %6075 = vmatprep.mubr.msk.bf16.mxu0 %vm6395_vm0, %v8500_v0 }
  0x5f   : > { %6076 = vmatmul.mubr.msk.bf16.gmra.mrb[16].mxu0 %vm407_vm1, %v5854_v14 }
  0x60   : > { %6079 = vmatprep.mubr.msk.bf16.mxu0 %vm6395_vm0, %v8500_v0 }
  0x67   : > { %6080 = vmatmul.mubr.msk.bf16.gmra.mrb[20].mxu0 %vm407_vm1, %v5855_v17 }
  0x68   : > { %6083 = vmatprep.mubr.msk.bf16.mxu0 %vm6395_vm0, %v8500_v0 }
  0x6f   : > { %6084 = vmatmul.mubr.msk.bf16.gmra.mrb[24].mxu0 %vm407_vm1, %v5856_v20 }
  0x70   : > { %6087 = vmatprep.mubr.msk.bf16.mxu0 %vm6395_vm0, %v8500_v0 }
  0x77   : > { %6088 = vmatmul.mubr.msk.bf16.gmra.mrb[28].mxu0 %vm407_vm1, %v5857_v23 }
  0x78   : > { %6091 = vmatprep.mubr.msk.bf16.mxu0 %vm6395_vm0, %v8500_v0 }
  0x7f   : > { %6092 = vmatmul.mubr.msk.bf16.gmra.mrb[32].mxu0 %vm407_vm1, %v6260_v24 }
  0x80   : > { %6101 = vmatprep.mubr.msk.bf16.mxu0 %vm6395_vm0, %v8500_v0 }
 0x112   : > { %v469_v29 = vpop.f32.mrb[0].mxu0 }
 0x113   : > { %v470_v32 = vadd.f32 %v6620_v28, %v469_v29  ;;  %v6061_v33 = vpop.f32.mrb[1].mxu0 }
 0x114   : > { %v472_v34 = vpop.f32.mrb[2].mxu0 }
 0x115   : > { %v473_v35 = vadd.f32 %v6620_v28, %v472_v34  ;;  %v6062_v36 = vpop.f32.mrb[3].mxu0  ;;  %v540_v38 = vmax.f32 %v470_v32, 0.0 }
 0x117   : > { %v541_v39 = vmax.f32 %v473_v35, 0.0 }
 0x119   : > { %v558_v40 = vpack.c.bf16 %v541_v39, %v540_v38  ;;  %v5869_v41 = vpack.c.bf16 %v541_v39, %v541_v39 }
 0x11a   : > { %v477_v42 = vpop.f32.mrb[4].mxu0 }
 0x11b   : > { %v581_v43 = vrot.slane %v558_v40, %v6627_v37  ;;  %v588_v44 = vrot.slane %v5869_v41, %v6627_v37  ;;  %v478_v45 = vadd.f32 %v6620_v28, %v477_v42  ;;  %v6065_v46 = vpop.f32.mrb[5].mxu0 }
 0x11c   : > { %v480_v47 = vpop.f32.mrb[6].mxu0 }
 0x11d   : > { %v589_v48 = vcombine.high %v581_v43, %v581_v43  ;;  %v590_v49 = vcombine.high %v588_v44, %v588_v44  ;;  %v6633_v50 = vrot.slane %v581_v43, %v6627_v37  ;;  %v6636_v51 = vrot.slane %v588_v44, %v6627_v37  ;;  %v6066_v52 = vpop.f32.mrb[7].mxu0 }
 0x11e   : > { %v542_v53 = vmax.f32 %v478_v45, 0.0  ;;  %v481_v54 = vadd.f32 %v6620_v28, %v480_v47 }
 0x11f   : > { %v6640_v55 = vrot.slane %v589_v48, %v6627_v37  ;;  %v6643_v56 = vrot.slane %v590_v49, %v6627_v37  ;;  %v933_v57 = vshrl.u32 %v6633_v50, 16  ;;  %v619_v58 = vcombine.high %v6633_v50, %v6633_v50 }
 0x120   : > { %v543_v59 = vmax.f32 %v481_v54, 0.0  ;;  %v6650_v60 = vcombine.high %v6636_v51, %v6636_v51  ;;  %v962_v61 = vshll.u32 %v6636_v51, 16  ;;  %v965_v62 = vshrl.u32 %v6636_v51, 16 }
 0x121   : > { %v621_v63 = vcombine.high %v6640_v55, %v6640_v55  ;;  %v6658_v1 = vcombine.high %v6643_v56, %v6643_v56  ;;  %v2175_v2 = vcombine.low %v6640_v55, %v619_v58  ;;  %v938_v4 = vshll.u32 %v6640_v55, 16 }
 0x122   : > { %v559_v5 = vpack.c.bf16 %v543_v59, %v542_v53  ;;  %v5870_v6 = vpack.c.bf16 %v543_v59, %v543_v59  ;;  %v485_v7 = vpop.f32.mrb[8].mxu0  ;;  %v2177_v8 = vcombine.low %v6643_v56, %v6650_v60  ;;  %v941_v9 = vshrl.u32 %v6640_v55, 16 }
 0x123   : > { %v486_v10 = vadd.f32 %v6620_v28, %v485_v7  ;;  %v6069_v11 = vpop.f32.mrb[9].mxu0  ;;  %v986_v12 = vshll.u32 %v6658_v1, 16  ;;  %v2176_v13 = vcombine.low %v621_v63, %v6636_v51  ;;  %v2185_v14 = vrot.slane %v2175_v2, %v6627_v37 }
 0x124   : > { %v629_v15 = vrot.slane %v559_v5, %v6627_v37  ;;  %v636_v16 = vrot.slane %v5870_v6, %v6627_v37  ;;  %v488_v17 = vpop.f32.mrb[10].mxu0  ;;  %v2199_v18 = vrot.slane %v2177_v8, %v6627_v37  ;;  %v6678_v19 = vsel %vm6661_vm2, %v933_v57, %v938_v4 }
 0x125   : > { %v544_v20 = vmax.f32 %v486_v10, 0.0  ;;  %v489_v21 = vadd.f32 %v6620_v28, %v488_v17  ;;  %v6070_v22 = vpop.f32.mrb[11].mxu0  ;;  %v2192_v23 = vrot.slane %v2176_v13, %v6627_v37  ;;  %v946_v24 = vshll.u32 %v619_v58, 16 }
 0x126   : > { %v637_v25 = vcombine.high %v629_v15, %v629_v15  ;;  %v638_v26 = vcombine.high %v636_v16, %v636_v16  ;;  %v6683_v27 = vrot.slane %v629_v15, %v6627_v37  ;;  %v6686_v29 = vrot.slane %v636_v16, %v6627_v37 }
 0x127   : > { %v545_v30 = vmax.f32 %v489_v21, 0.0  ;;  %v2207_v32 = vcombine.low %v2185_v14, %v2192_v23  ;;  %v948_v33 = vsel %vm6661_vm2, %v941_v9, %v946_v24  ;;  %v949_v34 = vshrl.u32 %v619_v58, 16 }
 0x128   : > { %v6691_v35 = vrot.slane %v637_v25, %v6627_v37  ;;  %v6694_v36 = vrot.slane %v638_v26, %v6627_v37  ;;  %v954_v38 = vshll.u32 %v621_v63, 16  ;;  %v957_v39 = vshrl.u32 %v621_v63, 16 }
 0x129   : > { %v560_v40 = vpack.c.bf16 %v545_v30, %v544_v20  ;;  %v5871_v41 = vpack.c.bf16 %v545_v30, %v545_v30  ;;  %v2215_v42 = vrot.slane %v2207_v32, %v6627_v37  ;;  %v970_v43 = vshll.u32 %v6643_v56, 16 }
 0x12a   : > { %v493_v44 = vpop.f32.mrb[12].mxu0  ;;  %v2178_v45 = vcombine.low %v6658_v1, %v6691_v35  ;;  %v956_v46 = vsel %vm6661_vm2, %v949_v34, %v954_v38  ;;  %v964_v47 = vsel %vm6661_vm2, %v957_v39, %v962_v61  ;;  %v973_v48 = vshrl.u32 %v6643_v56, 16 }
 0x12b   : > { %v677_v49 = vrot.slane %v560_v40, %v6627_v37  ;;  %v684_v52 = vrot.slane %v5871_v41, %v6627_v37  ;;  %v494_v53 = vadd.f32 %v6620_v28, %v493_v44  ;;  %v6073_v54 = vpop.f32.mrb[13].mxu0  ;;  %v972_v57 = vsel %vm6661_vm2, %v965_v62, %v970_v43 }
 0x12c   : > { %v496_v58 = vpop.f32.mrb[14].mxu0  ;;  %v2206_v59 = vrot.slane %v2178_v45, %v6627_v37  ;;  %v978_v63 = vshll.u32 %v6650_v60, 16  ;;  %v981_v1 = vshrl.u32 %v6650_v60, 16  ;;  %v990_v61 = vshrl.u32 %v6683_v27, 16 }
 0x12d   : > { %v685_v2 = vcombine.high %v677_v49, %v677_v49  ;;  %v686_v4 = vcombine.high %v684_v52, %v684_v52  ;;  %v6715_v5 = vrot.slane %v677_v49, %v6627_v37  ;;  %v6718_v6 = vrot.slane %v684_v52, %v6627_v37  ;;  %v6074_v7 = vpop.f32.mrb[15].mxu0 }
 0x12e   : > { %v546_v8 = vmax.f32 %v494_v53, 0.0  ;;  %v497_v62 = vadd.f32 %v6620_v28, %v496_v58  ;;  %v2208_v9 = vcombine.low %v2199_v18, %v2206_v59  ;;  %v980_v10 = vsel %vm6661_vm2, %v973_v48, %v978_v63 }
 0x12f   : > { %v6724_v11 = vrot.slane %v685_v2, %v6627_v37  ;;  %v6727_v13 = vrot.slane %v686_v4, %v6627_v37  ;;  %v988_v14 = vsel %vm6661_vm2, %v981_v1, %v986_v12  ;;  %v995_v15 = vshll.u32 %v6691_v35, 16 }
 0x130   : > { %v547_v16 = vmax.f32 %v497_v62, 0.0  ;;  %v2222_v17 = vrot.slane %v2208_v9, %v6627_v37  ;;  %v1853_v20 = vcombine.low %v6678_v19, %v948_v33  ;;  %v1854_v18 = vcombine.low %v956_v46, %v964_v47 }
 0x131   : > { %v6736_v21 = vsel %vm6661_vm2, %v990_v61, %v995_v15  ;;  %v1855_v22 = vcombine.low %v972_v57, %v980_v10  ;;  %v6740_v23 = vcombine.high %v6686_v29, %v6686_v29  ;;  %v5945_v12 = vcombine.high %v6683_v27, %v6691_v35 }
 0x132   : > { %v561_v24 = vpack.c.bf16 %v547_v16, %v546_v8  ;;  %v5872_v25 = vpack.c.bf16 %v547_v16, %v547_v16  ;;  %v501_v26 = vpop.f32.mrb[16].mxu0  ;;  %v2223_v30 = vcombine.low %v2215_v42, %v2222_v17  ;;  %v1856_v32 = vcombine.low %v988_v14, %v6736_v21 }
 0x133   : > { %v502_v19 = vadd.f32 %v6620_v28, %v501_v26  ;;  %v6077_v33 = vpop.f32.mrb[17].mxu0  ;;  %v1863_v34 = vrot.slane %v1853_v20, %v6627_v37  ;;  %v1870_v38 = vrot.slane %v1854_v18, %v6627_v37  ;;  %v1877_v39 = vrot.slane %v1855_v22, %v6627_v37 }
 0x134   : > { %v725_v40 = vrot.slane %v561_v24, %v6627_v37  ;;  %v732_v41 = vrot.slane %v5872_v25, %v6627_v37  ;;  %2483 = vrot.lane.b32.xlu0 %v2223_v30, %s6397_s13  ;;  %v504_v43 = vpop.f32.mrb[18].mxu0  ;;  %v1884_v42 = vrot.slane %v1856_v32, %v6627_v37  ;;  %v2225_v44 = vcombine.low %v6686_v29, %v6694_v36 }
 0x135   : > { %v548_v45 = vmax.f32 %v502_v19, 0.0  ;;  %v505_v46 = vadd.f32 %v6620_v28, %v504_v43  ;;  %v1885_v47 = vcombine.low %v1863_v34, %v1870_v38  ;;  %v6757_v48 = vrot.slane %v5945_v12, %v6627_v37  ;;  %v6078_v49 = vpop.f32.mrb[19].mxu0 }
 0x136   : > { %v733_v52 = vcombine.high %v725_v40, %v725_v40  ;;  %v734_v53 = vcombine.high %v732_v41, %v732_v41  ;;  %v6760_v54 = vrot.slane %v725_v40, %v6627_v37  ;;  %v6763_v57 = vrot.slane %v732_v41, %v6627_v37 }
 0x137   : > { %v549_v58 = vmax.f32 %v505_v46, 0.0  ;;  %v1886_v59 = vcombine.low %v1877_v39, %v1884_v42  ;;  %v1893_v63 = vrot.slane %v1885_v47, %v6627_v37  ;;  %v2241_v1 = vrot.slane %v2225_v44, %v6627_v37 }
 0x138   : > { %v6768_v61 = vrot.slane %v733_v52, %v6627_v37  ;;  %v6771_v2 = vrot.slane %v734_v53, %v6627_v37  ;;  %v2497_v4 = vcombine.low %v6683_v27, %v6691_v35  ;;  %v2498_v7 = vcombine.low %v6740_v23, %v6715_v5 }
 0x139   : > { %v562_v8 = vpack.c.bf16 %v549_v58, %v548_v45  ;;  %v5873_v62 = vpack.c.bf16 %v549_v58, %v549_v58  ;;  %v1900_v9 = vrot.slane %v1886_v59, %v6627_v37  ;;  %v6780_v10 = vcombine.high %v6683_v27, %v6683_v27 }
 0x13a   : > { %v2505_v14 = vrot.slane %v2497_v4, %v6627_v37  ;;  %v2512_v15 = vrot.slane %v2498_v7, %v6627_v37  ;;  %v509_v16 = vpop.f32.mrb[20].mxu0  ;;  %v6786_v17 = vcombine.high %v6691_v35, %v6691_v35  ;;  %v6790_v20 = vcombine.high %v6694_v36, %v6694_v36 }
 0x13b   : > { %v773_v18 = vrot.slane %v562_v8, %v6627_v37  ;;  %v780_v22 = vrot.slane %v5873_v62, %v6627_v37  ;;  %v1901_v12 = vcombine.low %v1893_v63, %v1900_v9  ;;  %v510_v24 = vadd.f32 %v6620_v28, %v509_v16  ;;  %v6081_v25 = vpop.f32.mrb[21].mxu0 }
 0x13c   : > { %v2513_v26 = vcombine.low %v2505_v14, %v6757_v48  ;;  %v2514_v30 = vcombine.low %v2241_v1, %v2512_v15  ;;  %v1043_v32 = vshll.u32 %v6790_v20, 16  ;;  %v1594_v19 = vcombine.low %v6691_v35, %v6780_v10  ;;  %v512_v33 = vpop.f32.mrb[22].mxu0 }
 0x13d   : > { %v781_v34 = vcombine.high %v773_v18, %v773_v18  ;;  %v782_v38 = vcombine.high %v780_v22, %v780_v22  ;;  %v6800_v39 = vrot.slane %v773_v18, %v6627_v37  ;;  %v6803_v40 = vrot.slane %v780_v22, %v6627_v37  ;;  %2161 = vrot.lane.b32.xlu0 %v1901_v12, %s6398_s15  ;;  %v6082_v41 = vpop.f32.mrb[23].mxu0 }
 0x13e   : > { %v2521_v43 = vrot.slane %v2513_v26, %v6627_v37  ;;  %v2528_v42 = vrot.slane %v2514_v30, %v6627_v37  ;;  %v550_v44 = vmax.f32 %v510_v24, 0.0  ;;  %v1595_v45 = vcombine.low %v6786_v17, %v6686_v29 }
 0x13f   : > { %v6811_v46 = vrot.slane %v781_v34, %v6627_v37  ;;  %v6814_v47 = vrot.slane %v782_v38, %v6627_v37  ;;  %v1596_v49 = vcombine.low %v6694_v36, %v6740_v23  ;;  %v1604_v52 = vrot.slane %v1594_v19, %v6627_v37 }
 0x140   : > { %v2529_v53 = vcombine.low %v2521_v43, %v2528_v42  ;;  %v1611_v58 = vrot.slane %v1595_v45, %v6627_v37  ;;  %v3021_v59 = vcombine.low %v6790_v20, %v6724_v11  ;;  %v513_v63 = vadd.f32 %v6620_v28, %v512_v33 }
 0x141   : > { %v6824_v4 = vrot.slane %v1596_v49, %v6627_v37  ;;  %v6828_v7 = vcombine.high %v6715_v5, %v6715_v5  ;;  %v5946_v8 = vcombine.high %v6686_v29, %v6694_v36  ;;  %v2256_v62 = vcombine.low %v6757_v48, %v2241_v1 }
 0x142   : > { %2685 = vrot.lane.b32.xlu1 %v2529_v53, %s6399_s18  ;;  %v1626_v9 = vcombine.low %v1604_v52, %v1611_v58  ;;  %v3028_v14 = vrot.slane %v3021_v59, %v6627_v37  ;;  %v551_v15 = vmax.f32 %v513_v63, 0.0  ;;  %v998_v16 = vshrl.u32 %v6691_v35, 16  ;;  %v6836_v18 = vpop.f32.mrb[24].mxu0 }
 0x143   : > { %v2227_v22 = vcombine.low %v6724_v11, %v6828_v7  ;;  %v2248_v12 = vrot.slane %v5946_v8, %v6627_v37  ;;  %v2264_v24 = vrot.slane %v2256_v62, %v6627_v37  ;;  %v1003_v48 = vshll.u32 %v6780_v10, 16  ;;  %v6085_v1 = vpop.f32.mrb[25].mxu0 }
 0x144   : > { %v6844_v25 = vrot.slane %v1626_v9, %v6627_v37  ;;  %v3029_v26 = vcombine.low %v6824_v4, %v3028_v14  ;;  %v563_v30 = vpack.c.bf16 %v551_v15, %v550_v44  ;;  %v5874_v19 = vpack.c.bf16 %v551_v15, %v551_v15  ;;  %v6847_v35 = vpop.f32.mrb[26].mxu0 }
 0x145   : > { %v6850_v33 = vrot.slane %v2227_v22, %v6627_v37  ;;  %v1005_v34 = vsel %vm6661_vm2, %v998_v16, %v1003_v48  ;;  %v1006_v38 = vshrl.u32 %v6780_v10, 16  ;;  %v1011_v41 = vshll.u32 %v6786_v17, 16  ;;  %v6086_v43 = vpop.f32.mrb[27].mxu0 }
 0x146   : > { %v3036_v42 = vrot.slane %v3029_v26, %v6627_v37  ;;  %v821_v45 = vrot.slane %v563_v30, %v6627_v37  ;;  %v828_v44 = vrot.slane %v5874_v19, %v6627_v37  ;;  %v1014_v49 = vshrl.u32 %v6786_v17, 16 }
 0x147   : > { %v2257_v52 = vcombine.low %v2248_v12, %v6850_v33  ;;  %v1013_v53 = vsel %vm6661_vm2, %v1006_v38, %v1011_v41  ;;  %v1019_v58 = vshll.u32 %v6686_v29, 16  ;;  %v1022_v10 = vshrl.u32 %v6686_v29, 16 }
 0x148   : > { %v3037_v59 = vcombine.low %v6844_v25, %v3036_v42  ;;  %v829_v63 = vcombine.high %v821_v45, %v821_v45  ;;  %v830_v8 = vcombine.high %v828_v44, %v828_v44  ;;  %v6867_v62 = vrot.slane %v821_v45, %v6627_v37 }
 0x149   : > { %v6870_v9 = vrot.slane %v828_v44, %v6627_v37  ;;  %v2271_v17 = vrot.slane %v2257_v52, %v6627_v37  ;;  %v1021_v14 = vsel %vm6661_vm2, %v1014_v49, %v1019_v58  ;;  %v1027_v15 = vshll.u32 %v6694_v36, 16 }
 0x14a   : > { %3169 = vrot.lane.b32.xlu0 %v3037_v59, %s6400_s20  ;;  %v6878_v29 = vrot.slane %v829_v63, %v6627_v37  ;;  %v6881_v16 = vrot.slane %v830_v8, %v6627_v37  ;;  %v1030_v22 = vshrl.u32 %v6694_v36, 16  ;;  %v1035_v12 = vshll.u32 %v6740_v23, 16  ;;  %v6885_v48 = vpop.f32.mrb[28].mxu0 }
 0x14b   : > { %v2272_v1 = vcombine.low %v2264_v24, %v2271_v17  ;;  %v1029_v26 = vsel %vm6661_vm2, %v1022_v10, %v1027_v15  ;;  %v1038_v30 = vshrl.u32 %v6740_v23, 16  ;;  %v1047_v19 = vshrl.u32 %v6715_v5, 16  ;;  %v6089_v38 = vpop.f32.mrb[29].mxu0 }
 0x14c   : > { %v1037_v41 = vsel %vm6661_vm2, %v1030_v22, %v1035_v12  ;;  %v1052_v43 = vshll.u32 %v6724_v11, 16  ;;  %v1055_v36 = vshrl.u32 %v6724_v11, 16  ;;  %v1060_v42 = vshll.u32 %v6828_v7, 16  ;;  %v6896_v45 = vpop.f32.mrb[30].mxu0 }
 0x14d   : > { %2485 = vrot.lane.b32.xlu1 %v2272_v1, %s6397_s13  ;;  %v1045_v23 = vsel %vm6661_vm2, %v1038_v30, %v1043_v32  ;;  %v1902_v24 = vcombine.low %v1005_v34, %v1013_v53  ;;  %v1903_v44 = vcombine.low %v1021_v14, %v1029_v26  ;;  %v2699_v49 = vcombine.low %v6736_v21, %v1005_v34  ;;  %v6090_v52 = vpop.f32.mrb[31].mxu0 }
 0x14e   : > { %v1054_v58 = vsel %vm6661_vm2, %v1047_v19, %v1052_v43  ;;  %v6908_v10 = vsel %vm6661_vm2, %v1055_v36, %v1060_v42  ;;  %v1904_v59 = vcombine.low %v1037_v41, %v1045_v23  ;;  %v2700_v63 = vcombine.low %v1013_v53, %v1021_v14 }
 0x14f   : > { %v1905_v8 = vcombine.low %v1054_v58, %v6908_v10  ;;  %v1912_v20 = vrot.slane %v1902_v24, %v6627_v37  ;;  %v1919_v32 = vrot.slane %v1903_v44, %v6627_v37  ;;  %v2701_v17 = vcombine.low %v1029_v26, %v1037_v41 }
 0x150   : > { %v1926_v15 = vrot.slane %v1904_v59, %v6627_v37  ;;  %v2702_v21 = vcombine.low %v1045_v23, %v1054_v58  ;;  %v2709_v34 = vrot.slane %v2699_v49, %v6627_v37  ;;  %v2716_v22 = vrot.slane %v2700_v63, %v6627_v37 }
 0x151   : > { %v6917_v12 = vrot.slane %v1905_v8, %v6627_v37  ;;  %v1934_v1 = vcombine.low %v1912_v20, %v1919_v32  ;;  %v2723_v53 = vrot.slane %v2701_v17, %v6627_v37  ;;  %v6922_v14 = vcombine.high %v6718_v6, %v6718_v6 }
 0x152   : > { %v2730_v30 = vrot.slane %v2702_v21, %v6627_v37  ;;  %v2731_v26 = vcombine.low %v2709_v34, %v2716_v22  ;;  %v6927_v19 = vcombine.high %v6724_v11, %v6724_v11  ;;  %v2530_v38 = vcombine.low %v6760_v54, %v6768_v61  ;;  %v6931_v41 = vpop.f32.mrb[32].mxu0 }
 0x153   : > { %v1935_v43 = vcombine.low %v1926_v15, %v6917_v12  ;;  %v1942_v36 = vrot.slane %v1934_v1, %v6627_v37  ;;  %v2274_v42 = vcombine.low %v6727_v13, %v6922_v14  ;;  %v1597_v23 = vcombine.low %v6715_v5, %v6724_v11  ;;  %v6093_v24 = vpop.f32.mrb[33].mxu0 }
 0x154   : > { %v2732_v44 = vcombine.low %v2723_v53, %v2730_v30  ;;  %v2739_v49 = vrot.slane %v2731_v26, %v6627_v37  ;;  %v2273_v52 = vcombine.low %v6927_v19, %v6718_v6  ;;  %v2537_v58 = vrot.slane %v2530_v38, %v6627_v37  ;;  %v6943_v59 = vpop.f32.mrb[34].mxu0 }
 0x155   : > { %v1949_v63 = vrot.slane %v1935_v43, %v6627_v37  ;;  %v6947_v8 = vrot.slane %v2274_v42, %v6627_v37  ;;  %v6950_v20 = vrot.slane %v1597_v23, %v6627_v37  ;;  %v5942_v32 = vcombine.high %v6715_v5, %v6724_v11  ;;  %v6094_v17 = vpop.f32.mrb[35].mxu0 }
 0x156   : > { %v2746_v15 = vrot.slane %v2732_v44, %v6627_v37  ;;  %v6956_v21 = vrot.slane %v2273_v52, %v6627_v37  ;;  %v1644_v34 = vcombine.low %v6718_v6, %v6727_v13  ;;  %v1645_v22 = vcombine.low %v6922_v14, %v6760_v54 }
 0x157   : > { %v1950_v1 = vcombine.low %v1942_v36, %v1949_v63  ;;  %v2539_v53 = vcombine.low %v6947_v8, %v2537_v58  ;;  %v1653_v30 = vrot.slane %v5942_v32, %v6627_v37  ;;  %v518_v5 = vadd.f32 %v6620_v28, %v6836_v18 }
 0x158   : > { %v2747_v11 = vcombine.low %v2739_v49, %v2746_v15  ;;  %v2538_v26 = vcombine.low %v6850_v33, %v6956_v21  ;;  %v1660_v38 = vrot.slane %v1644_v34, %v6627_v37  ;;  %v6970_v43 = vrot.slane %v1645_v22, %v6627_v37 }
 0x159   : > { %2163 = vrot.lane.b32.xlu0 %v1950_v1, %s6398_s15  ;;  %v2553_v36 = vrot.slane %v2539_v53, %v6627_v37  ;;  %v3183_v42 = vcombine.low %v6950_v20, %v1653_v30  ;;  %v552_v23 = vmax.f32 %v518_v5, 0.0  ;;  %v6977_v24 = vcombine.high %v6760_v54, %v6760_v54 }
 0x15a   : > { %3007 = vrot.lane.b32.xlu1 %v2747_v11, %s6401_s21  ;;  %v2546_v18 = vrot.slane %v2538_v26, %v6627_v37  ;;  %v3184_v33 = vcombine.low %v1660_v38, %v6970_v43  ;;  %v1675_v44 = vcombine.low %v1653_v30, %v1660_v38  ;;  %v5952_v49 = vcombine.high %v6718_v6, %v6727_v13 }
 0x15b   : > { %v3191_v52 = vrot.slane %v3183_v42, %v6627_v37  ;;  %v1646_v58 = vcombine.low %v6768_v61, %v6977_v24  ;;  %v521_v63 = vadd.f32 %v6620_v28, %v6847_v35  ;;  %v912_v32 = vcombine.high %v6727_v13, %v6727_v13 }
 0x15c   : > { %v2554_v17 = vcombine.low %v2546_v18, %v2553_v36  ;;  %v3198_v15 = vrot.slane %v3184_v33, %v6627_v37  ;;  %v6993_v34 = vrot.slane %v1675_v44, %v6627_v37  ;;  %v3045_v22 = vrot.slane %v5952_v49, %v6627_v37 }
 0x15d   : > { %v6997_v1 = vrot.slane %v1646_v58, %v6627_v37  ;;  %v553_v53 = vmax.f32 %v521_v63, 0.0  ;;  %v1100_v30 = vshll.u32 %v912_v32, 16  ;;  %v2275_v5 = vcombine.low %v912_v32, %v6768_v61 }
 0x15e   : > { %2687 = vrot.lane.b32.xlu0 %v2554_v17, %s6399_s18  ;;  %v3199_v35 = vcombine.low %v3191_v52, %v3198_v15  ;;  %v1063_v11 = vshrl.u32 %v6828_v7, 16  ;;  %v1068_v26 = vshll.u32 %v6927_v19, 16  ;;  %v1071_v38 = vshrl.u32 %v6927_v19, 16 }
 0x15f   : > { %v3046_v36 = vcombine.low %v3045_v22, %v6997_v1  ;;  %v564_v42 = vpack.c.bf16 %v553_v53, %v552_v23  ;;  %v5875_v33 = vpack.c.bf16 %v553_v53, %v553_v53  ;;  %v2297_v44 = vrot.slane %v2275_v5, %v6627_v37 }
 0x160   : > { %3331 = vrot.lane.b32.xlu1 %v3199_v35, %s6402_s16  ;;  %v1070_v49 = vsel %vm6661_vm2, %v1063_v11, %v1068_v26  ;;  %v1076_v52 = vshll.u32 %v6718_v6, 16  ;;  %v1079_v7 = vshrl.u32 %v6718_v6, 16  ;;  %v1084_v58 = vshll.u32 %v6727_v13, 16 }
 0x161   : > { %v3053_v19 = vrot.slane %v3046_v36, %v6627_v37  ;;  %v869_v63 = vrot.slane %v564_v42, %v6627_v37  ;;  %v876_v23 = vrot.slane %v5875_v33, %v6627_v37  ;;  %v3531_v32 = vcombine.low %v6947_v8, %v2297_v44 }
 0x162   : > { %v1078_v17 = vsel %vm6661_vm2, %v1071_v38, %v1076_v52  ;;  %v1086_v15 = vsel %vm6661_vm2, %v1079_v7, %v1084_v58  ;;  %v1087_v22 = vshrl.u32 %v6727_v13, 16  ;;  %v1092_v6 = vshll.u32 %v6922_v14, 16 }
 0x163   : > { %v3054_v53 = vcombine.low %v6993_v34, %v3053_v19  ;;  %v877_v5 = vcombine.high %v869_v63, %v869_v63  ;;  %v878_v35 = vcombine.high %v876_v23, %v876_v23  ;;  %v7024_v11 = vrot.slane %v869_v63, %v6627_v37 }
 0x164   : > { %v7027_v26 = vrot.slane %v876_v23, %v6627_v37  ;;  %v3538_v36 = vrot.slane %v3531_v32, %v6627_v37  ;;  %v1094_v38 = vsel %vm6661_vm2, %v1087_v22, %v1092_v6  ;;  %v1095_v42 = vshrl.u32 %v6922_v14, 16 }
 0x165   : > { %3171 = vrot.lane.b32.xlu0 %v3054_v53, %s6400_s20  ;;  %v7035_v13 = vrot.slane %v877_v5, %v6627_v37  ;;  %v7038_v33 = vrot.slane %v878_v35, %v6627_v37  ;;  %v1104_v52 = vshrl.u32 %v6760_v54, 16  ;;  %v1109_v7 = vshll.u32 %v6768_v61, 16 }
 0x166   : > { %v7044_v58 = vcombine.high %v7027_v26, %v7027_v26  ;;  %v3539_v19 = vcombine.low %v2546_v18, %v3538_v36  ;;  %v1102_v14 = vsel %vm6661_vm2, %v1095_v42, %v1100_v30  ;;  %v1951_v63 = vcombine.low %v1070_v49, %v1078_v17 }
 0x167   : > { %v1111_v23 = vsel %vm6661_vm2, %v1104_v52, %v1109_v7  ;;  %v1952_v32 = vcombine.low %v1086_v15, %v1094_v38  ;;  %v5947_v22 = vcombine.high %v6760_v54, %v6768_v61  ;;  %v2305_v6 = vcombine.low %v6956_v21, %v6947_v8 }
 0x168   : > { %3647 = vrot.lane.b32.xlu1 %v3539_v19, %s6403_s23  ;;  %v1953_v53 = vcombine.low %v1102_v14, %v1111_v23  ;;  %v1961_v18 = vrot.slane %v1951_v63, %v6627_v37  ;;  %v7058_v30 = vcombine.high %v6768_v61, %v6768_v61  ;;  %v1112_v5 = vshrl.u32 %v6768_v61, 16 }
 0x169   : > { %v1968_v35 = vrot.slane %v1952_v32, %v6627_v37  ;;  %v2304_v36 = vrot.slane %v5947_v22, %v6627_v37  ;;  %v2313_v54 = vrot.slane %v2305_v6, %v6627_v37  ;;  %v1117_v8 = vshll.u32 %v6977_v24, 16 }
 0x16a   : > { %v1975_v21 = vrot.slane %v1953_v53, %v6627_v37  ;;  %v3345_v42 = vcombine.low %v6917_v12, %v1961_v18  ;;  %v1120_v52 = vshrl.u32 %v6977_v24, 16  ;;  %v1125_v7 = vshll.u32 %v7058_v30, 16 }
 0x16b   : > { %v2306_v19 = vcombine.low %v2297_v44, %v2304_v36  ;;  %v1119_v61 = vsel %vm6661_vm2, %v1112_v5, %v1117_v8  ;;  %v1983_v63 = vcombine.low %v1961_v18, %v1968_v35  ;;  %v2748_v32 = vcombine.low %v6908_v10, %v1070_v49 }
 0x16c   : > { %v3346_v22 = vcombine.low %v1968_v35, %v1975_v21  ;;  %v3353_v6 = vrot.slane %v3345_v42, %v6627_v37  ;;  %v7075_v0 = vsel %vm6661_vm2, %v1120_v52, %v1125_v7  ;;  %v2749_v53 = vcombine.low %v1078_v17, %v1086_v15 }
 0x16d   : > { %v2320_v12 = vrot.slane %v2306_v19, %v6627_v37  ;;  %v1954_v24 = vcombine.low %v1119_v61, %v7075_v0  ;;  %v1991_v44 = vrot.slane %v1983_v63, %v6627_v37  ;;  %v2750_v31 = vcombine.low %v1094_v38, %v1102_v14 }
 0x16e   : > { %v3360_v5 = vrot.slane %v3346_v22, %v6627_v37  ;;  %v2751_v18 = vcombine.low %v1111_v23, %v1119_v61  ;;  %v2758_v10 = vrot.slane %v2748_v32, %v6627_v37  ;;  %v2765_v49 = vrot.slane %v2749_v53, %v6627_v37 }
 0x16f   : > { %v2321_v35 = vcombine.low %v2313_v54, %v2320_v12  ;;  %v7084_v8 = vrot.slane %v1954_v24, %v6627_v37  ;;  %v2772_v17 = vrot.slane %v2750_v31, %v6627_v37  ;;  %v7089_v15 = vcombine.high %v6763_v57, %v6763_v57 }
 0x170   : > { %v3361_v42 = vcombine.low %v3353_v6, %v3360_v5  ;;  %v2779_v38 = vrot.slane %v2751_v18, %v6627_v37  ;;  %v2780_v14 = vcombine.low %v2758_v10, %v2765_v49  ;;  %v7094_v23 = vcombine.high %v6800_v39, %v6800_v39 }
 0x171   : > { %2487 = vrot.lane.b32.xlu1 %v2321_v35, %s6397_s13  ;;  %v1984_v54 = vcombine.low %v1975_v21, %v7084_v8  ;;  %v2322_v52 = vcombine.low %v6763_v57, %v6771_v2  ;;  %v2555_v31 = vcombine.low %v7089_v15, %v6800_v39  ;;  %v1692_v7 = vcombine.low %v7058_v30, %v6763_v57 }
 0x172   : > { %3517 = vrot.lane.b32.xlu0 %v3361_v42, %s6404_s22  ;;  %v2781_v19 = vcombine.low %v2772_v17, %v2779_v38  ;;  %v2788_v61 = vrot.slane %v2780_v14, %v6627_v37  ;;  %v2324_v63 = vcombine.low %v6811_v46, %v7094_v23  ;;  %v1693_v21 = vcombine.low %v6771_v2, %v7089_v15 }
 0x173   : > { %v1998_v32 = vrot.slane %v1984_v54, %v6627_v37  ;;  %v7112_v22 = vrot.slane %v2322_v52, %v6627_v37  ;;  %v2562_v6 = vrot.slane %v2555_v31, %v6627_v37  ;;  %v1694_v53 = vcombine.low %v6800_v39, %v6811_v46 }
 0x174   : > { %v2795_v12 = vrot.slane %v2781_v19, %v6627_v37  ;;  %v7119_v24 = vrot.slane %v2324_v63, %v6627_v37  ;;  %v1702_v5 = vrot.slane %v1692_v7, %v6627_v37  ;;  %v1709_v18 = vrot.slane %v1693_v21, %v6627_v37 }
 0x175   : > { %v1999_v10 = vcombine.low %v1991_v44, %v1998_v32  ;;  %v2563_v49 = vcombine.low %v2304_v36, %v7112_v22  ;;  %v7125_v35 = vrot.slane %v1694_v53, %v6627_v37  ;;  %v526_v17 = vadd.f32 %v6620_v28, %v6885_v48  ;;  %v6261_v44 = vld [vmem:[%s8494_s2] sm:$0xff]  }
 0x176   : > { %v2796_v42 = vcombine.low %v2788_v61, %v2795_v12  ;;  %v2564_v38 = vcombine.low %v2562_v6, %v7119_v24  ;;  %v3200_v14 = vcombine.low %v6997_v1, %v1702_v5  ;;  %v913_v54 = vcombine.high %v6771_v2, %v6771_v2  ;;  %6096 = vmatpush3.bf16.msra.mxu0 %v6261_v44 }
 0x177   : > { %2165 = vrot.lane.b32.xlu0 %v1999_v10, %s6398_s15  ;;  %v7138_v36 = vrot.slane %v2563_v49, %v6627_v37  ;;  %v3201_v52 = vcombine.low %v1709_v18, %v7125_v35  ;;  %v554_v48 = vmax.f32 %v526_v17, 0.0  ;;  %v5943_v31 = vcombine.high %v6800_v39, %v6811_v46  ;;  %6162 = vmatpush3.bf16.msra.mxu1 %v6261_v44 }
 0x178   : > { %3009 = vrot.lane.b32.xlu1 %v2796_v42, %s6401_s21  ;;  %v2578_v7 = vrot.slane %v2564_v38, %v6627_v37  ;;  %v3208_v19 = vrot.slane %v3200_v14, %v6627_v37  ;;  %v1157_v61 = vshll.u32 %v913_v54, 16  ;;  %v1724_v63 = vcombine.low %v1702_v5, %v1709_v18 }
 0x179   : > { %v3215_v21 = vrot.slane %v3201_v52, %v6627_v37  ;;  %v7148_v32 = vrot.slane %v5943_v31, %v6627_v37  ;;  %v3055_v6 = vcombine.low %v913_v54, %v6811_v46  ;;  %v529_v53 = vadd.f32 %v6620_v28, %v6896_v45 }
 0x17a   : > { %v8513_v12 = vmov 0.0   ;;  %v2579_v10 = vcombine.low %v7138_v36, %v2578_v7  ;;  %v7156_v49 = vrot.slane %v1724_v63, %v6627_v37  ;;  %v5948_v5 = vcombine.high %v6763_v57, %v6771_v2 }
 0x17b   : > { %6097 = vmatprep.subr.bf16.mxu0 %v8513_v12  ;;  %v1128_v18 = vshrl.u32 %v7058_v30, 16  ;;  %v3216_v17 = vcombine.low %v3208_v19, %v3215_v21  ;;  %v3062_v42 = vrot.slane %v3055_v6, %v6627_v37  ;;  %v555_v38 = vmax.f32 %v529_v53, 0.0  ;;  %6160 = vmatprep.subr.bf16.mxu1 %v8513_v12  ;;  %v6262_v19 = vld [vmem:[%s8494_s2 + $0x8] sm:$0xff]  }
 0x17c   : > { %v1133_v14 = vshll.u32 %v6763_v57, 16  ;;  %2689 = vrot.lane.b32.xlu0 %v2579_v10, %s6399_s18  ;;  %v2339_v28 = vrot.slane %v5948_v5, %v6627_v37  ;;  %v1136_v45 = vshrl.u32 %v6763_v57, 16  ;;  %v1141_v54 = vshll.u32 %v6771_v2, 16  ;;  %6098 = vmatpush3.bf16.msra.mxu0 %v6262_v19 }
 0x17d   : > { %v1144_v52 = vshrl.u32 %v6771_v2, 16  ;;  %3333 = vrot.lane.b32.xlu1 %v3216_v17, %s6402_s16  ;;  %v3063_v30 = vcombine.low %v3062_v42, %v7148_v32  ;;  %v565_v44 = vpack.c.bf16 %v555_v38, %v554_v48  ;;  %v5925_v31 = vpack.c.bf16 %v555_v38, %v555_v38  ;;  %6163 = vmatpush3.bf16.msra.mxu1 %v6262_v19 }
 0x17e   : > { %v1135_v7 = vsel %vm6661_vm2, %v1128_v18, %v1133_v14  ;;  %v3540_v63 = vcombine.low %v2339_v28, %v7119_v24  ;;  %v1143_v57 = vsel %vm6661_vm2, %v1136_v45, %v1141_v54  ;;  %v1149_v2 = vshll.u32 %v7089_v15, 16  ;;  %6099 = vmatprep.subr.bf16.mxu0 %v8513_v12  ;;  %6161 = vmatprep.subr.bf16.mxu1 %v8513_v12 }
 0x17f   : > { %v1152_v21 = vshrl.u32 %v7089_v15, 16  ;;  %v3070_v6 = vrot.slane %v3063_v30, %v6627_v37  ;;  %v1339_v48 = vrot.slane %v565_v44, %v6627_v37  ;;  %v1346_v53 = vrot.slane %v5925_v31, %v6627_v37 }
 0x180   : > { %v1161_v10 = vshrl.u32 %v6800_v39, 16  ;;  %v3547_v5 = vrot.slane %v3540_v63, %v6627_v37  ;;  %v1151_v18 = vsel %vm6661_vm2, %v1144_v52, %v1149_v2  ;;  %v1166_v15 = vshll.u32 %v6811_v46, 16 }
 0x181   : > { %v1159_v17 = vsel %vm6661_vm2, %v1152_v21, %v1157_v61  ;;  %v3071_v42 = vcombine.low %v7156_v49, %v3070_v6  ;;  %v1347_v38 = vcombine.high %v1339_v48, %v1339_v48  ;;  %v1348_v39 = vcombine.high %v1346_v53, %v1346_v53 }
 0x182   : > { %v7195_v14 = vrot.slane %v1339_v48, %v6627_v37  ;;  %v7198_v45 = vrot.slane %v1346_v53, %v6627_v37  ;;  %v3548_v54 = vcombine.low %v7138_v36, %v3547_v5  ;;  %v1168_v61 = vsel %vm6661_vm2, %v1161_v10, %v1166_v15 }
 0x183   : > { %v1169_v52 = vshrl.u32 %v6811_v46, 16  ;;  %3173 = vrot.lane.b32.xlu0 %v3071_v42, %s6400_s20  ;;  %v7206_v30 = vrot.slane %v1347_v38, %v6627_v37  ;;  %v7209_v44 = vrot.slane %v1348_v39, %v6627_v37  ;;  %v1174_v31 = vshll.u32 %v7094_v23, 16 }
 0x184   : > { %v2000_v19 = vcombine.low %v1135_v7, %v1143_v57  ;;  %3649 = vrot.lane.b32.xlu1 %v3548_v54, %s6403_s23  ;;  %v2001_v63 = vcombine.low %v1151_v18, %v1159_v17  ;;  %v813_v36 = vcombine.high %v6811_v46, %v6811_v46  ;;  %v2354_v2 = vcombine.low %v7112_v22, %v2339_v28 }
 0x185   : > { %v1177_v21 = vshrl.u32 %v7094_v23, 16  ;;  %v1176_v6 = vsel %vm6661_vm2, %v1169_v52, %v1174_v31  ;;  %v1190_v53 = vshll.u32 %v6803_v40, 16  ;;  %v2797_v10 = vcombine.low %v7075_v0, %v1135_v7 }
 0x186   : > { %v2010_v48 = vrot.slane %v2000_v19, %v6627_v37  ;;  %v2002_v5 = vcombine.low %v1168_v61, %v1176_v6  ;;  %v2017_v15 = vrot.slane %v2001_v63, %v6627_v37  ;;  %v2325_v42 = vcombine.low %v813_v36, %v6803_v40 }
 0x187   : > { %v2362_v46 = vrot.slane %v2354_v2, %v6627_v37  ;;  %v1182_v28 = vshll.u32 %v813_v36, 16  ;;  %v1185_v23 = vshrl.u32 %v813_v36, 16  ;;  %v2798_v38 = vcombine.low %v1143_v57, %v1151_v18 }
 0x188   : > { %v3362_v22 = vcombine.low %v7084_v8, %v2010_v48  ;;  %v2024_v39 = vrot.slane %v2002_v5, %v6627_v37  ;;  %v2353_v54 = vrot.slane %v2325_v42, %v6627_v37  ;;  %v2032_v52 = vcombine.low %v2010_v48, %v2017_v15 }
 0x189   : > { %v2799_v31 = vcombine.low %v1159_v17, %v1168_v61  ;;  %v1184_v7 = vsel %vm6661_vm2, %v1177_v21, %v1182_v28  ;;  %v7233_v19 = vsel %vm6661_vm2, %v1185_v23, %v1190_v53  ;;  %v2807_v8 = vrot.slane %v2797_v10, %v6627_v37 }
 0x18a   : > { %v3370_v0 = vrot.slane %v3362_v22, %v6627_v37  ;;  %v3363_v63 = vcombine.low %v2017_v15, %v2024_v39  ;;  %v2355_v57 = vcombine.low %v7119_v24, %v2353_v54  ;;  %v2003_v18 = vcombine.low %v1184_v7, %v7233_v19 }
 0x18b   : > { %v2040_v36 = vrot.slane %v2032_v52, %v6627_v37  ;;  %v2800_v2 = vcombine.low %v1176_v6, %v1184_v7  ;;  %v2814_v17 = vrot.slane %v2798_v38, %v6627_v37  ;;  %v2821_v61 = vrot.slane %v2799_v31, %v6627_v37 }
 0x18c   : > { %v7243_v21 = vcombine.high %v6803_v40, %v6803_v40  ;;  %v3377_v48 = vrot.slane %v3363_v63, %v6627_v37  ;;  %v2369_v53 = vrot.slane %v2355_v57, %v6627_v37  ;;  %v7248_v10 = vrot.slane %v2003_v18, %v6627_v37 }
 0x18d   : > { %v5949_v24 = vcombine.high %v6867_v62, %v6878_v29  ;;  %v2828_v6 = vrot.slane %v2800_v2, %v6627_v37  ;;  %v2829_v5 = vcombine.low %v2807_v8, %v2814_v17  ;;  %v2580_v42 = vcombine.low %v6867_v62, %v6878_v29 }
 0x18e   : > { %v2371_v15 = vcombine.low %v6814_v47, %v7243_v21  ;;  %v3378_v22 = vcombine.low %v3370_v0, %v3377_v48  ;;  %v2370_v28 = vcombine.low %v2362_v46, %v2369_v53  ;;  %v2033_v23 = vcombine.low %v2024_v39, %v7248_v10 }
 0x18f   : > { %v7259_v38 = vrot.slane %v5949_v24, %v6627_v37  ;;  %v2830_v52 = vcombine.low %v2821_v61, %v2828_v6  ;;  %v2837_v31 = vrot.slane %v2829_v5, %v6627_v37  ;;  %v2587_v8 = vrot.slane %v2580_v42, %v6627_v37  ;;  %v6264_v24 = vld [vmem:[%s8496_s4] ss:$0 sm:$0xff] }
 0x190   : > { %v7263_v7 = vrot.slane %v2371_v15, %v6627_v37  ;;  %3519 = vrot.lane.b32.xlu0 %v3378_v22, %s6404_s22  ;;  %2489 = vrot.lane.b32.xlu1 %v2370_v28, %s6397_s13  ;;  %v2047_v0 = vrot.slane %v2033_v23, %v6627_v37  ;;  %v7271_v46 = vcombine.high %v6867_v62, %v6867_v62  ;;  %v1193_v63 = vshrl.u32 %v6803_v40, 16 }
 0x191   : > { %v1741_v39 = vcombine.low %v6803_v40, %v6814_v47  ;;  %v2844_v57 = vrot.slane %v2830_v52, %v6627_v37  ;;  %v2589_v2 = vcombine.low %v2587_v8, %v7259_v38  ;;  %v1742_v17 = vcombine.low %v7243_v21, %v6867_v62 }
 0x192   : > { %v2588_v18 = vcombine.low %v2353_v54, %v7263_v7  ;;  %v2048_v61 = vcombine.low %v2040_v36, %v2047_v0  ;;  %v1743_v48 = vcombine.low %v6878_v29, %v7271_v46  ;;  %v534_v6 = vadd.f32 %v6264_v24, %v6931_v41 }
 0x193   : > { %v7284_v53 = vrot.slane %v1741_v39, %v6627_v37  ;;  %v2845_v5 = vcombine.low %v2837_v31, %v2844_v57  ;;  %v2603_v15 = vrot.slane %v2589_v2, %v6627_v37  ;;  %v7295_v36 = vrot.slane %v1742_v17, %v6627_v37 }
 0x194   : > { %v7291_v54 = vrot.slane %v2588_v18, %v6627_v37  ;;  %2167 = vrot.lane.b32.xlu0 %v2048_v61, %s6398_s15  ;;  %v1765_v42 = vrot.slane %v1743_v48, %v6627_v37  ;;  %v556_v28 = vmax.f32 %v534_v6, 0.0  ;;  %v7303_v41 = vcombine.high %v6878_v29, %v6878_v29 }
 0x195   : > { %8514 = vst [vmem:[#allocation6_spill] sm:$0xff] %v7284_v53  ;;  %8515 = vst [vmem:[#allocation7_spill] sm:$0xff] %v7295_v36  ;;  %v3217_v22 = vcombine.low %v7148_v32, %v7284_v53  ;;  %3011 = vrot.lane.b32.xlu1 %v2845_v5, %s6401_s21  ;;  %v5953_v52 = vcombine.high %v6803_v40, %v6814_v47  ;;  %v537_v31 = vadd.f32 %v6264_v24, %v6943_v59 }
 0x196   : > { %v2604_v23 = vcombine.low %v7291_v54, %v2603_v15  ;;  %v914_v8 = vcombine.high %v6814_v47, %v6814_v47  ;;  %v3218_v0 = vcombine.low %v7295_v36, %v1765_v42  ;;  %v1744_v57 = vcombine.low %v7303_v41, %v6870_v9 }
 0x197   : > { %v3225_v39 = vrot.slane %v3217_v22, %v6627_v37  ;;  %v1198_v18 = vshll.u32 %v6814_v47, 16  ;;  %v3079_v2 = vrot.slane %v5953_v52, %v6627_v37  ;;  %v557_v17 = vmax.f32 %v537_v31, 0.0 }
 0x198   : > { %v1214_v61 = vshll.u32 %v914_v8, 16  ;;  %v2372_v40 = vcombine.low %v914_v8, %v6878_v29  ;;  %2691 = vrot.lane.b32.xlu0 %v2604_v23, %s6399_s18  ;;  %v3232_v59 = vrot.slane %v3218_v0, %v6627_v37  ;;  %v7322_v48 = vrot.slane %v1744_v57, %v6627_v37 }
 0x199   : > { %v7326_v24 = vsel %vm6661_vm2, %v1193_v63, %v1198_v18  ;;  %v1201_v6 = vshrl.u32 %v6814_v47, 16  ;;  %v3080_v5 = vcombine.low %v7284_v53, %v3079_v2  ;;  %v566_v15 = vpack.c.bf16 %v557_v17, %v556_v28 }
 0x19a   : > { %v5933_v22 = vpack.c.bf16 %v557_v17, %v557_v17  ;;  %v2388_v52 = vrot.slane %v2372_v40, %v6627_v37  ;;  %v3233_v31 = vcombine.low %v3225_v39, %v3232_v59  ;;  %v1774_v23 = vcombine.low %v1765_v42, %v7322_v48 }
 0x19b   : > { %v1206_v8 = vshll.u32 %v7243_v21, 16  ;;  %v1209_v0 = vshrl.u32 %v7243_v21, 16  ;;  %v3087_v57 = vrot.slane %v3080_v5, %v6627_v37  ;;  %v1446_v63 = vrot.slane %v566_v15, %v6627_v37 }
 0x19c   : > { %v1453_v18 = vrot.slane %v5933_v22, %v6627_v37  ;;  %v3549_v47 = vcombine.low %v2388_v52, %v7259_v38  ;;  %3335 = vrot.lane.b32.xlu1 %v3233_v31, %s6402_s16  ;;  %v7340_v28 = vrot.slane %v1774_v23, %v6627_v37  ;;  %v1218_v21 = vshrl.u32 %v6867_v62, 16 }
 0x19d   : > { %v1208_v42 = vsel %vm6661_vm2, %v1201_v6, %v1206_v8  ;;  %v1216_v39 = vsel %vm6661_vm2, %v1209_v0, %v1214_v61  ;;  %v1454_v2 = vcombine.high %v1446_v63, %v1446_v63  ;;  %v7348_v40 = vrot.slane %v1446_v63, %v6627_v37 }
 0x19e   : > { %8516 = vst [vmem:[#allocation8_spill] sm:$0xff] %v7340_v28  ;;  %v1455_v17 = vcombine.high %v1453_v18, %v1453_v18  ;;  %v7351_v59 = vrot.slane %v1453_v18, %v6627_v37  ;;  %v3088_v5 = vcombine.low %v3087_v57, %v7340_v28  ;;  %v3556_v15 = vrot.slane %v3549_v47, %v6627_v37 }
 0x19f   : > { %v1223_v22 = vshll.u32 %v6878_v29, 16  ;;  %v1226_v6 = vshrl.u32 %v6878_v29, 16  ;;  %v7358_v61 = vrot.slane %v1454_v2, %v6627_v37  ;;  %v7365_v31 = vcombine.high %v7348_v40, %v7348_v40 }
 0x1a0   : > { %v7361_v62 = vrot.slane %v1455_v17, %v6627_v37  ;;  %v7369_v23 = vcombine.high %v7351_v59, %v7351_v59  ;;  %3175 = vrot.lane.b32.xlu0 %v3088_v5, %s6400_s20  ;;  %v3557_v29 = vcombine.low %v7291_v54, %v3556_v15  ;;  %v1231_v57 = vshll.u32 %v7271_v46, 16 }
 0x1a1   : > { %v1225_v0 = vsel %vm6661_vm2, %v1218_v21, %v1223_v22  ;;  %v1234_v63 = vshrl.u32 %v7271_v46, 16  ;;  %v1239_v18 = vshll.u32 %v7303_v41, 16  ;;  %v2049_v47 = vcombine.low %v7326_v24, %v1208_v42 }
 0x1a2   : > { %v2050_v2 = vcombine.low %v1216_v39, %v1225_v0  ;;  %3651 = vrot.lane.b32.xlu1 %v3557_v29, %s6403_s23  ;;  %v1233_v17 = vsel %vm6661_vm2, %v1226_v6, %v1231_v57  ;;  %v2374_v54 = vcombine.low %v6870_v9, %v6881_v16  ;;  %v2403_v5 = vcombine.low %v7263_v7, %v2388_v52 }
 0x1a3   : > { %v1242_v21 = vshrl.u32 %v7303_v41, 16  ;;  %v1241_v46 = vsel %vm6661_vm2, %v1234_v63, %v1239_v18  ;;  %v2059_v15 = vrot.slane %v2049_v47, %v6627_v37  ;;  %v1247_v8 = vshll.u32 %v6870_v9, 16 }
 0x1a4   : > { %v2066_v22 = vrot.slane %v2050_v2, %v6627_v37  ;;  %v2051_v29 = vcombine.low %v1233_v17, %v1241_v46  ;;  %v7393_v28 = vrot.slane %v2374_v54, %v6627_v37  ;;  %v2411_v6 = vrot.slane %v2403_v5, %v6627_v37 }
 0x1a5   : > { %v1250_v57 = vshrl.u32 %v6870_v9, 16  ;;  %v3379_v7 = vcombine.low %v7248_v10, %v2059_v15  ;;  %v1249_v41 = vsel %vm6661_vm2, %v1242_v21, %v1247_v8  ;;  %v1255_v52 = vshll.u32 %v6881_v16, 16 }
 0x1a6   : > { %v2081_v63 = vcombine.low %v2059_v15, %v2066_v22  ;;  %v2073_v18 = vrot.slane %v2051_v29, %v6627_v37  ;;  %v2404_v47 = vcombine.low %v7259_v38, %v7393_v28  ;;  %v2846_v2 = vcombine.low %v7233_v19, %v7326_v24 }
 0x1a7   : > { %v2847_v54 = vcombine.low %v1208_v42, %v1216_v39  ;;  %v3387_v5 = vrot.slane %v3379_v7, %v6627_v37  ;;  %v7409_v10 = vsel %vm6661_vm2, %v1250_v57, %v1255_v52  ;;  %v2848_v21 = vcombine.low %v1225_v0, %v1233_v17 }
 0x1a8   : > { %v2089_v8 = vrot.slane %v2081_v63, %v6627_v37  ;;  %v3380_v53 = vcombine.low %v2066_v22, %v2073_v18  ;;  %v2418_v15 = vrot.slane %v2404_v47, %v6627_v37  ;;  %v2052_v29 = vcombine.low %v1249_v41, %v7409_v10 }
 0x1a9   : > { %v2849_v36 = vcombine.low %v1241_v46, %v1249_v41  ;;  %v2856_v38 = vrot.slane %v2846_v2, %v6627_v37  ;;  %v2863_v19 = vrot.slane %v2847_v54, %v6627_v37  ;;  %v2870_v24 = vrot.slane %v2848_v21, %v6627_v37 }
 0x1aa   : > { %v860_v42 = vcombine.high %v6870_v9, %v6870_v9  ;;  %v3394_v39 = vrot.slane %v3380_v53, %v6627_v37  ;;  %v2419_v57 = vcombine.low %v2411_v6, %v2418_v15  ;;  %v7421_v0 = vrot.slane %v2052_v29, %v6627_v37 }
 0x1ab   : > { %v2877_v17 = vrot.slane %v2849_v36, %v6627_v37  ;;  %v2878_v22 = vcombine.low %v2856_v38, %v2863_v19  ;;  %v915_v46 = vcombine.high %v6881_v16, %v6881_v16  ;;  %v5944_v41 = vcombine.high %v7024_v11, %v7035_v13 }
 0x1ac   : > { %v1790_v7 = vcombine.low %v6881_v16, %v860_v42  ;;  %v3395_v52 = vcombine.low %v3387_v5, %v3394_v39  ;;  %2491 = vrot.lane.b32.xlu1 %v2419_v57, %s6397_s13  ;;  %v2082_v53 = vcombine.low %v2073_v18, %v7421_v0  ;;  %v1793_v63 = vcombine.low %v7027_v26, %v7038_v33 }
 0x1ad   : > { %v2879_v6 = vcombine.low %v2870_v24, %v2877_v17  ;;  %v2886_v36 = vrot.slane %v2878_v22, %v6627_v37  ;;  %v1271_v47 = vshll.u32 %v915_v46, 16  ;;  %v1814_v54 = vrot.slane %v5944_v41, %v6627_v37 }
 0x1ae   : > { %v7435_v2 = vrot.slane %v1790_v7, %v6627_v37  ;;  %3521 = vrot.lane.b32.xlu0 %v3395_v52, %s6404_s22  ;;  %v2096_v5 = vrot.slane %v2082_v53, %v6627_v37  ;;  %v7442_v18 = vrot.slane %v1793_v63, %v6627_v37  ;;  %v3089_v15 = vcombine.low %v915_v46, %v7035_v13 }
 0x1af   : > { %v2893_v21 = vrot.slane %v2879_v6, %v6627_v37  ;;  %v1791_v29 = vcombine.low %v7024_v11, %v7035_v13  ;;  %v907_v19 = vcombine.high %v7024_v11, %v7024_v11  ;;  %v909_v24 = vcombine.high %v7035_v13, %v7035_v13 }
 0x1b0   : > { %v3234_v38 = vcombine.low %v7322_v48, %v7435_v2  ;;  %v2097_v39 = vcombine.low %v2089_v8, %v2096_v5  ;;  %v1823_v17 = vcombine.low %v1814_v54, %v7442_v18  ;;  %v3096_v22 = vrot.slane %v3089_v15, %v6627_v37 }
 0x1b1   : > { %v2894_v57 = vcombine.low %v2886_v36, %v2893_v21  ;;  %v7456_v46 = vrot.slane %v1791_v29, %v6627_v37  ;;  %v2421_v41 = vcombine.low %v7035_v13, %v907_v19  ;;  %v2422_v48 = vcombine.low %v909_v24, %v7027_v26 }
 0x1b2   : > { %v3242_v7 = vrot.slane %v3234_v38, %v6627_v37  ;;  %2169 = vrot.lane.b32.xlu0 %v2097_v39, %s6398_s15  ;;  %v7464_v8 = vrot.slane %v1823_v17, %v6627_v37  ;;  %v3097_v52 = vcombine.low %v7435_v2, %v3096_v22  ;;  %v2605_v53 = vcombine.low %v860_v42, %v7024_v11 }
 0x1b3   : > { %3013 = vrot.lane.b32.xlu1 %v2894_v57, %s6401_s21  ;;  %v1258_v6 = vshrl.u32 %v6881_v16, 16  ;;  %v3235_v63 = vcombine.low %v7456_v46, %v1814_v54  ;;  %v2437_v36 = vrot.slane %v2421_v41, %v6627_v37  ;;  %v2444_v5 = vrot.slane %v2422_v48, %v6627_v37 }
 0x1b4   : > { %8517 = vst [vmem:[#allocation9_spill] sm:$0xff] %v7464_v8  ;;  %v5950_v21 = vcombine.high %v6870_v9, %v6881_v16  ;;  %v3104_v15 = vrot.slane %v3097_v52, %v6627_v37  ;;  %v2612_v29 = vrot.slane %v2605_v53, %v6627_v37  ;;  %v1263_v38 = vshll.u32 %v860_v42, 16 }
 0x1b5   : > { %v1266_v39 = vshrl.u32 %v860_v42, 16  ;;  %v3249_v57 = vrot.slane %v3235_v63, %v6627_v37  ;;  %v2614_v17 = vcombine.low %v2437_v36, %v2444_v5  ;;  %v1275_v54 = vshrl.u32 %v7024_v11, 16 }
 0x1b6   : > { %v2430_v22 = vrot.slane %v5950_v21, %v6627_v37  ;;  %v3105_v41 = vcombine.low %v3104_v15, %v7464_v8  ;;  %v2613_v48 = vcombine.low %v7393_v28, %v2612_v29  ;;  %v1265_v9 = vsel %vm6661_vm2, %v1258_v6, %v1263_v38 }
 0x1b7   : > { %v1273_v16 = vsel %vm6661_vm2, %v1266_v39, %v1271_v47  ;;  %v3250_v52 = vcombine.low %v3242_v7, %v3249_v57  ;;  %v2628_v42 = vrot.slane %v2614_v17, %v6627_v37  ;;  %v1280_v63 = vshll.u32 %v7035_v13, 16 }
 0x1b8   : > { %v3558_v53 = vcombine.low %v7393_v28, %v2430_v22  ;;  %3177 = vrot.lane.b32.xlu0 %v3105_v41, %s6400_s20  ;;  %v2621_v11 = vrot.slane %v2613_v48, %v6627_v37  ;;  %v1283_v21 = vshrl.u32 %v7035_v13, 16  ;;  %v1288_v15 = vshll.u32 %v907_v19, 16 }
 0x1b9   : > { %v1291_v29 = vshrl.u32 %v907_v19, 16  ;;  %3337 = vrot.lane.b32.xlu1 %v3250_v52, %s6402_s16  ;;  %v1282_v47 = vsel %vm6661_vm2, %v1275_v54, %v1280_v63  ;;  %v1296_v7 = vshll.u32 %v909_v24, 16  ;;  %v1299_v38 = vshrl.u32 %v909_v24, 16 }
 0x1ba   : > { %v3565_v6 = vrot.slane %v3558_v53, %v6627_v37  ;;  %v2629_v28 = vcombine.low %v2621_v11, %v2628_v42  ;;  %v1290_v39 = vsel %vm6661_vm2, %v1283_v21, %v1288_v15  ;;  %v1304_v57 = vshll.u32 %v7027_v26, 16 }
 0x1bb   : > { %v2098_v17 = vcombine.low %v1265_v9, %v1273_v16  ;;  %v1298_v13 = vsel %vm6661_vm2, %v1291_v29, %v1296_v7  ;;  %v2099_v19 = vcombine.low %v1282_v47, %v1290_v39  ;;  %v2423_v48 = vcombine.low %v7038_v33, %v7044_v58 }
 0x1bc   : > { %v3566_v41 = vcombine.low %v3565_v6, %v2628_v42  ;;  %2693 = vrot.lane.b32.xlu0 %v2629_v28, %s6399_s18  ;;  %v1306_v24 = vsel %vm6661_vm2, %v1299_v38, %v1304_v57  ;;  %v2452_v52 = vcombine.low %v2430_v22, %v2437_v36  ;;  %v1307_v53 = vshrl.u32 %v7027_v26, 16 }
 0x1bd   : > { %v2108_v54 = vrot.slane %v2098_v17, %v6627_v37  ;;  %v2100_v42 = vcombine.low %v1298_v13, %v1306_v24  ;;  %v2115_v63 = vrot.slane %v2099_v19, %v6627_v37  ;;  %v7510_v11 = vrot.slane %v2423_v48, %v6627_v37 }
 0x1be   : > { %3653 = vrot.lane.b32.xlu1 %v3566_v41, %s6403_s23  ;;  %v1312_v21 = vshll.u32 %v7038_v33, 16  ;;  %v2460_v29 = vrot.slane %v2452_v52, %v6627_v37  ;;  %v1315_v6 = vshrl.u32 %v7038_v33, 16  ;;  %v1320_v36 = vshll.u32 %v7044_v58, 16 }
 0x1bf   : > { %v3396_v15 = vcombine.low %v7421_v0, %v2108_v54  ;;  %v2122_v22 = vrot.slane %v2100_v42, %v6627_v37  ;;  %v2453_v7 = vcombine.low %v2444_v5, %v7510_v11  ;;  %v2130_v28 = vcombine.low %v2108_v54, %v2115_v63 }
 0x1c0   : > { %v1314_v38 = vsel %vm6661_vm2, %v1307_v53, %v1312_v21  ;;  %v7524_v17 = vsel %vm6661_vm2, %v1315_v6, %v1320_v36  ;;  %v2895_v0 = vcombine.low %v7409_v10, %v1265_v9  ;;  %v2896_v41 = vcombine.low %v1273_v16, %v1282_v47 }
 0x1c1   : > { %v3404_v57 = vrot.slane %v3396_v15, %v6627_v37  ;;  %v3397_v19 = vcombine.low %v2115_v63, %v2122_v22  ;;  %v2467_v48 = vrot.slane %v2453_v7, %v6627_v37  ;;  %v2101_v52 = vcombine.low %v1314_v38, %v7524_v17 }
 0x1c2   : > { %v2138_v5 = vrot.slane %v2130_v28, %v6627_v37  ;;  %v2897_v42 = vcombine.low %v1290_v39, %v1298_v13  ;;  %v2898_v8 = vcombine.low %v1306_v24, %v1314_v38  ;;  %v2905_v54 = vrot.slane %v2895_v0, %v6627_v37  ;;  %v7553_v28 = vpop.permute.xlu0 %2483 }
 0x1c3   : > { %v2912_v53 = vrot.slane %v2896_v41, %v6627_v37  ;;  %v3411_v21 = vrot.slane %v3397_v19, %v6627_v37  ;;  %v2468_v15 = vcombine.low %v2460_v29, %v2467_v48  ;;  %v7534_v6 = vrot.slane %v2101_v52, %v6627_v37 }
 0x1c4   : > { %v2630_v10 = vcombine.low %v7195_v14, %v7206_v30  ;;  %v2919_v9 = vrot.slane %v2897_v42, %v6627_v37  ;;  %v2926_v16 = vrot.slane %v2898_v8, %v6627_v37  ;;  %v5951_v39 = vcombine.high %v7195_v14, %v7206_v30 }
 0x1c5   : > { %v2927_v47 = vcombine.low %v2905_v54, %v2912_v53  ;;  %v3412_v13 = vcombine.low %v3404_v57, %v3411_v21  ;;  %2493 = vrot.lane.b32.xlu1 %v2468_v15, %s6397_s13  ;;  %v2131_v24 = vcombine.low %v2122_v22, %v7534_v6  ;;  %v2632_v63 = vcombine.low %v7198_v45, %v7209_v44 }
 0x1c6   : > { %v2639_v29 = vrot.slane %v2630_v10, %v6627_v37  ;;  %v2928_v36 = vcombine.low %v2919_v9, %v2926_v16  ;;  %v2646_v38 = vrot.slane %v5951_v39, %v6627_v37  ;;  %v7551_v8 = vcombine.high %v7038_v33, %v7038_v33 }
 0x1c7   : > { %v2935_v7 = vrot.slane %v2927_v47, %v6627_v37  ;;  %3523 = vrot.lane.b32.xlu0 %v3412_v13, %s6404_s22  ;;  %v2145_v22 = vrot.slane %v2131_v24, %v6627_v37  ;;  %v2653_v57 = vrot.slane %v2632_v63, %v6627_v37  ;;  %v1377_v41 = vcombine.high %v7195_v14, %v7195_v14 }
 0x1c8   : > { %v2654_v0 = vcombine.low %v7510_v11, %v2639_v29  ;;  %v2942_v19 = vrot.slane %v2928_v36, %v6627_v37  ;;  %v3567_v48 = vcombine.low %v7551_v8, %v7206_v30  ;;  %v7566_v52 = vcombine.high %v7198_v45, %v7198_v45  ;;  %v7588_v36 = vpop.permute.xlu0 %2161 }
 0x1c9   : > { %v1379_v42 = vcombine.high %v7206_v30, %v7206_v30  ;;  %v2146_v54 = vcombine.low %v2138_v5, %v2145_v22  ;;  %v2655_v53 = vcombine.low %v2646_v38, %v2653_v57  ;;  %v5954_v15 = vcombine.high %v7027_v26, %v7038_v33 }
 0x1ca   : > { %v2662_v21 = vrot.slane %v2654_v0, %v6627_v37  ;;  %v2943_v10 = vcombine.low %v2935_v7, %v2942_v19  ;;  %v3574_v9 = vrot.slane %v3567_v48, %v6627_v37  ;;  %v3107_v16 = vcombine.low %v7206_v30, %v1377_v41 }
 0x1cb   : > { %v3108_v47 = vcombine.low %v1379_v42, %v7198_v45  ;;  %2171 = vrot.lane.b32.xlu0 %v2146_v54, %s6398_s15  ;;  %v2669_v39 = vrot.slane %v2655_v53, %v6627_v37  ;;  %v3109_v5 = vcombine.low %v7209_v44, %v7566_v52  ;;  %v3116_v13 = vrot.slane %v5954_v15, %v6627_v37 }
 0x1cc   : > { %v3251_v24 = vcombine.low %v7044_v58, %v7195_v14  ;;  %3015 = vrot.lane.b32.xlu1 %v2943_v10, %s6401_s21  ;;  %v3575_v26 = vcombine.low %v7510_v11, %v3574_v9  ;;  %v3123_v33 = vrot.slane %v3107_v16, %v6627_v37  ;;  %v1323_v29 = vshrl.u32 %v7044_v58, 16 }
 0x1cd   : > { %v3130_v63 = vrot.slane %v3108_v47, %v6627_v37  ;;  %v2670_v7 = vcombine.low %v2662_v21, %v2669_v39  ;;  %v7591_v38 = vrot.slane %v3109_v5, %v6627_v37  ;;  %v1328_v57 = vshll.u32 %v7551_v8, 16 }
 0x1ce   : > { %v3258_v22 = vrot.slane %v3251_v24, %v6627_v37  ;;  %v3582_v0 = vrot.slane %v3575_v26, %v6627_v37  ;;  %v3138_v19 = vcombine.low %v3116_v13, %v3123_v33  ;;  %v1382_v48 = vshrl.u32 %v7195_v14, 16 }
 0x1cf   : > { %v3260_v11 = vcombine.low %v3123_v33, %v3130_v63  ;;  %2695 = vrot.lane.b32.xlu0 %v2670_v7, %s6399_s18  ;;  %v3139_v54 = vcombine.low %v3130_v63, %v7591_v38  ;;  %v1330_v21 = vsel %vm6661_vm2, %v1323_v29, %v1328_v57  ;;  %v1387_v15 = vshll.u32 %v7206_v30, 16  ;;  %v7612_v63 = vpop.permute.xlu0 %3169 }
 0x1d0   : > { %v3259_v53 = vcombine.low %v7442_v18, %v3258_v22  ;;  %v3583_v10 = vcombine.low %v3582_v0, %v2669_v39  ;;  %v3146_v9 = vrot.slane %v3138_v19, %v6627_v37  ;;  %v1390_v47 = vshrl.u32 %v7206_v30, 16 }
 0x1d1   : > { %v3274_v16 = vrot.slane %v3260_v11, %v6627_v37  ;;  %v3153_v14 = vrot.slane %v3139_v54, %v6627_v37  ;;  %v1389_v13 = vsel %vm6661_vm2, %v1382_v48, %v1387_v15  ;;  %v1395_v18 = vshll.u32 %v1377_v41, 16 }
 0x1d2   : > { %v3267_v5 = vrot.slane %v3259_v53, %v6627_v37  ;;  %3655 = vrot.lane.b32.xlu1 %v3583_v10, %s6403_s23  ;;  %v1398_v24 = vshrl.u32 %v1377_v41, 16  ;;  %v1403_v26 = vshll.u32 %v1379_v42, 16  ;;  %v1406_v33 = vshrl.u32 %v1379_v42, 16  ;;  %v7627_v53 = vpop.permute.xlu1 %2685 }
 0x1d3   : > { %v1411_v39 = vshll.u32 %v7198_v45, 16  ;;  %v3154_v29 = vcombine.low %v3146_v9, %v3153_v14  ;;  %v1397_v30 = vsel %vm6661_vm2, %v1390_v47, %v1395_v18  ;;  %v1414_v22 = vshrl.u32 %v7198_v45, 16 }
 0x1d4   : > { %v3275_v7 = vcombine.low %v3267_v5, %v3274_v16  ;;  %v1405_v57 = vsel %vm6661_vm2, %v1398_v24, %v1403_v26  ;;  %v1419_v41 = vshll.u32 %v7209_v44, 16  ;;  %v3413_v42 = vcombine.low %v1330_v21, %v1389_v13 }
 0x1d5   : > { %v1413_v0 = vsel %vm6661_vm2, %v1406_v33, %v1411_v39  ;;  %3179 = vrot.lane.b32.xlu0 %v3154_v29, %s6400_s20  ;;  %v3414_v19 = vcombine.low %v1397_v30, %v1405_v57  ;;  %v2475_v11 = vrot.slane %v7551_v8, %v6627_v37  ;;  %v2153_v48 = vrot.slane %v1330_v21, %v6627_v37  ;;  %v7641_v39 = vpop.permute.xlu0 %2163 }
 0x1d6   : > { %v1422_v54 = vshrl.u32 %v7209_v44, 16  ;;  %3339 = vrot.lane.b32.xlu1 %v3275_v7, %s6402_s16  ;;  %v1421_v15 = vsel %vm6661_vm2, %v1414_v22, %v1419_v41  ;;  %v3422_v10 = vrot.slane %v3413_v42, %v6627_v37  ;;  %v1427_v9 = vshll.u32 %v7566_v52, 16 }
 0x1d7   : > { %v2944_v16 = vcombine.low %v7524_v17, %v1330_v21  ;;  %v3415_v47 = vcombine.low %v1413_v0, %v1421_v15  ;;  %v3429_v8 = vrot.slane %v3414_v19, %v6627_v37  ;;  %v2482_v14 = vrot.slane %v2475_v11, %v6627_v37  ;;  %v7658_v19 = vpop.permute.xlu1 %2485 }
 0x1d8   : > { %v2160_v5 = vrot.slane %v2153_v48, %v6627_v37  ;;  %v3437_v18 = vcombine.low %v7534_v6, %v3422_v10  ;;  %v1429_v24 = vsel %vm6661_vm2, %v1422_v54, %v1427_v9  ;;  %v2945_v26 = vcombine.low %v1389_v13, %v1397_v30 }
 0x1d9   : > { %v2946_v33 = vcombine.low %v1405_v57, %v1413_v0  ;;  %v3436_v29 = vrot.slane %v3415_v47, %v6627_v37  ;;  %v2947_v7 = vcombine.low %v1421_v15, %v1429_v24  ;;  %v2954_v17 = vrot.slane %v2944_v16, %v6627_v37 }
 0x1da   : > { %v7647_v21 = vcombine.high %v7209_v44, %v7209_v44  ;;  %v3445_v22 = vrot.slane %v3437_v18, %v6627_v37  ;;  %2495 = vrot.lane.b32.xlu1 %v2482_v14, %s6397_s13  ;;  %v2961_v6 = vrot.slane %v2945_v26, %v6627_v37  ;;  %v1430_v30 = vshrl.u32 %v7566_v52, 16 }
 0x1db   : > { %v2968_v13 = vrot.slane %v2946_v33, %v6627_v37  ;;  %v3438_v57 = vcombine.low %v3429_v8, %v3436_v29  ;;  %v2975_v0 = vrot.slane %v2947_v7, %v6627_v37  ;;  %v1486_v42 = vcombine.high %v7358_v61, %v7358_v61  ;;  %v7676_v29 = vpop.permute.xlu0 %2687 }
 0x1dc   : > { %v1435_v41 = vshll.u32 %v7647_v21, 16  ;;  %v2976_v11 = vcombine.low %v2954_v17, %v2961_v6  ;;  %v1494_v48 = vshll.u32 %v7358_v61, 16  ;;  %v1497_v54 = vshrl.u32 %v7358_v61, 16 }
 0x1dd   : > { %v1502_v15 = vshll.u32 %v7365_v31, 16  ;;  %v3452_v10 = vrot.slane %v3438_v57, %v6627_v37  ;;  %v2977_v9 = vcombine.low %v2968_v13, %v2975_v0  ;;  %v1505_v47 = vshrl.u32 %v7365_v31, 16 }
 0x1de   : > { %v7666_v16 = vsel %vm6661_vm2, %v1430_v30, %v1435_v41  ;;  %v2984_v8 = vrot.slane %v2976_v11, %v6627_v37  ;;  %v8518_v14 = vshrl.u32 %v7348_v40, 16  ;;  %v1510_v33 = vshll.u32 %v1486_v42, 16 }
 0x1df   : > { %v1504_v26 = vsel %vm6661_vm2, %v1497_v54, %v1502_v15  ;;  %v3453_v7 = vcombine.low %v3445_v22, %v3452_v10  ;;  %v2991_v17 = vrot.slane %v2977_v9, %v6627_v37  ;;  %v1513_v6 = vshrl.u32 %v1486_v42, 16  ;;  %v7690_v15 = vpop.permute.xlu1 %3007 }
 0x1e0   : > { %v1496_v18 = vsel %vm6661_vm2, %v8518_v14, %v1494_v48  ;;  %v1518_v13 = vshll.u32 %v7351_v59, 16  ;;  %v1512_v30 = vsel %vm6661_vm2, %v1505_v47, %v1510_v33  ;;  %v1521_v57 = vshrl.u32 %v7351_v59, 16 }
 0x1e1   : > { %v1526_v0 = vshll.u32 %v7361_v62, 16  ;;  %v1529_v41 = vshrl.u32 %v7361_v62, 16  ;;  %3525 = vrot.lane.b32.xlu0 %v3453_v7, %s6404_s22  ;;  %v2992_v11 = vcombine.low %v2984_v8, %v2991_v17  ;;  %v1534_v48 = vshll.u32 %v7369_v23, 16 }
 0x1e2   : > { %v1520_v22 = vsel %vm6661_vm2, %v1513_v6, %v1518_v13  ;;  %v3454_v54 = vcombine.low %v1429_v24, %v7666_v16  ;;  %v3455_v9 = vcombine.low %v1496_v18, %v1504_v26  ;;  %v3276_v14 = vcombine.low %v7348_v40, %v7358_v61  ;;  %v7707_v13 = vpop.permute.xlu0 %3171 }
 0x1e3   : > { %v1528_v10 = vsel %vm6661_vm2, %v1521_v57, %v1526_v0  ;;  %v3456_v47 = vcombine.low %v1512_v30, %v1520_v22  ;;  %3017 = vrot.lane.b32.xlu1 %v2992_v11, %s6401_s21  ;;  %v1536_v8 = vsel %vm6661_vm2, %v1529_v41, %v1534_v48  ;;  %v5955_v24 = vcombine.high %v7348_v40, %v7358_v61 }
 0x1e4   : > { %v3464_v33 = vrot.slane %v3454_v54, %v6627_v37  ;;  %v3278_v7 = vcombine.low %v7351_v59, %v7361_v62  ;;  %v3457_v17 = vcombine.low %v1528_v10, %v1536_v8  ;;  %v3471_v18 = vrot.slane %v3455_v9, %v6627_v37  ;;  %v7721_v10 = vpop.permute.xlu1 %3331 }
 0x1e5   : > { %v3478_v26 = vrot.slane %v3456_v47, %v6627_v37  ;;  %v3285_v6 = vrot.slane %v3276_v14, %v6627_v37  ;;  %2173 = vrot.lane.b32.xlu0 %v2160_v5, %s6398_s15  ;;  %v3292_v30 = vrot.slane %v5955_v24, %v6627_v37  ;;  %v5956_v40 = vcombine.high %v7198_v45, %v7209_v44 }
 0x1e6   : > { %v3299_v57 = vrot.slane %v3278_v7, %v6627_v37  ;;  %v3485_v0 = vrot.slane %v3457_v17, %v6627_v37  ;;  %v3486_v41 = vcombine.low %v3464_v33, %v3471_v18  ;;  %v3585_v22 = vcombine.low %v7358_v61, %v7365_v31  ;;  %v7735_v8 = vpop.permute.xlu0 %3517 }
 0x1e7   : > { %v3300_v11 = vcombine.low %v7591_v38, %v3285_v6  ;;  %v3586_v54 = vcombine.low %v1486_v42, %v7351_v59  ;;  %v3587_v5 = vcombine.low %v7361_v62, %v7369_v23  ;;  %v3594_v44 = vrot.slane %v5956_v40, %v6627_v37 }
 0x1e8   : > { %v3301_v48 = vcombine.low %v3292_v30, %v3299_v57  ;;  %v3487_v9 = vcombine.low %v3478_v26, %v3485_v0  ;;  %v3494_v47 = vrot.slane %v3486_v41, %v6627_v37  ;;  %v3601_v14 = vrot.slane %v3585_v22, %v6627_v37  ;;  %v7744_v57 = vpop.permute.xlu1 %3647 }
 0x1e9   : > { %v3308_v45 = vrot.slane %v3300_v11, %v6627_v37  ;;  %v3608_v61 = vrot.slane %v3586_v54, %v6627_v37  ;;  %v3615_v59 = vrot.slane %v3587_v5, %v6627_v37  ;;  %v7733_v42 = vcombine.high %v7361_v62, %v7361_v62 }
 0x1ea   : > { %v3315_v38 = vrot.slane %v3301_v48, %v6627_v37  ;;  %v3501_v31 = vrot.slane %v3487_v9, %v6627_v37  ;;  %v3616_v24 = vcombine.low %v3594_v44, %v3601_v14  ;;  %v2677_v18 = vrot.slane %v7566_v52, %v6627_v37 }
 0x1eb   : > { %v3617_v7 = vcombine.low %v3608_v61, %v3615_v59  ;;  %v1537_v30 = vshrl.u32 %v7369_v23, 16  ;;  %v1542_v62 = vshll.u32 %v7733_v42, 16  ;;  %v1545_v40 = vcombine.low %v6633_v50, %v6640_v55 }
 0x1ec   : > { %v3316_v33 = vcombine.low %v3308_v45, %v3315_v38  ;;  %v3502_v17 = vcombine.low %v3494_v47, %v3501_v31  ;;  %v3624_v26 = vrot.slane %v3616_v24, %v6627_v37  ;;  %v5941_v52 = vcombine.high %v6633_v50, %v6640_v55  ;;  %v6263_v50 = vld [vmem:[%s8494_s2 + $0x10] ss:$0 sps:$4 sm:$0x33]   ;;  %v7779_v44 = vpop.permute.xlu1 %2487 }
 0x1ed   : > { %v3631_v6 = vrot.slane %v3617_v7, %v6627_v37  ;;  %v1547_v0 = vcombine.low %v6636_v51, %v6643_v56  ;;  %v3161_v11 = vrot.slane %v7647_v21, %v6627_v37  ;;  %v2999_v22 = vrot.slane %v7666_v16, %v6627_v37  ;;  %v7765_v51 = vpop.permute.xlu0 %2165 }
 0x1ee   : > { %3341 = vrot.lane.b32.xlu1 %v3316_v33, %s6402_s16  ;;  %3527 = vrot.lane.b32.xlu0 %v3502_v17, %s6404_s22  ;;  %v2684_v48 = vrot.slane %v2677_v18, %v6627_v37  ;;  %v1548_v54 = vcombine.low %v6650_v60, %v6683_v27  ;;  %v1555_v5 = vrot.slane %v1545_v40, %v6627_v37  ;;  %v3831_v59 = vsel %vm3829_vm3, %v6263_v50, 0 }
 0x1ef   : > { %v3632_v41 = vcombine.low %v3624_v26, %v3631_v6  ;;  %v1562_v9 = vrot.slane %v5941_v52, %v6627_v37  ;;  %v1544_v55 = vsel %vm6661_vm2, %v1537_v30, %v1542_v62  ;;  %v1569_v56 = vrot.slane %v1547_v0, %v6627_v37  ;;  %6100 = vmatpush3.bf16.msra.mxu0 %v3831_v59 }
 0x1f0   : > { %v1576_v60 = vrot.slane %v1548_v54, %v6627_v37  ;;  %v1627_v21 = vcombine.low %v6824_v4, %v6950_v20  ;;  %v3168_v16 = vrot.slane %v3161_v11, %v6627_v37  ;;  %v3006_v47 = vrot.slane %v2999_v22, %v6627_v37  ;;  %6164 = vmatpush3.bf16.msra.mxu1 %v3831_v59  ;;  %v3010_v18 = vpop.permute.xlu1 %3009 }
 0x1f1   : > { %v1577_v27 = vcombine.low %v1555_v5, %v1562_v9  ;;  %v3323_v45 = vrot.slane %v7369_v23, %v6627_v37  ;;  %v3509_v38 = vrot.slane %v1544_v55, %v6627_v37  ;;  %v2690_v23 = vpop.permute.xlu0 %2689  ;;  %v3639_v33 = vrot.slane %v7733_v42, %v6627_v37  ;;  %6129 = vmatprep.subr.bf16.mxu1 %v8513_v12 }
 0x1f2   : > { %3657 = vrot.lane.b32.xlu1 %v3632_v41, %s6403_s23  ;;  %2697 = vrot.lane.b32.xlu0 %v2684_v48, %s6399_s18  ;;  %v1578_v14 = vcombine.low %v1569_v56, %v1576_v60  ;;  %v1641_v61 = vrot.slane %v1627_v21, %v6627_v37 }
 0x1f3   : > { %v1585_v4 = vrot.slane %v1577_v27, %v6627_v37  ;;  %v3330_v31 = vrot.slane %v3323_v45, %v6627_v37  ;;  %v3516_v24 = vrot.slane %v3509_v38, %v6627_v37  ;;  %v3646_v6 = vrot.slane %v3639_v33, %v6627_v37 }
 0x1f4   : > { %v1592_v20 = vrot.slane %v1578_v14, %v6627_v37  ;;  %v1642_v17 = vcombine.low %v6844_v25, %v1641_v61  ;;  %v3334_v0 = vpop.permute.xlu1 %3333 }
 0x1f5   : > { %v3174_v62 = vpop.permute.xlu0 %3173 }
 0x1f6   : > { %3019 = vrot.lane.b32.xlu1 %v3006_v47, %s6401_s21  ;;  %3181 = vrot.lane.b32.xlu0 %v3168_v16, %s6400_s20  ;;  %v1593_v7 = vcombine.low %v1585_v4, %v1592_v20  ;;  %v3667_v42 = vsel %vm3661_vm4, %v1642_v17, %v7641_v39 }
 0x1f8   : > { %v3664_v26 = vsel %vm3661_vm4, %v1593_v7, %v7588_v36  ;;  %v3687_v36 = vsel %vm3683_vm5, %v3667_v42, %v7658_v19  ;;  %v3650_v11 = vpop.permute.xlu1 %3649 }
 0x1f9   : > { %v3685_v30 = vsel %vm3683_vm5, %v3664_v26, %v7553_v28  ;;  %v3702_v39 = vsel %vm3698_vm6, %v3687_v36, %v7676_v29 }
 0x1fa   : > { %3343 = vrot.lane.b32.xlu1 %v3330_v31, %s6402_s16  ;;  %3529 = vrot.lane.b32.xlu0 %v3516_v24, %s6404_s22  ;;  %v3700_v25 = vsel %vm3698_vm6, %v3685_v30, %v7627_v53  ;;  %v3716_v52 = vsel %vm407_vm1, %v3702_v39, %v3010_v18  ;;  %v8520_v30 = vld [vmem:[#allocation6_spill] sm:$0xff]  ;;  %v8521_v39 = vld [vmem:[#allocation8_spill] sm:$0xff] }
 0x1fb   : > { %v3714_v40 = vsel %vm407_vm1, %v3700_v25, %v7690_v15  ;;  %v3731_v29 = vsel %vm3727_vm7, %v3716_v52, %v7707_v13  ;;  %v1676_v13 = vcombine.low %v6970_v43, %v6997_v1 }
 0x1fc   : > { %v3729_v28 = vsel %vm3727_vm7, %v3714_v40, %v7612_v63  ;;  %v3746_v41 = vsel %vm3742_vm8, %v3731_v29, %v3334_v0  ;;  %v1822_v29 = vcombine.low %v7435_v2, %v7456_v46 }
 0x1fd   : > { %v3744_v53 = vsel %vm3742_vm8, %v3729_v28, %v7721_v10  ;;  %v1690_v48 = vrot.slane %v1676_v13, %v6627_v37 }
 0x1fe   : > { %3659 = vrot.lane.b32.xlu1 %v3646_v6, %s6403_s23  ;;  %v3759_v15 = vsel %vm3757_vm9, %v3744_v53, %v7735_v8  ;;  %v8519_v6 = vld [vmem:[#allocation7_spill] sm:$0xff] }
 0x1ff   : > { %v3774_v19 = vsel %vm3772_vm10, %v3759_v15, %v7744_v57  ;;  %v1691_v9 = vcombine.low %v6993_v34, %v1690_v48  ;;  %v1773_v25 = vcombine.low %v8520_v30, %v8519_v6 }
 0x200   : > { %6102 = vmatmul.mubr.msk.bf16.vlgmr.msra.gmra.mrb[36].mxu0 %vm3814_vm11, %v3774_v19 }
 0x201   : > { %6105 = vmatprep.mubr.msk.bf16.mxu0 %vm6395_vm0, %v8513_v12  ;;  %v3670_v50 = vsel %vm3661_vm4, %v1691_v9, %v7765_v51  ;;  %v1781_v36 = vrot.slane %v1773_v25, %v6627_v37 }
 0x202   : > { %v3520_v63 = vpop.permute.xlu0 %3519  ;;  %v2490_v8 = vpop.permute.xlu1 %2489  ;;  %v3689_v56 = vsel %vm3683_vm5, %v3670_v50, %v7779_v44  ;;  %v1725_v44 = vcombine.low %v7125_v35, %v7148_v32 }
 0x203   : > { %v3761_v10 = vsel %vm3757_vm9, %v3746_v41, %v3520_v63  ;;  %v3704_v27 = vsel %vm3698_vm6, %v3689_v56, %v2690_v23  ;;  %v1789_v28 = vcombine.low %v1781_v36, %v8521_v39 }
 0x204   : > { %v3776_v22 = vsel %vm3772_vm10, %v3761_v10, %v3650_v11  ;;  %v1739_v61 = vrot.slane %v1725_v44, %v6627_v37 }
 0x206   : > { %v2168_v57 = vpop.permute.xlu0 %2167  ;;  %v1740_v4 = vcombine.low %v7156_v49, %v1739_v61 }
 0x207   : > { %v3012_v54 = vpop.permute.xlu1 %3011 }
 0x208   : > { %6106 = vmatmul.mubr.msk.bf16.gmra.mrb[40].mxu0 %vm3814_vm11, %v3776_v22  ;;  %v3718_v21 = vsel %vm407_vm1, %v3704_v27, %v3012_v54  ;;  %v3673_v23 = vsel %vm3661_vm4, %v1740_v4, %v2168_v57  ;;  %v1830_v22 = vrot.slane %v1822_v29, %v6627_v37  ;;  %v8522_v54 = vld [vmem:[#allocation9_spill] sm:$0xff]  ;;  %v6405_v29 = vmov 1983009808  }
 0x209   : > { %6109 = vmatprep.mubr.msk.bf16.mxu0 %vm6395_vm0, %v8513_v12  ;;  %v3733_v1 = vsel %vm3727_vm7, %v3718_v21, %v3174_v62  ;;  %v3691_v31 = vsel %vm3683_vm5, %v3673_v23, %v2490_v8  ;;  %v3941_v27 = vld [vmem:[%s8495_s3] sm:$0x3]  ;;  %v1845_v21 = vrot.slane %v7044_v58, %v6627_v37 }
 0x20a   : > { %v2692_v5 = vpop.permute.xlu0 %2691 }
 0x20b   : > { %v3706_v24 = vsel %vm3698_vm6, %v3691_v31, %v2692_v5  ;;  %v1838_v5 = vcombine.low %v1830_v22, %v8522_v54 }
 0x20e   : > { %v3336_v55 = vpop.permute.xlu1 %3335 }
 0x20f   : > { %v3748_v16 = vsel %vm3742_vm8, %v3733_v1, %v3336_v55 }
 0x212   : > { %v3176_v60 = vpop.permute.xlu0 %3175 }
 0x214   : > { %v3652_v43 = vpop.permute.xlu1 %3651 }
 0x21e   : > { %v2492_v51 = vpop.permute.xlu1 %2491 }
 0x220   : > { %v3522_v47 = vpop.permute.xlu0 %3521 }
 0x221   : > { %v3763_v34 = vsel %vm3757_vm9, %v3748_v16, %v3522_v47 }
 0x222   : > { %v3778_v45 = vsel %vm3772_vm10, %v3763_v34, %v3652_v43  ;;  %v5146_v43 = vsel %vm3829_vm3, %v3941_v27, 0 }
 0x223   : > { %6110 = vmatmul.mubr.msk.bf16.gmra.mrb[44].mxu0 %vm3814_vm11, %v3778_v45  ;;  %v1852_v45 = vrot.slane %v1845_v21, %v6627_v37 }
 0x224   : > { %v2170_v38 = vpop.permute.xlu0 %2169 }
 0x225   : > { %v3014_v14 = vpop.permute.xlu1 %3013  ;;  %v3676_v0 = vsel %vm3661_vm4, %v1789_v28, %v2170_v38 }
 0x226   : > { %v3720_v7 = vsel %vm407_vm1, %v3706_v24, %v3014_v14  ;;  %v3693_v15 = vsel %vm3683_vm5, %v3676_v0, %v2492_v51 }
 0x227   : > { %v3735_v35 = vsel %vm3727_vm7, %v3720_v7, %v3176_v60 }
 0x22a   : > { %v3178_v59 = vpop.permute.xlu0 %3177 }
 0x22b   : > { %v3338_v20 = vpop.permute.xlu1 %3337 }
 0x22c   : > { %v3750_v32 = vsel %vm3742_vm8, %v3735_v35, %v3338_v20 }
 0x22e   : > { %v2694_v33 = vpop.permute.xlu0 %2693 }
 0x22f   : > { %v3708_v19 = vsel %vm3698_vm6, %v3693_v15, %v2694_v33 }
 0x230   : > { %v3654_v17 = vpop.permute.xlu1 %3653 }
 0x237   : > { %v2494_v42 = vpop.permute.xlu1 %2493 }
 0x239   : > { %v3524_v18 = vpop.permute.xlu0 %3523 }
 0x23a   : > { %v3765_v26 = vsel %vm3757_vm9, %v3750_v32, %v3524_v18  ;;  %v6279_v18 = vld.sshfl [vmem:[%s6568_s24 + $0x8] sm:$0x33 pattern:$0x75316420] }
 0x23b   : > { %v3780_v49 = vsel %vm3772_vm10, %v3765_v26, %v3654_v17  ;;  %v3949_v26 = vcombine.high %v6279_v18, %v6279_v18 }
 0x23c   : > { %6114 = vmatmul.mubr.msk.bf16.vlgmr.msra.gmra.mrb[0].mxu1 %vm3814_vm11, %v3780_v49  ;;  %v7913_v49 = vld.sshfl [vmem:[%s6568_s24 + $0xc] sm:$0x33 pattern:$0x75316420] }
 0x23d   : > { %6117 = vmatprep.mubr.msk.bf16.mxu1 %vm6395_vm0, %v8513_v12  ;;  %v2172_v62 = vpop.permute.xlu0 %2171  ;;  %6130 = vmatpush3.bf16.msra.mxu1 %v5146_v43  ;;  %v3963_v6 = vrot.slane %v3949_v26, %v6627_v37  ;;  %v7918_v25 = vrot.slane %v7913_v49, %v6627_v37 }
 0x23e   : > { %v3016_v40 = vpop.permute.xlu1 %3015  ;;  %v3679_v2 = vsel %vm3661_vm4, %v1838_v5, %v2172_v62  ;;  %v7938_v5 = vld [vmem:[%s8497_s5] ss:$0 sm:$0xff] }
 0x23f   : > { %v3722_v63 = vsel %vm407_vm1, %v3708_v19, %v3016_v40  ;;  %v3695_v50 = vsel %vm3683_vm5, %v3679_v2, %v2494_v42  ;;  %v3956_v42 = vrot.slane %v6279_v18, %v6627_v37  ;;  %v3965_v40 = vcombine.high %v3963_v6, %v3963_v6  ;;  %v6017_v19 = vld [vmem:[%s8498_s6] ss:$0 sm:$0xff] }
 0x240   : > { %v3737_v11 = vsel %vm3727_vm7, %v3722_v63, %v3178_v59  ;;  %v4284_v36 = vshll.u32 %v3963_v6, 16  ;;  %v4308_v28 = vshll.u32 %v7918_v25, 16  ;;  %v4783_v63 = vunpack.c.l.s4 %v6405_v29 }
 0x241   : > { %v2696_v53 = vpop.permute.xlu0 %2695  ;;  %v3964_v30 = vcombine.high %v3956_v42, %v3956_v42  ;;  %v4279_v62 = vshrl.u32 %v3956_v42, 16  ;;  %v4300_v0 = vshll.u32 %v3965_v40, 16  ;;  %v4303_v15 = vshrl.u32 %v3965_v40, 16 }
 0x242   : > { %v3710_v56 = vsel %vm3698_vm6, %v3695_v50, %v2696_v53  ;;  %v4287_v53 = vshrl.u32 %v3963_v6, 16  ;;  %v4781_v22 = vcombine.high %v6017_v19, %v6017_v19 }
 0x243   : > { %v4295_v39 = vshrl.u32 %v3964_v30, 16 }
 0x244   : > { %v3656_v52 = vpop.permute.xlu1 %3655 }
 0x247   : > { %v3180_v41 = vpop.permute.xlu0 %3179 }
 0x248   : > { %v3340_v10 = vpop.permute.xlu1 %3339 }
 0x249   : > { %v3752_v8 = vsel %vm3742_vm8, %v3737_v11, %v3340_v10  ;;  %v4310_v10 = vsel %vm6661_vm2, %v4303_v15, %v4308_v28  ;;  %v4302_v11 = vsel %vm6661_vm2, %v4295_v39, %v4300_v0 }
 0x24c   : > { %v2496_v57 = vpop.permute.xlu1 %2495 }
 0x253   : > { %v3526_v13 = vpop.permute.xlu0 %3525 }
 0x254   : > { %v3767_v48 = vsel %vm3757_vm9, %v3752_v8, %v3526_v13  ;;  %v4784_v8 = vunpack.c.0.s8 %v4783_v63 }
 0x255   : > { %v3782_v9 = vsel %vm3772_vm10, %v3767_v48, %v3656_v52  ;;  %v3018_v46 = vpop.permute.xlu1 %3017  ;;  %v4292_v52 = vshll.u32 %v3964_v30, 16  ;;  %v8523_v48 = vld [vmem:[#allocation5_spill] sm:$0xff] }
 0x256   : > { %6118 = vmatmul.mubr.msk.bf16.gmra.mrb[4].mxu1 %vm3814_vm11, %v3782_v9  ;;  %v3724_v60 = vsel %vm407_vm1, %v3710_v56, %v3018_v46  ;;  %v7933_v54 = vsub.s32 %v4784_v8, %v8523_v48  ;;  %v4728_v9 = vunpack.c.l.bf16 %v4302_v11  ;;  %v4729_v46 = vunpack.c.l.bf16 %v4310_v10 }
 0x257   : > { %6121 = vmatprep.mubr.msk.bf16.mxu1 %vm6395_vm0, %v8513_v12  ;;  %v2174_v55 = vpop.permute.xlu0 %2173  ;;  %v3739_v1 = vsel %vm3727_vm7, %v3724_v60, %v3180_v41  ;;  %v4286_v41 = vsel %vm6661_vm2, %v4279_v62, %v4284_v36  ;;  %v4294_v13 = vsel %vm6661_vm2, %v4287_v53, %v4292_v52 }
 0x258   : > { %v3682_v51 = vsel %vm3661_vm4, %v1852_v45, %v2174_v55  ;;  %v4727_v2 = vunpack.c.l.bf16 %v4294_v13  ;;  %v7941_v50 = vrot.slane %v6017_v19, %v7933_v54  ;;  %v7944_v55 = vrot.slane %v4781_v22, %v7933_v54 }
 0x259   : > { %v3697_v58 = vsel %vm3683_vm5, %v3682_v51, %v2496_v57  ;;  %v4726_v57 = vunpack.c.l.bf16 %v4286_v41 }
 0x25a   : > { %v7949_v21 = vcombine.high %v7941_v50, %v7941_v50  ;;  %v7953_v43 = vcombine.high %v7944_v55, %v7944_v55 }
 0x25c   : > { %v4803_v51 = vadd.f32 %v7949_v21, %v4727_v2 }
 0x260   : > { %v3342_v16 = vpop.permute.xlu1 %3341  ;;  %v3528_v47 = vpop.permute.xlu0 %3527 }
 0x261   : > { %v3754_v34 = vsel %vm3742_vm8, %v3739_v1, %v3342_v16  ;;  %v4802_v1 = vadd.f32 %v7941_v50, %v4726_v57 }
 0x262   : > { %v3769_v38 = vsel %vm3757_vm9, %v3754_v34, %v3528_v47  ;;  %v4804_v47 = vadd.f32 %v7944_v55, %v4728_v9 }
 0x264   : > { %v3658_v44 = vpop.permute.xlu1 %3657  ;;  %v2698_v14 = vpop.permute.xlu0 %2697 }
 0x265   : > { %v3784_v61 = vsel %vm3772_vm10, %v3769_v38, %v3658_v44  ;;  %v3712_v59 = vsel %vm3698_vm6, %v3697_v58, %v2698_v14  ;;  %v4805_v44 = vadd.f32 %v7953_v43, %v4729_v46 }
 0x266   : > { %6122 = vmatmul.mubr.msk.bf16.gmra.mrb[8].mxu1 %vm3814_vm11, %v3784_v61  ;;  %v4900_v61 = vcombine.low %v4802_v1, %v4803_v51  ;;  %v6283_v1 = vld.sshfl [vmem:[%s6568_s24 + $0x18] sm:$0x33 pattern:$0x75316420]  ;;  %v3973_v51 = vcombine.high %v7913_v49, %v7913_v49 }
 0x267   : > { %6125 = vmatprep.mubr.msk.bf16.mxu1 %vm6395_vm0, %v8513_v12  ;;  %v4901_v58 = vcombine.low %v4804_v47, %v4805_v44  ;;  %v6284_v47 = vld.sshfl [vmem:[%s6568_s24 + $0x1c] sm:$0x33 pattern:$0x75316420] }
 0x268   : > { %v3020_v4 = vpop.permute.xlu1 %3019  ;;  %v3182_v20 = vpop.permute.xlu0 %3181 }
 0x269   : > { %v3726_v23 = vsel %vm407_vm1, %v3712_v59, %v3020_v4  ;;  %v7961_v4 = vrot.slane %v4900_v61, %v7933_v54 }
 0x26a   : > { %v3741_v33 = vsel %vm3727_vm7, %v3726_v23, %v3182_v20  ;;  %v7964_v20 = vrot.slane %v4901_v58, %v7933_v54 }
 0x26c   : > { %v3344_v31 = vpop.permute.xlu1 %3343  ;;  %v3530_v7 = vpop.permute.xlu0 %3529 }
 0x26d   : > { %v3756_v24 = vsel %vm3742_vm8, %v3741_v33, %v3344_v31 }
 0x26e   : > { %v3771_v35 = vsel %vm3757_vm9, %v3756_v24, %v3530_v7  ;;  %v4916_v24 = vcombine.low %v7961_v4, %v7964_v20 }
 0x270   : > { %v3660_v17 = vpop.permute.xlu1 %3659 }
 0x271   : > { %v3786_v32 = vsel %vm3772_vm10, %v3771_v35, %v3660_v17 }
 0x272   : > { %6126 = vmatmul.mubr.msk.bf16.gmra.mrb[12].mxu1 %vm3814_vm11, %v3786_v32 }
 0x273   : > { %6131 = vmatprep.mubr.msk.bf16.mxu1 %vm6395_vm0, %v8513_v12 }
 0x2d3   : > { %v3867_v56 = vpop.f32.mrb[36].mxu0 }
 0x2d4   : > { %v3868_v60 = vadd.f32 %v7938_v5, %v3867_v56  ;;  %v6103_v27 = vpop.f32.mrb[37].mxu0 }
 0x2d5   : > { %v3870_v16 = vpop.f32.mrb[38].mxu0  ;;  %v6282_v27 = vld.sshfl [vmem:[%s6568_s24 + $0x14] sm:$0x33 pattern:$0x75316420] }
 0x2d6   : > { %v3871_v34 = vadd.f32 %v7938_v5, %v3870_v16  ;;  %v6104_v45 = vpop.f32.mrb[39].mxu0  ;;  %v3921_v38 = vmax.f32 %v3868_v60, 0.0  ;;  %v6281_v60 = vld.sshfl [vmem:[%s6568_s24 + $0x10] sm:$0x33 pattern:$0x75316420] }
 0x2d7   : > { %v3997_v44 = vcombine.high %v6281_v60, %v6281_v60 }
 0x2d8   : > { %v3922_v14 = vmax.f32 %v3871_v34, 0.0 }
 0x2da   : > { %v3934_v59 = vpack.c.bf16 %v3922_v14, %v3921_v38  ;;  %v4021_v14 = vcombine.high %v6282_v27, %v6282_v27 }
 0x2db   : > { %v3875_v23 = vpop.f32.mrb[40].mxu0 }
 0x2dc   : > { %6132 = vmatmul.mubr.msk.bf16.vlgmr.msra.gmra.mrb[16].mxu1 %vm3661_vm4, %v3934_v59  ;;  %v3876_v31 = vadd.f32 %v7938_v5, %v3875_v23  ;;  %v6107_v33 = vpop.f32.mrb[41].mxu0  ;;  %v4004_v59 = vrot.slane %v6281_v60, %v6627_v37  ;;  %v8001_v23 = vrot.slane %v6282_v27, %v6627_v37 }
 0x2dd   : > { %v3878_v7 = vpop.f32.mrb[42].mxu0  ;;  %6135 = vmatprep.mubr.msk.bf16.mxu1 %vm6395_vm0, %v8513_v12  ;;  %v8004_v33 = vrot.slane %v6283_v1, %v6627_v37 }
 0x2de   : > { %v3879_v17 = vadd.f32 %v7938_v5, %v3878_v7  ;;  %v6108_v35 = vpop.f32.mrb[43].mxu0  ;;  %v3923_v32 = vmax.f32 %v3876_v31, 0.0  ;;  %v4045_v31 = vcombine.high %v6283_v1, %v6283_v1  ;;  %v4069_v7 = vcombine.high %v6284_v47, %v6284_v47 }
 0x2df   : > { %v3987_v35 = vrot.slane %v3973_v51, %v6627_v37 }
 0x2e0   : > { %v3924_v18 = vmax.f32 %v3879_v17, 0.0 }
 0x2e2   : > { %v3935_v26 = vpack.c.bf16 %v3924_v18, %v3923_v32  ;;  %v3988_v32 = vcombine.high %v7918_v25, %v7918_v25  ;;  %v4011_v18 = vrot.slane %v3997_v44, %v6627_v37 }
 0x2e4   : > { %6136 = vmatmul.mubr.msk.bf16.gmra.mrb[20].mxu1 %vm3661_vm4, %v3935_v26  ;;  %v4012_v26 = vcombine.high %v4004_v59, %v4004_v59 }
 0x2e5   : > { %6139 = vmatprep.mubr.msk.bf16.mxu1 %vm6395_vm0, %v8513_v12 }
 0x2e6   : > { %v4352_v44 = vshrl.u32 %v4012_v26, 16 }
 0x2f6   : > { %v3883_v42 = vpop.f32.mrb[44].mxu0 }
 0x2f7   : > { %v3884_v6 = vadd.f32 %v7938_v5, %v3883_v42  ;;  %v6111_v30 = vpop.f32.mrb[45].mxu0  ;;  %v8011_v42 = vrot.slane %v4021_v14, %v6627_v37 }
 0x2f8   : > { %v3886_v62 = vpop.f32.mrb[46].mxu0 }
 0x2f9   : > { %v3887_v40 = vadd.f32 %v7938_v5, %v3886_v62  ;;  %v6112_v36 = vpop.f32.mrb[47].mxu0  ;;  %v3925_v39 = vmax.f32 %v3884_v6, 0.0  ;;  %v8014_v6 = vrot.slane %v6284_v47, %v6627_v37  ;;  %v8018_v62 = vcombine.high %v8001_v23, %v8001_v23 }
 0x2fa   : > { %v8021_v36 = vld.sshfl [vmem:[%s6568_s24 + $0x20] sm:$0x33 pattern:$0x75316420]  ;;  %v4349_v47 = vshll.u32 %v4012_v26, 16 }
 0x2fb   : > { %v3926_v28 = vmax.f32 %v3887_v40, 0.0  ;;  %v4336_v40 = vshrl.u32 %v4004_v59, 16 }
 0x2fd   : > { %v3936_v53 = vpack.c.bf16 %v3926_v28, %v3925_v39  ;;  %v8024_v39 = vld.sshfl [vmem:[%s6568_s24 + $0x24] sm:$0x33 pattern:$0x75316420]  ;;  %v8027_v28 = vrot.slane %v4045_v31, %v6627_v37 }
 0x2ff   : > { %6140 = vmatmul.mubr.msk.bf16.gmra.mrb[24].mxu1 %vm3661_vm4, %v3936_v53  ;;  %v8031_v53 = vcombine.high %v8004_v33, %v8004_v33 }
 0x300   : > { %6143 = vmatprep.mubr.msk.bf16.mxu1 %vm6395_vm0, %v8513_v12 }
 0x30f   : > { %v3891_v52 = vpop.f32.mrb[0].mxu1 }
 0x310   : > { %v3892_v0 = vadd.f32 %v7938_v5, %v3891_v52  ;;  %v6115_v15 = vpop.f32.mrb[1].mxu1  ;;  %v8034_v52 = vrot.slane %v4069_v7, %v6627_v37 }
 0x311   : > { %v3894_v19 = vpop.f32.mrb[2].mxu1  ;;  %v3989_v15 = vcombine.high %v3987_v35, %v3987_v35 }
 0x312   : > { %v3895_v29 = vadd.f32 %v7938_v5, %v3894_v19  ;;  %v6116_v63 = vpop.f32.mrb[3].mxu1  ;;  %v3927_v41 = vmax.f32 %v3892_v0, 0.0  ;;  %v4393_v0 = vshrl.u32 %v8004_v33, 16  ;;  %v4311_v19 = vshrl.u32 %v7918_v25, 16 }
 0x313   : > { %v4319_v63 = vshrl.u32 %v3987_v35, 16  ;;  %v4409_v33 = vshrl.u32 %v8031_v53, 16 }
 0x314   : > { %v3928_v10 = vmax.f32 %v3895_v29, 0.0  ;;  %v4316_v29 = vshll.u32 %v3987_v35, 16 }
 0x316   : > { %v3937_v11 = vpack.c.bf16 %v3928_v10, %v3927_v41  ;;  %v8043_v41 = vcombine.high %v8014_v6, %v8014_v6  ;;  %v4324_v10 = vshll.u32 %v3988_v32, 16 }
 0x318   : > { %6144 = vmatmul.mubr.msk.bf16.gmra.mrb[28].mxu1 %vm3661_vm4, %v3937_v11  ;;  %v4327_v11 = vshrl.u32 %v3988_v32, 16  ;;  %v4326_v25 = vsel %vm6661_vm2, %v4319_v63, %v4324_v10  ;;  %v4368_v32 = vshrl.u32 %v8001_v23, 16 }
 0x319   : > { %6147 = vmatprep.mubr.msk.bf16.mxu1 %vm6395_vm0, %v8513_v12  ;;  %v4731_v1 = vunpack.c.l.bf16 %v4326_v25 }
 0x329   : > { %v3899_v22 = vpop.f32.mrb[4].mxu1 }
 0x32a   : > { %v3900_v8 = vadd.f32 %v7938_v5, %v3899_v22  ;;  %v6119_v13 = vpop.f32.mrb[5].mxu1  ;;  %v4341_v22 = vshll.u32 %v4011_v18, 16 }
 0x32b   : > { %v3902_v57 = vpop.f32.mrb[6].mxu1  ;;  %v4318_v13 = vsel %vm6661_vm2, %v4311_v19, %v4316_v29 }
 0x32c   : > { %v3903_v48 = vadd.f32 %v7938_v5, %v3902_v57  ;;  %v6120_v9 = vpop.f32.mrb[7].mxu1  ;;  %v3929_v2 = vmax.f32 %v3900_v8, 0.0  ;;  %v4332_v57 = vshll.u32 %v3989_v15, 16 }
 0x32d   : > { %v4344_v9 = vshrl.u32 %v4011_v18, 16 }
 0x32e   : > { %v3930_v46 = vmax.f32 %v3903_v48, 0.0  ;;  %v4013_v48 = vcombine.high %v4011_v18, %v4011_v18  ;;  %v4334_v27 = vsel %vm6661_vm2, %v4327_v11, %v4332_v57  ;;  %v4373_v18 = vshll.u32 %v8011_v42, 16 }
 0x32f   : > { %v4732_v51 = vunpack.c.l.bf16 %v4334_v27  ;;  %v4376_v57 = vshrl.u32 %v8011_v42, 16  ;;  %v4401_v27 = vshrl.u32 %v8027_v28, 16 }
 0x330   : > { %v3938_v56 = vpack.c.bf16 %v3930_v46, %v3929_v2  ;;  %v4343_v46 = vsel %vm6661_vm2, %v4336_v40, %v4341_v22  ;;  %v4360_v7 = vshrl.u32 %v4013_v48, 16  ;;  %v4375_v29 = vsel %vm6661_vm2, %v4368_v32, %v4373_v18 }
 0x331   : > { %v4808_v31 = vadd.f32 %v7944_v55, %v4732_v51  ;;  %v4737_v11 = vunpack.c.l.bf16 %v4375_v29  ;;  %v4425_v32 = vshrl.u32 %v8014_v6, 16  ;;  %v4430_v18 = vshll.u32 %v8034_v52, 16 }
 0x332   : > { %6148 = vmatmul.mubr.msk.bf16.gmra.mrb[32].mxu1 %vm3661_vm4, %v3938_v56  ;;  %v4730_v56 = vunpack.c.l.bf16 %v4318_v13 }
 0x333   : > { %6151 = vmatprep.mubr.msk.bf16.mxu1 %vm6395_vm0, %v8513_v12  ;;  %v4432_v29 = vsel %vm6661_vm2, %v4425_v32, %v4430_v18 }
 0x339   : > { %v3907_v16 = vpop.f32.mrb[8].mxu1 }
 0x33a   : > { %v3908_v34 = vadd.f32 %v7938_v5, %v3907_v16  ;;  %v6123_v45 = vpop.f32.mrb[9].mxu1  ;;  %v4733_v16 = vunpack.c.l.bf16 %v4343_v46 }
 0x33b   : > { %v3910_v38 = vpop.f32.mrb[10].mxu1 }
 0x33c   : > { %v3911_v61 = vadd.f32 %v7938_v5, %v3910_v38  ;;  %v6124_v58 = vpop.f32.mrb[11].mxu1  ;;  %v3931_v17 = vmax.f32 %v3908_v34, 0.0  ;;  %v4807_v38 = vadd.f32 %v7949_v21, %v4731_v1  ;;  %v4809_v14 = vadd.f32 %v7953_v43, %v4733_v16 }
 0x33d   : > { %v4357_v58 = vshll.u32 %v4013_v48, 16  ;;  %v4381_v48 = vshll.u32 %v8018_v62, 16 }
 0x33e   : > { %v3932_v49 = vmax.f32 %v3911_v61, 0.0  ;;  %v4351_v61 = vsel %vm6661_vm2, %v4344_v9, %v4349_v47  ;;  %v4918_v26 = vcombine.low %v4808_v31, %v4809_v14  ;;  %v4384_v9 = vshrl.u32 %v8018_v62, 16 }
 0x33f   : > { %v4359_v35 = vsel %vm6661_vm2, %v4352_v44, %v4357_v58  ;;  %v4734_v40 = vunpack.c.l.bf16 %v4351_v61 }
 0x340   : > { %v3939_v30 = vpack.c.bf16 %v3932_v49, %v3931_v17  ;;  %v4365_v17 = vshll.u32 %v8001_v23, 16  ;;  %v4735_v15 = vunpack.c.l.bf16 %v4359_v35  ;;  %v4037_v23 = vcombine.high %v8011_v42, %v8011_v42 }
 0x341   : > { %v8076_v10 = vrot.slane %v4918_v26, %v7933_v54  ;;  %v4810_v22 = vadd.f32 %v7941_v50, %v4734_v40  ;;  %v4406_v42 = vshll.u32 %v8031_v53, 16  ;;  %v4438_v40 = vshll.u32 %v8043_v41, 16 }
 0x342   : > { %6152 = vmatmul.mubr.msk.bf16.gmra.mrb[36].mxu1 %vm3661_vm4, %v3939_v30  ;;  %v4367_v30 = vsel %vm6661_vm2, %v4360_v7, %v4365_v17  ;;  %v4389_v46 = vshll.u32 %v4037_v23, 16  ;;  %v4422_v17 = vshll.u32 %v8014_v6, 16  ;;  %v4093_v6 = vcombine.high %v8021_v36, %v8021_v36 }
 0x343   : > { %6155 = vmatprep.mubr.msk.bf16.mxu1 %vm6395_vm0, %v8513_v12  ;;  %v4736_v63 = vunpack.c.l.bf16 %v4367_v30  ;;  %v4433_v30 = vshrl.u32 %v8034_v52, 16  ;;  %vm5719_vm0 = vcmask 128000  }
 0x344   : > { %v4391_v62 = vsel %vm6661_vm2, %v4384_v9, %v4389_v46 }
 0x345   : > { %v3915_v8 = vpop.f32.mrb[12].mxu1  ;;  %v4812_v13 = vadd.f32 %v7944_v55, %v4736_v63  ;;  %v4739_v51 = vunpack.c.l.bf16 %v4391_v62 }
 0x346   : > { %v3916_v12 = vadd.f32 %v7938_v5, %v3915_v8  ;;  %v6127_v2 = vpop.f32.mrb[13].mxu1  ;;  %v4806_v5 = vadd.f32 %v7941_v50, %v4730_v56  ;;  %v4811_v8 = vadd.f32 %v7949_v21, %v4735_v15  ;;  %v4383_v56 = vsel %vm6661_vm2, %v4376_v57, %v4381_v48 }
 0x347   : > { %v3918_v60 = vpop.f32.mrb[14].mxu1  ;;  %v4813_v2 = vadd.f32 %v7953_v43, %v4737_v11  ;;  %v4738_v47 = vunpack.c.l.bf16 %v4383_v56  ;;  %v4815_v58 = vadd.f32 %v7949_v21, %v4739_v51  ;;  %v4124_v56 = vrot.slane %v8024_v39, %v6627_v37 }
 0x348   : > { %v3933_v34 = vmax.f32 %v3916_v12, 0.0  ;;  %v6128_v45 = vpop.f32.mrb[15].mxu1  ;;  %v4917_v49 = vcombine.low %v4806_v5, %v4807_v38  ;;  %v4934_v25 = vcombine.low %v4810_v22, %v4811_v8  ;;  %v4398_v60 = vshll.u32 %v8027_v28, 16 }
 0x349   : > { %v4935_v1 = vcombine.low %v4812_v13, %v4813_v2  ;;  %v4408_v45 = vsel %vm6661_vm2, %v4401_v27, %v4406_v42  ;;  %v4061_v5 = vcombine.high %v8027_v28, %v8027_v28  ;;  %v4814_v61 = vadd.f32 %v7941_v50, %v4738_v47 }
 0x34a   : > { %v3940_v59 = vpack.c.bf16 %v3933_v34, %v3933_v34  ;;  %v8069_v19 = vrot.slane %v4917_v49, %v7933_v54  ;;  %v8093_v16 = vrot.slane %v4934_v25, %v7933_v54  ;;  %v4400_v34 = vsel %vm6661_vm2, %v4393_v0, %v4398_v60 }
 0x34b   : > { %v8106_v44 = vrot.slane %v4935_v1, %v7933_v54  ;;  %v4740_v38 = vunpack.c.l.bf16 %v4400_v34  ;;  %v4741_v14 = vunpack.c.l.bf16 %v4408_v45  ;;  %v4417_v0 = vshrl.u32 %v4061_v5, 16 }
 0x34c   : > { %6156 = vmatmul.mubr.msk.bf16.gmra.mrb[40].mxu1 %vm3661_vm4, %v3940_v59  ;;  %v4933_v12 = vcombine.low %v8069_v19, %v8076_v10  ;;  %v4414_v59 = vshll.u32 %v4061_v5, 16  ;;  %v4951_v49 = vcombine.low %v4814_v61, %v4815_v58  ;;  %v4440_v22 = vsel %vm6661_vm2, %v4433_v30, %v4438_v40 }
 0x34d   : > { %v4950_v31 = vcombine.low %v8093_v16, %v8106_v44  ;;  %v4816_v7 = vadd.f32 %v7944_v55, %v4740_v38  ;;  %v4817_v28 = vadd.f32 %v7953_v43, %v4741_v14  ;;  %v4424_v26 = vsel %vm6661_vm2, %v4417_v0, %v4422_v17 }
 0x34e   : > { %v4416_v35 = vsel %vm6661_vm2, %v4409_v33, %v4414_v59  ;;  %v8125_v15 = vrot.slane %v4951_v49, %v7933_v54  ;;  %v4743_v23 = vunpack.c.l.bf16 %v4424_v26  ;;  %v4744_v8 = vunpack.c.l.bf16 %v4432_v29 }
 0x34f   : > { %v4952_v53 = vcombine.low %v4816_v7, %v4817_v28  ;;  %v4742_v63 = vunpack.c.l.bf16 %v4416_v35  ;;  %v4100_v13 = vrot.slane %v8021_v36, %v6627_v37  ;;  %v4745_v57 = vunpack.c.l.bf16 %v4440_v22 }
 0x350   : > { %v4819_v9 = vadd.f32 %v7949_v21, %v4743_v23  ;;  %v4117_v2 = vcombine.high %v8024_v39, %v8024_v39  ;;  %v4820_v46 = vadd.f32 %v7944_v55, %v4744_v8  ;;  %v4107_v36 = vrot.slane %v4093_v6, %v6627_v37 }
 0x351   : > { %v8132_v11 = vrot.slane %v4952_v53, %v7933_v54  ;;  %v4818_v48 = vadd.f32 %v7941_v50, %v4742_v63  ;;  %v4821_v60 = vadd.f32 %v7953_v43, %v4745_v57  ;;  %v4108_v42 = vcombine.high %v4100_v13, %v4100_v13 }
 0x352   : > { %v4131_v47 = vrot.slane %v4117_v2, %v6627_v37  ;;  %v4450_v34 = vshrl.u32 %v4100_v13, 16  ;;  %v4132_v45 = vcombine.high %v4124_v56, %v4124_v56  ;;  %v4085_v39 = vcombine.high %v8034_v52, %v8034_v52 }
 0x353   : > { %v4967_v25 = vcombine.low %v8125_v15, %v8132_v11  ;;  %v4968_v27 = vcombine.low %v4818_v48, %v4819_v9  ;;  %v4969_v1 = vcombine.low %v4820_v46, %v4821_v60  ;;  %v4109_v5 = vcombine.high %v4107_v36, %v4107_v36 }
 0x354   : > { %v4441_v38 = vshrl.u32 %v8043_v41, 16  ;;  %v4455_v14 = vshll.u32 %v4107_v36, 16  ;;  %v4458_v58 = vshrl.u32 %v4107_v36, 16  ;;  %v4463_v33 = vshll.u32 %v4108_v42, 16 }
 0x355   : > { %v8150_v62 = vrot.slane %v4968_v27, %v7933_v54  ;;  %v8154_v51 = vrot.slane %v4969_v1, %v7933_v54  ;;  %v4466_v59 = vshrl.u32 %v4108_v42, 16  ;;  %v4446_v0 = vshll.u32 %v4085_v39, 16 }
 0x356   : > { %v4457_v7 = vsel %vm6661_vm2, %v4450_v34, %v4455_v14  ;;  %v4471_v28 = vshll.u32 %v4109_v5, 16  ;;  %v4133_v17 = vcombine.high %v4131_v47, %v4131_v47  ;;  %v4465_v49 = vsel %vm6661_vm2, %v4458_v58, %v4463_v33  ;;  %v6287_v58 = vld.sshfl [vmem:[%s6568_s24 + $0x28] sm:$0x33 pattern:$0x75316420] }
 0x357   : > { %v4984_v61 = vcombine.low %v8150_v62, %v8154_v51  ;;  %v4747_v52 = vunpack.c.l.bf16 %v4457_v7  ;;  %v4474_v35 = vshrl.u32 %v4109_v5, 16  ;;  %v4479_v32 = vshll.u32 %v4124_v56, 16 }
 0x358   : > { %v4448_v41 = vsel %vm6661_vm2, %v4441_v38, %v4446_v0  ;;  %v4473_v18 = vsel %vm6661_vm2, %v4466_v59, %v4471_v28  ;;  %v4748_v53 = vunpack.c.l.bf16 %v4465_v49  ;;  %v4482_v26 = vshrl.u32 %v4124_v56, 16 }
 0x359   : > { %v4746_v30 = vunpack.c.l.bf16 %v4448_v41  ;;  %v4749_v40 = vunpack.c.l.bf16 %v4473_v18  ;;  %v4823_v29 = vadd.f32 %v7949_v21, %v4747_v52  ;;  %v4481_v63 = vsel %vm6661_vm2, %v4474_v35, %v4479_v32  ;;  %v6288_v52 = vld.sshfl [vmem:[%s6568_s24 + $0x2c] sm:$0x33 pattern:$0x75316420] }
 0x35a   : > { %v4824_v23 = vadd.f32 %v7944_v55, %v4748_v53  ;;  %v4487_v6 = vshll.u32 %v4131_v47, 16  ;;  %v4490_v22 = vshrl.u32 %v4131_v47, 16  ;;  %v4495_v8 = vshll.u32 %v4132_v45, 16 }
 0x35b   : > { %v4822_v13 = vadd.f32 %v7941_v50, %v4746_v30  ;;  %v4825_v57 = vadd.f32 %v7953_v43, %v4749_v40  ;;  %v4498_v48 = vshrl.u32 %v4132_v45, 16  ;;  %v4503_v9 = vshll.u32 %v4133_v17, 16  ;;  %v6289_v41 = vld.sshfl [vmem:[%s6568_s24 + $0x30] sm:$0x33 pattern:$0x75316420] }
 0x35c   : > { %v4489_v2 = vsel %vm6661_vm2, %v4482_v26, %v4487_v6  ;;  %v4497_v46 = vsel %vm6661_vm2, %v4490_v22, %v4495_v8  ;;  %v4750_v56 = vunpack.c.l.bf16 %v4481_v63  ;;  %v4141_v17 = vcombine.high %v6287_v58, %v6287_v58 }
 0x35d   : > { %v4985_v60 = vcombine.low %v4822_v13, %v4823_v29  ;;  %v4986_v27 = vcombine.low %v4824_v23, %v4825_v57  ;;  %v4505_v36 = vsel %vm6661_vm2, %v4498_v48, %v4503_v9  ;;  %v4751_v42 = vunpack.c.l.bf16 %v4489_v2 }
 0x35e   : > { %v4752_v1 = vunpack.c.l.bf16 %v4497_v46  ;;  %v4753_v47 = vunpack.c.l.bf16 %v4505_v36  ;;  %v4826_v34 = vadd.f32 %v7941_v50, %v4750_v56  ;;  %v4148_v49 = vrot.slane %v6287_v58, %v6627_v37 }
 0x35f   : > { %v8183_v45 = vrot.slane %v4985_v60, %v7933_v54  ;;  %v8186_v39 = vrot.slane %v4986_v27, %v7933_v54  ;;  %v4827_v5 = vadd.f32 %v7949_v21, %v4751_v42  ;;  %v4165_v32 = vcombine.high %v6288_v52, %v6288_v52 }
 0x360   : > { %v4828_v38 = vadd.f32 %v7944_v55, %v4752_v1  ;;  %v4829_v14 = vadd.f32 %v7953_v43, %v4753_v47  ;;  %v4155_v18 = vrot.slane %v4141_v17, %v6627_v37  ;;  %v4156_v53 = vcombine.high %v4148_v49, %v4148_v49 }
 0x361   : > { %v5001_v33 = vcombine.low %v8183_v45, %v8186_v39  ;;  %v5002_v59 = vcombine.low %v4826_v34, %v4827_v5  ;;  %v4172_v26 = vrot.slane %v6288_v52, %v6627_v37  ;;  %v4507_v30 = vshrl.u32 %v4148_v49, 16 }
 0x362   : > { %v5003_v0 = vcombine.low %v4828_v38, %v4829_v14  ;;  %v4179_v40 = vrot.slane %v4165_v32, %v6627_v37  ;;  %v4189_v29 = vcombine.high %v6289_v41, %v6289_v41  ;;  %v4196_v63 = vrot.slane %v6289_v41, %v6627_v37 }
 0x363   : > { %v8195_v7 = vrot.slane %v5002_v59, %v7933_v54  ;;  %v4157_v23 = vcombine.high %v4155_v18, %v4155_v18  ;;  %v4512_v6 = vshll.u32 %v4155_v18, 16  ;;  %v4515_v22 = vshrl.u32 %v4155_v18, 16 }
 0x364   : > { %v8198_v28 = vrot.slane %v5003_v0, %v7933_v54  ;;  %v4520_v8 = vshll.u32 %v4156_v53, 16  ;;  %v4180_v13 = vcombine.high %v4172_v26, %v4172_v26  ;;  %v4523_v57 = vshrl.u32 %v4156_v53, 16 }
 0x365   : > { %v4536_v48 = vshll.u32 %v4172_v26, 16  ;;  %v4514_v9 = vsel %vm6661_vm2, %v4507_v30, %v4512_v6  ;;  %v4528_v46 = vshll.u32 %v4157_v23, 16  ;;  %v4531_v56 = vshrl.u32 %v4157_v23, 16 }
 0x366   : > { %v5018_v35 = vcombine.low %v8195_v7, %v8198_v28  ;;  %v4522_v2 = vsel %vm6661_vm2, %v4515_v22, %v4520_v8  ;;  %v8214_v60 = vrot.slane %v4189_v29, %v6627_v37  ;;  %v4564_v27 = vshrl.u32 %v4196_v63, 16 }
 0x367   : > { %v4754_v36 = vunpack.c.l.bf16 %v4514_v9  ;;  %v4755_v42 = vunpack.c.l.bf16 %v4522_v2  ;;  %v4530_v1 = vsel %vm6661_vm2, %v4523_v57, %v4528_v46  ;;  %v4538_v47 = vsel %vm6661_vm2, %v4531_v56, %v4536_v48 }
 0x368   : > { %v4181_v34 = vcombine.high %v4179_v40, %v4179_v40  ;;  %v4539_v5 = vshrl.u32 %v4172_v26, 16  ;;  %v4756_v38 = vunpack.c.l.bf16 %v4530_v1  ;;  %v4757_v14 = vunpack.c.l.bf16 %v4538_v47 }
 0x369   : > { %v4830_v58 = vadd.f32 %v7941_v50, %v4754_v36  ;;  %v4831_v59 = vadd.f32 %v7949_v21, %v4755_v42  ;;  %v4544_v0 = vshll.u32 %v4179_v40, 16  ;;  %v4547_v17 = vshrl.u32 %v4179_v40, 16 }
 0x36a   : > { %v4552_v49 = vshll.u32 %v4180_v13, 16  ;;  %v4555_v52 = vshrl.u32 %v4180_v13, 16  ;;  %v4832_v32 = vadd.f32 %v7944_v55, %v4756_v38  ;;  %v4833_v41 = vadd.f32 %v7953_v43, %v4757_v14 }
 0x36b   : > { %v5019_v18 = vcombine.low %v4830_v58, %v4831_v59  ;;  %v4560_v53 = vshll.u32 %v4181_v34, 16  ;;  %v4546_v30 = vsel %vm6661_vm2, %v4539_v5, %v4544_v0  ;;  %v4569_v29 = vshll.u32 %v8214_v60, 16  ;;  %v6291_v5 = vld.sshfl [vmem:[%s6568_s24 + $0x38] sm:$0x33 pattern:$0x75316420] }
 0x36c   : > { %v4554_v26 = vsel %vm6661_vm2, %v4547_v17, %v4552_v49  ;;  %v5020_v23 = vcombine.low %v4832_v32, %v4833_v41  ;;  %v4758_v22 = vunpack.c.l.bf16 %v4546_v30  ;;  %v4237_v59 = vcombine.high %v6291_v5, %v6291_v5  ;;  %v6292_v0 = vld.sshfl [vmem:[%s6568_s24 + $0x3c] sm:$0x33 pattern:$0x75316420] }
 0x36d   : > { %v8230_v40 = vrot.slane %v5019_v18, %v7933_v54  ;;  %v4562_v6 = vsel %vm6661_vm2, %v4555_v52, %v4560_v53  ;;  %v4571_v8 = vsel %vm6661_vm2, %v4564_v27, %v4569_v29  ;;  %v4759_v13 = vunpack.c.l.bf16 %v4554_v26  ;;  %v6290_v27 = vld.sshfl [vmem:[%s6568_s24 + $0x34] sm:$0x33 pattern:$0x75316420]  ;;  %s313_s24 = smul.u32 7, %s6373_s27 }
 0x36e   : > { %v4760_v57 = vunpack.c.l.bf16 %v4562_v6  ;;  %v8237_v48 = vrot.slane %v5020_v23, %v7933_v54  ;;  %v4761_v9 = vunpack.c.l.bf16 %v4571_v8  ;;  %v4834_v2 = vadd.f32 %v7941_v50, %v4758_v22  ;;  %s6165_s27 = smul.u32 28, %s8538_s28 }
 0x36f   : > { %v4835_v46 = vadd.f32 %v7949_v21, %v4759_v13  ;;  %v4213_v14 = vcombine.high %v6290_v27, %v6290_v27  ;;  %v4204_v17 = vcombine.high %v4196_v63, %v4196_v63  ;;  %v4220_v49 = vrot.slane %v6290_v27, %v6627_v37  ;;  %p316_p10 = scmp.lt.s32.totalorder %s313_s24, 13 }
 0x370   : > { %v4836_v56 = vadd.f32 %v7944_v55, %v4760_v57  ;;  %v5035_v36 = vcombine.low %v8230_v40, %v8237_v48  ;;  %v4837_v42 = vadd.f32 %v7953_v43, %v4761_v9  ;;  %v4244_v32 = vrot.slane %v6291_v5, %v6627_v37 }
 0x371   : > { %v5036_v1 = vcombine.low %v4834_v2, %v4835_v46  ;;  %v4227_v52 = vrot.slane %v4213_v14, %v6627_v37  ;;  %v4228_v41 = vcombine.high %v4220_v49, %v4220_v49  ;;  %v4251_v18 = vrot.slane %v4237_v59, %v6627_v37  ;;  %s8540_s24 = smov (!%p316_p10, %s313_s24), 13 }
 0x372   : > { %v5037_v47 = vcombine.low %v4836_v56, %v4837_v42  ;;  %v4261_v53 = vcombine.high %v6292_v0, %v6292_v0  ;;  %v4205_v30 = vcombine.high %v8214_v60, %v8214_v60  ;;  %v4572_v26 = vshrl.u32 %v8214_v60, 16  ;;  %s5845_s14 = sshll.u32 %s8540_s24, 1 }
 0x373   : > { %v8247_v34 = vrot.slane %v5036_v1, %v7933_v54  ;;  %v4577_v29 = vshll.u32 %v4204_v17, 16  ;;  %v4580_v23 = vshrl.u32 %v4204_v17, 16  ;;  %v8263_v6 = vcombine.high %v4244_v32, %v4244_v32  ;;  %s320_s17 = sadd.s32 %s6165_s27, %s5845_s14 }
 0x374   : > { %v8251_v38 = vrot.slane %v5037_v47, %v7933_v54  ;;  %v4593_v63 = vshll.u32 %v4220_v49, 16  ;;  %v4596_v22 = vshrl.u32 %v4220_v49, 16  ;;  %v4601_v8 = vshll.u32 %v4227_v52, 16  ;;  %s5846_s28 = sshll.u32 %s320_s17, 3 }
 0x375   : > { %v4621_v13 = vshrl.u32 %v4244_v32, 16  ;;  %v4579_v57 = vsel %vm6661_vm2, %v4572_v26, %v4577_v29  ;;  %v4585_v9 = vshll.u32 %v4205_v30, 16  ;;  %v4588_v2 = vshrl.u32 %v4205_v30, 16  ;;  %s8362_s13 = scalar_lea.vmem %s8499_s7, %s5846_s28 }
 0x376   : > { %v5052_v58 = vcombine.low %v8247_v34, %v8251_v38  ;;  %v4603_v46 = vsel %vm6661_vm2, %v4596_v22, %v4601_v8  ;;  %v4762_v56 = vunpack.c.l.bf16 %v4579_v57  ;;  %v4229_v42 = vcombine.high %v4227_v52, %v4227_v52 }
 0x377   : > { %v4604_v1 = vshrl.u32 %v4227_v52, 16  ;;  %v4587_v60 = vsel %vm6661_vm2, %v4580_v23, %v4585_v9  ;;  %v4595_v27 = vsel %vm6661_vm2, %v4588_v2, %v4593_v63  ;;  %v4765_v47 = vunpack.c.l.bf16 %v4603_v46 }
 0x378   : > { %v4609_v5 = vshll.u32 %v4228_v41, 16  ;;  %v4763_v14 = vunpack.c.l.bf16 %v4587_v60  ;;  %v4764_v59 = vunpack.c.l.bf16 %v4595_v27  ;;  %v4838_v17 = vadd.f32 %v7941_v50, %v4762_v56 }
 0x379   : > { %v4612_v49 = vshrl.u32 %v4228_v41, 16  ;;  %v4841_v32 = vadd.f32 %v7953_v43, %v4765_v47  ;;  %v4617_v26 = vshll.u32 %v4229_v42, 16  ;;  %v4626_v52 = vshll.u32 %v4251_v18, 16 }
 0x37a   : > { %v4611_v30 = vsel %vm6661_vm2, %v4604_v1, %v4609_v5  ;;  %v4839_v29 = vadd.f32 %v7949_v21, %v4763_v14  ;;  %v4840_v23 = vadd.f32 %v7944_v55, %v4764_v59  ;;  %v4629_v22 = vshrl.u32 %v4251_v18, 16 }
 0x37b   : > { %v4634_v63 = vshll.u32 %v8263_v6, 16  ;;  %v4268_v8 = vrot.slane %v6292_v0, %v6627_v37  ;;  %v4619_v57 = vsel %vm6661_vm2, %v4612_v49, %v4617_v26  ;;  %v4628_v41 = vsel %vm6661_vm2, %v4621_v13, %v4626_v52 }
 0x37c   : > { %v4766_v9 = vunpack.c.l.bf16 %v4611_v30  ;;  %v5053_v2 = vcombine.low %v4838_v17, %v4839_v29  ;;  %v5054_v46 = vcombine.low %v4840_v23, %v4841_v32  ;;  %v4767_v42 = vunpack.c.l.bf16 %v4619_v57 }
 0x37d   : > { %v4636_v56 = vsel %vm6661_vm2, %v4629_v22, %v4634_v63  ;;  %v8288_v1 = vrot.slane %v4261_v53, %v6627_v37  ;;  %v4768_v60 = vunpack.c.l.bf16 %v4628_v41  ;;  %v8298_v14 = vcombine.high %v4268_v8, %v4268_v8 }
 0x37e   : > { %v4769_v27 = vunpack.c.l.bf16 %v4636_v56  ;;  %v4842_v0 = vadd.f32 %v7941_v50, %v4766_v9  ;;  %v8292_v47 = vrot.slane %v5053_v2, %v7933_v54  ;;  %v8295_v5 = vrot.slane %v5054_v46, %v7933_v54 }
 0x37f   : > { %v4843_v13 = vadd.f32 %v7949_v21, %v4767_v42  ;;  %v4844_v59 = vadd.f32 %v7944_v55, %v4768_v60  ;;  %v4253_v49 = vcombine.high %v4251_v18, %v4251_v18  ;;  %v4637_v32 = vshrl.u32 %v8263_v6, 16 }
 0x380   : > { %v4845_v17 = vadd.f32 %v7953_v43, %v4769_v27  ;;  %v5069_v37 = vcombine.low %v8292_v47, %v8295_v5  ;;  %v4650_v26 = vshll.u32 %v4268_v8, 16  ;;  %v4653_v52 = vshrl.u32 %v4268_v8, 16 }
 0x381   : > { %v5070_v53 = vcombine.low %v4842_v0, %v4843_v13  ;;  %v4658_v29 = vshll.u32 %v8288_v1, 16  ;;  %v4642_v22 = vshll.u32 %v4253_v49, 16  ;;  %v4645_v63 = vshrl.u32 %v4253_v49, 16 }
 0x382   : > { %v5071_v30 = vcombine.low %v4844_v59, %v4845_v17  ;;  %v4661_v57 = vshrl.u32 %v8288_v1, 16  ;;  %v4666_v6 = vshll.u32 %v8298_v14, 16 }
 0x383   : > { %v8307_v23 = vrot.slane %v5070_v53, %v7933_v54  ;;  %v4660_v18 = vsel %vm6661_vm2, %v4653_v52, %v4658_v29  ;;  %v4644_v8 = vsel %vm6661_vm2, %v4637_v32, %v4642_v22  ;;  %v4652_v9 = vsel %vm6661_vm2, %v4645_v63, %v4650_v26 }
 0x384   : > { %v8311_v41 = vrot.slane %v5071_v30, %v7933_v54  ;;  %v4772_v2 = vunpack.c.l.bf16 %v4660_v18  ;;  %v4668_v56 = vsel %vm6661_vm2, %v4661_v57, %v4666_v6  ;;  %v4770_v42 = vunpack.c.l.bf16 %v4644_v8 }
 0x385   : > { %v4771_v60 = vunpack.c.l.bf16 %v4652_v9  ;;  %v4773_v27 = vunpack.c.l.bf16 %v4668_v56 }
 0x386   : > { %v5086_v46 = vcombine.low %v8307_v23, %v8311_v41  ;;  %v4848_v0 = vadd.f32 %v7944_v55, %v4772_v2  ;;  %v4846_v13 = vadd.f32 %v7941_v50, %v4770_v42 }
 0x387   : > { %v4847_v59 = vadd.f32 %v7949_v21, %v4771_v60  ;;  %v4849_v17 = vadd.f32 %v7953_v43, %v4773_v27 }
 0x389   : > { %v5087_v53 = vcombine.low %v4846_v13, %v4847_v59  ;;  %v5088_v49 = vcombine.low %v4848_v0, %v4849_v17 }
 0x38b   : > { %v8330_v32 = vrot.slane %v5087_v53, %v7933_v54  ;;  %v8334_v30 = vrot.slane %v5088_v49, %v7933_v54 }
 0x38d   : > { %v5103_v55 = vcombine.low %v8330_v32, %v8334_v30 }
 0x3af   : > { %v5182_v26 = vpop.f32.mrb[16].mxu1 }
 0x3b0   : > { %v5183_v21 = vadd.f32 %v5182_v26, %v4916_v24  ;;  %v6133_v43 = vpop.f32.mrb[17].mxu1 }
 0x3b1   : > { %v5185_v52 = vpop.f32.mrb[18].mxu1 }
 0x3b2   : > { %v5236_v29 = vmax.f32 %v5183_v21, 0.0  ;;  %v5186_v22 = vadd.f32 %v5185_v52, %v4933_v12  ;;  %v6134_v63 = vpop.f32.mrb[19].mxu1 }
 0x3b4   : > { %v5262_v57 = vcombine.high %v5236_v29, %v5236_v29  ;;  %v5269_v18 = vrot.slane %v5236_v29, %v7933_v54  ;;  %v5237_v6 = vmax.f32 %v5186_v22, 0.0 }
 0x3b6   : > { %v5276_v8 = vrot.slane %v5262_v57, %v7933_v54  ;;  %v5277_v9 = vcombine.high %v5269_v18, %v5269_v18  ;;  %v5279_v2 = vcombine.high %v5237_v6, %v5237_v6  ;;  %v5286_v4 = vrot.slane %v5237_v6, %v7933_v54 }
 0x3b7   : > { %v5190_v20 = vpop.f32.mrb[20].mxu1 }
 0x3b8   : > { %v5278_v24 = vcombine.high %v5276_v8, %v5276_v8  ;;  %v5473_v56 = vcombine.low %v5269_v18, %v5277_v9  ;;  %v5293_v19 = vrot.slane %v5279_v2, %v7933_v54  ;;  %v5294_v10 = vcombine.high %v5286_v4, %v5286_v4  ;;  %v6137_v12 = vpop.f32.mrb[21].mxu1 }
 0x3b9   : > { %v5191_v42 = vadd.f32 %v5190_v20, %v4950_v31  ;;  %v5193_v60 = vpop.f32.mrb[22].mxu1 }
 0x3ba   : > { %v5474_v27 = vcombine.low %v5276_v8, %v5278_v24  ;;  %v5490_v0 = vcombine.low %v5286_v4, %v5294_v10  ;;  %v6138_v13 = vpop.f32.mrb[23].mxu1  ;;  %v5194_v17 = vadd.f32 %v5193_v60, %v4967_v25  ;;  %v5481_v53 = vrot.slane %v5473_v56, %v7933_v54 }
 0x3bb   : > { %v5238_v59 = vmax.f32 %v5191_v42, 0.0  ;;  %v5504_v16 = vrot.slane %v5293_v19, %v7933_v54  ;;  %v5295_v44 = vcombine.high %v5293_v19, %v5293_v19 }
 0x3bc   : > { %v5488_v49 = vrot.slane %v5474_v27, %v7933_v54  ;;  %v5497_v26 = vrot.slane %v5490_v0, %v7933_v54  ;;  %v5239_v11 = vmax.f32 %v5194_v17, 0.0 }
 0x3bd   : > { %v5296_v31 = vcombine.high %v5238_v59, %v5238_v59  ;;  %v5303_v15 = vrot.slane %v5238_v59, %v7933_v54 }
 0x3be   : > { %v5489_v25 = vcombine.low %v5481_v53, %v5488_v49  ;;  %v5505_v21 = vcombine.low %v5497_v26, %v5504_v16  ;;  %v5320_v22 = vrot.slane %v5239_v11, %v7933_v54  ;;  %v5313_v56 = vcombine.high %v5239_v11, %v5239_v11 }
 0x3bf   : > { %v5310_v43 = vrot.slane %v5296_v31, %v7933_v54  ;;  %v5311_v52 = vcombine.high %v5303_v15, %v5303_v15  ;;  %v5506_v29 = vcombine.low %v5295_v44, %v5303_v15 }
 0x3c0   : > { %5718 = vst.msk [vmem:[%s8362_s13] sm:$0xff] %vm407_vm1, %v5489_v25  ;;  %v5328_v18 = vcombine.high %v5320_v22, %v5320_v22  ;;  %v5327_v19 = vrot.slane %v5313_v56, %v7933_v54 }
 0x3c1   : > { %5720 = vst.msk [vmem:[%s8362_s13 + $0x8] sm:$0x3f] %vm5719_vm0, %v5505_v21  ;;  %v5507_v63 = vcombine.low %v5311_v52, %v5310_v43  ;;  %v5312_v57 = vcombine.high %v5310_v43, %v5310_v43  ;;  %v5514_v6 = vrot.slane %v5506_v29, %v7933_v54 }
 0x3c2   : > { %v5537_v20 = vrot.slane %v5328_v18, %v7933_v54  ;;  %v5329_v27 = vcombine.high %v5327_v19, %v5327_v19 }
 0x3c3   : > { %v5521_v8 = vrot.slane %v5507_v63, %v7933_v54  ;;  %v5523_v9 = vcombine.low %v5312_v57, %v5320_v22 }
 0x3c4   : > { %v5539_v26 = vcombine.low %v5327_v19, %v5329_v27 }
 0x3c5   : > { %v5522_v2 = vcombine.low %v5514_v6, %v5521_v8  ;;  %v5530_v4 = vrot.slane %v5523_v9, %v7933_v54 }
 0x3c6   : > { %v5547_v31 = vrot.slane %v5539_v26, %v7933_v54 }
 0x3c7   : > { %5721 = vst.msk [vmem:[%s8362_s13 + $0x10] sm:$0xff] %vm407_vm1, %v5522_v2  ;;  %v5538_v24 = vcombine.low %v5530_v4, %v5537_v20 }
 0x3c9   : > { %5722 = vst.msk [vmem:[%s8362_s13 + $0x18] sm:$0x3f] %vm5719_vm0, %v5538_v24 }
 0x3d2   : > { %v5198_v10 = vpop.f32.mrb[24].mxu1 }
 0x3d3   : > { %v5199_v12 = vadd.f32 %v5198_v10, %v4984_v61  ;;  %v6141_v42 = vpop.f32.mrb[25].mxu1 }
 0x3d4   : > { %v5201_v60 = vpop.f32.mrb[26].mxu1 }
 0x3d5   : > { %v5240_v0 = vmax.f32 %v5199_v12, 0.0  ;;  %v5202_v13 = vadd.f32 %v5201_v60, %v5001_v33  ;;  %v6142_v59 = vpop.f32.mrb[27].mxu1 }
 0x3d7   : > { %v5330_v17 = vcombine.high %v5240_v0, %v5240_v0  ;;  %v5337_v53 = vrot.slane %v5240_v0, %v7933_v54  ;;  %v5241_v49 = vmax.f32 %v5202_v13, 0.0 }
 0x3d9   : > { %v5344_v16 = vrot.slane %v5330_v17, %v7933_v54  ;;  %v5345_v62 = vcombine.high %v5337_v53, %v5337_v53  ;;  %v5354_v44 = vrot.slane %v5241_v49, %v7933_v54  ;;  %v5347_v21 = vcombine.high %v5241_v49, %v5241_v49 }
 0x3db   : > { %v5346_v51 = vcombine.high %v5344_v16, %v5344_v16  ;;  %v5540_v61 = vcombine.low %v5337_v53, %v5345_v62  ;;  %v5570_v11 = vrot.slane %v5354_v44, %v7933_v54  ;;  %v5361_v43 = vrot.slane %v5347_v21, %v7933_v54 }
 0x3dc   : > { %v5362_v52 = vcombine.high %v5354_v44, %v5354_v44  ;;  %v4669_v21 = vshrl.u32 %v8298_v14, 16 }
 0x3dd   : > { %v5554_v45 = vrot.slane %v5540_v61, %v7933_v54  ;;  %v5556_v39 = vcombine.low %v5344_v16, %v5346_v51  ;;  %v5363_v2 = vcombine.high %v5361_v43, %v5361_v43 }
 0x3de   : > { %v5572_v9 = vcombine.low %v5362_v52, %v5361_v43 }
 0x3df   : > { %v5555_v33 = vcombine.low %v5547_v31, %v5554_v45  ;;  %v5563_v15 = vrot.slane %v5556_v39, %v7933_v54  ;;  %v4277_v31 = vcombine.high %v8288_v1, %v8288_v1 }
 0x3e1   : > { %5723 = vst.msk [vmem:[%s8362_s13 + $0x20] sm:$0xff] %vm407_vm1, %v5555_v33  ;;  %v5571_v25 = vcombine.low %v5563_v15, %v5570_v11  ;;  %v4674_v43 = vshll.u32 %v4277_v31, 16 }
 0x3e3   : > { %5724 = vst.msk [vmem:[%s8362_s13 + $0x28] sm:$0x3f] %vm5719_vm0, %v5571_v25 }
 0x3eb   : > { %v5206_v29 = vpop.f32.mrb[28].mxu1 }
 0x3ec   : > { %v5207_v22 = vadd.f32 %v5206_v29, %v5018_v35  ;;  %v6145_v63 = vpop.f32.mrb[29].mxu1  ;;  %v5580_v35 = vrot.slane %v5572_v9, %v7933_v54 }
 0x3ed   : > { %v5209_v57 = vpop.f32.mrb[30].mxu1 }
 0x3ee   : > { %v5242_v18 = vmax.f32 %v5207_v22, 0.0  ;;  %v5210_v6 = vadd.f32 %v5209_v57, %v5035_v36  ;;  %v6146_v8 = vpop.f32.mrb[31].mxu1 }
 0x3f0   : > { %v5364_v4 = vcombine.high %v5242_v18, %v5242_v18  ;;  %v5371_v20 = vrot.slane %v5242_v18, %v7933_v54  ;;  %v5243_v24 = vmax.f32 %v5210_v6, 0.0 }
 0x3f2   : > { %v5378_v56 = vrot.slane %v5364_v4, %v7933_v54  ;;  %v5379_v19 = vcombine.high %v5371_v20, %v5371_v20  ;;  %v5573_v7 = vcombine.low %v5363_v2, %v5371_v20  ;;  %v5381_v28 = vcombine.high %v5243_v24, %v5243_v24 }
 0x3f3   : > { %v5388_v10 = vrot.slane %v5243_v24, %v7933_v54 }
 0x3f4   : > { %v5380_v40 = vcombine.high %v5378_v56, %v5378_v56  ;;  %v5587_v48 = vrot.slane %v5573_v7, %v7933_v54  ;;  %v5589_v36 = vcombine.low %v5379_v19, %v5378_v56  ;;  %v5395_v12 = vrot.slane %v5381_v28, %v7933_v54 }
 0x3f5   : > { %v5396_v42 = vcombine.high %v5388_v10, %v5388_v10 }
 0x3f6   : > { %v5588_v60 = vcombine.low %v5580_v35, %v5587_v48  ;;  %v5596_v27 = vrot.slane %v5589_v36, %v7933_v54  ;;  %v5603_v0 = vrot.slane %v5380_v40, %v7933_v54  ;;  %v5397_v13 = vcombine.high %v5395_v12, %v5395_v12 }
 0x3f7   : > { %v5605_v59 = vcombine.low %v5388_v10, %v5396_v42 }
 0x3f8   : > { %v5604_v17 = vcombine.low %v5596_v27, %v5603_v0  ;;  %5725 = vst.msk [vmem:[%s8362_s13 + $0x30] sm:$0xff] %vm407_vm1, %v5588_v60  ;;  %v5606_v53 = vcombine.low %v5395_v12, %v5397_v13 }
 0x3f9   : > { %v5613_v49 = vrot.slane %v5605_v59, %v7933_v54 }
 0x3fa   : > { %5726 = vst.msk [vmem:[%s8362_s13 + $0x38] sm:$0x3f] %vm5719_vm0, %v5604_v17  ;;  %v5620_v26 = vrot.slane %v5606_v53, %v7933_v54 }
 0x3fc   : > { %v5621_v16 = vcombine.low %v5613_v49, %v5620_v26 }
 0x3fe   : > { %5727 = vst.msk [vmem:[%s8362_s13 + $0x40] sm:$0xff] %vm407_vm1, %v5621_v16 }
 0x405   : > { %v5214_v62 = vpop.f32.mrb[32].mxu1 }
 0x406   : > { %v5215_v51 = vadd.f32 %v5214_v62, %v5052_v58  ;;  %v6149_v61 = vpop.f32.mrb[33].mxu1 }
 0x407   : > { %v5217_v44 = vpop.f32.mrb[34].mxu1 }
 0x408   : > { %v5244_v45 = vmax.f32 %v5215_v51, 0.0  ;;  %v5218_v39 = vadd.f32 %v5217_v44, %v5069_v37  ;;  %v6150_v33 = vpop.f32.mrb[35].mxu1  ;;  %v4676_v37 = vsel %vm6661_vm2, %v4669_v21, %v4674_v43 }
 0x409   : > { %v4774_v8 = vunpack.c.l.bf16 %v4676_v37 }
 0x40a   : > { %v5398_v15 = vcombine.high %v5244_v45, %v5244_v45  ;;  %v5405_v11 = vrot.slane %v5244_v45, %v7933_v54  ;;  %v5245_v25 = vmax.f32 %v5218_v39, 0.0 }
 0x40b   : > { %v4850_v56 = vadd.f32 %v7941_v50, %v4774_v8 }
 0x40c   : > { %v5412_v34 = vrot.slane %v5398_v15, %v7933_v54  ;;  %v5413_v38 = vcombine.high %v5405_v11, %v5405_v11  ;;  %v5415_v58 = vcombine.high %v5245_v25, %v5245_v25  ;;  %v5422_v1 = vrot.slane %v5245_v25, %v7933_v54 }
 0x40d   : > { %v5110_v23 = vrot.slane %v4850_v56, %v7933_v54 }
 0x40e   : > { %v5622_v52 = vcombine.low %v5405_v11, %v5413_v38  ;;  %v5414_v29 = vcombine.high %v5412_v34, %v5412_v34  ;;  %v5429_v47 = vrot.slane %v5415_v58, %v7933_v54  ;;  %v5430_v5 = vcombine.high %v5422_v1, %v5422_v1 }
 0x40f   : > { %v5636_v14 = vrot.slane %v5412_v34, %v7933_v54 }
 0x410   : > { %v5629_v22 = vrot.slane %v5622_v52, %v7933_v54  ;;  %v5638_v63 = vcombine.low %v5414_v29, %v5422_v1  ;;  %v5639_v57 = vcombine.low %v5430_v5, %v5429_v47  ;;  %v5431_v35 = vcombine.high %v5429_v47, %v5429_v47 }
 0x412   : > { %v5637_v18 = vcombine.low %v5629_v22, %v5636_v14  ;;  %v5646_v6 = vrot.slane %v5638_v63, %v7933_v54  ;;  %v5653_v9 = vrot.slane %v5639_v57, %v7933_v54 }
 0x414   : > { %5728 = vst.msk [vmem:[%s8362_s13 + $0x48] sm:$0x3f] %vm5719_vm0, %v5637_v18  ;;  %v5654_v4 = vcombine.low %v5646_v6, %v5653_v9 }
 0x415   : > { %v5222_v2 = vpop.f32.mrb[36].mxu1 }
 0x416   : > { %v5223_v3 = vadd.f32 %v5222_v2, %v5086_v46  ;;  %v6153_v20 = vpop.f32.mrb[37].mxu1  ;;  %5729 = vst.msk [vmem:[%s8362_s13 + $0x50] sm:$0xff] %vm407_vm1, %v5654_v4 }
 0x417   : > { %v5225_v24 = vpop.f32.mrb[38].mxu1 }
 0x418   : > { %v5246_v19 = vmax.f32 %v5223_v3, 0.0  ;;  %v5226_v7 = vadd.f32 %v5225_v24, %v5103_v55  ;;  %v6154_v28 = vpop.f32.mrb[39].mxu1 }
 0x41a   : > { %v5432_v10 = vcombine.high %v5246_v19, %v5246_v19  ;;  %v5439_v40 = vrot.slane %v5246_v19, %v7933_v54  ;;  %v5247_v48 = vmax.f32 %v5226_v7, 0.0 }
 0x41c   : > { %v5446_v41 = vrot.slane %v5432_v10, %v7933_v54  ;;  %v5447_v46 = vcombine.high %v5439_v40, %v5439_v40  ;;  %v5655_v36 = vcombine.low %v5431_v35, %v5439_v40  ;;  %v5449_v50 = vcombine.high %v5247_v48, %v5247_v48 }
 0x41d   : > { %v5456_v12 = vrot.slane %v5247_v48, %v7933_v54 }
 0x41e   : > { %v5448_v42 = vcombine.high %v5446_v41, %v5446_v41  ;;  %v5662_v32 = vrot.slane %v5655_v36, %v7933_v54  ;;  %v5669_v30 = vrot.slane %v5447_v46, %v7933_v54  ;;  %v5463_v55 = vrot.slane %v5449_v50, %v7933_v54 }
 0x41f   : > { %v5464_v60 = vcombine.high %v5456_v12, %v5456_v12  ;;  %v5230_v27 = vpop.f32.mrb[40].mxu1 }
 0x420   : > { %v5670_v0 = vcombine.low %v5662_v32, %v5669_v30  ;;  %v5671_v13 = vcombine.low %v5446_v41, %v5448_v42  ;;  %v5465_v59 = vcombine.high %v5463_v55, %v5463_v55  ;;  %v5231_v17 = vadd.f32 %v5230_v27, %v5110_v23  ;;  %v6157_v53 = vpop.f32.mrb[41].mxu1 }
 0x421   : > { %v5672_v49 = vcombine.low %v5456_v12, %v5464_v60  ;;  %v5233_v26 = vpop.f32.mrb[42].mxu1 }
 0x422   : > { %v5679_v16 = vrot.slane %v5671_v13, %v7933_v54  ;;  %5730 = vst.msk [vmem:[%s8362_s13 + $0x58] sm:$0x3f] %vm5719_vm0, %v5670_v0  ;;  %v5688_v62 = vcombine.low %v5463_v55, %v5465_v59  ;;  %v5248_v51 = vmax.f32 %v5231_v17, 0.0  ;;  %v6158_v61 = vpop.f32.mrb[43].mxu1 }
 0x423   : > { %v5686_v44 = vrot.slane %v5672_v49, %v7933_v54 }
 0x424   : > { %v5472_v31 = vrot.slane %v5248_v51, %v7933_v54  ;;  %v5695_v39 = vrot.slane %v5688_v62, %v7933_v54 }
 0x425   : > { %v5687_v45 = vcombine.low %v5679_v16, %v5686_v44 }
 0x426   : > { %v5702_v33 = vrot.slane %v5472_v31, %v7933_v54 }
 0x427   : > { %5731 = vst.msk [vmem:[%s8362_s13 + $0x60] sm:$0xff] %vm407_vm1, %v5687_v45 }
 0x428   : > { %v5703_v15 = vcombine.low %v5695_v39, %v5702_v33 }
 0x42a   : > { %5732 = vst.msk [vmem:[%s8362_s13 + $0x68] sm:$0x3f] %vm5719_vm0, %v5703_v15 }
 0x42b PF: > { %s20_s8 = sadd.s32 1, %s6389_s8   ;;  %s8524_s24 = smov %s6365_s25 }
 0x42c   : > { %p17_p5 = scmp.ge.s32.totalorder %s20_s8, 6   ;;  %s8525_s25 = smov %s6369_s26 }
 0x42d   : > { %s8526_s26 = smov %s6511_s19  ;;  %s8527_s27 = smov %s6381_s29 }
 0x42e   : > { %s8528_s28 = smov %s6385_s30  ;;  %s8529_s29 = smov %s8532_s10 }
 0x42f   : > { %s8530_s30 = smov %s8536_s11  ;;  %19 = sbr.rel (!%p17_p5) target bundleno = 5 (0x5), region = 89 }
 0x436   :  { %5765 = vsyncpa [#allocation3], 1 }
 0x437   :  { %5767 = vsyncpa [#allocation3 + $0x1], 1 }

</bundles_post_ra>
